<compile_context>
chip_gen: v5e
topology: v5e:2x2
jax: 0.10.0
libtpu: 0.0.40
codegen_flags: <defaults>
</compile_context>

<pallas_src>
import functools

import jax
import jax.numpy as jnp
import numpy as np
from jax.experimental import pallas as pl
from jax.experimental.pallas import tpu as pltpu


# ----------------------------------------------------------------------------
# Constant structure matrices (built in plain JAX in the wrapper; all tiny).
# ----------------------------------------------------------------------------
def box_matrix(n):
    """Banded matrix B with B[i,j] = 1 if |i-j| <= 1 (3-tap box, zero pad)."""
    idx = jnp.arange(n)
    return (jnp.abs(idx[:, None] - idx[None, :]) <= 1).astype(jnp.float32)


def interp_matrix(out_size, in_size):
    """Row-interpolation matrix for bilinear resize with align_corners=True."""
    if out_size == 1 or in_size == 1:
        src = jnp.zeros((out_size,), jnp.float32)
    else:
        src = jnp.arange(out_size, dtype=jnp.float32) * (
            (in_size - 1) / (out_size - 1)
        )
    p0 = jnp.clip(jnp.floor(src), 0, in_size - 1)
    frac = src - p0
    p0i = p0.astype(jnp.int32)
    p1i = jnp.clip(p0i + 1, 0, in_size - 1)
    M = (1.0 - frac)[:, None] * jax.nn.one_hot(p0i, in_size, dtype=jnp.float32)
    M = M + frac[:, None] * jax.nn.one_hot(p1i, in_size, dtype=jnp.float32)
    return M  # (out_size, in_size)


# ----------------------------------------------------------------------------
# Pallas kernel.  Grid = (batch, W_tiles).
# ----------------------------------------------------------------------------
def _guided_refiner_kernel(
    dim, z_dim, eps, H_pad,
    lr_x_ref,   # (1, dim, h, w)        VMEM
    lr_y_ref,   # (1, dim, h, w)        VMEM
    lr_z_ref,   # (1, z,   h, w)        VMEM
    hr_x_ref,   # (1, dim, H_pad, W_t)  VMEM
    Bh9_ref,    # (h, h)                VMEM  3-tap band matrix * 1/9 (rows)
    Bw_ref,     # (w, w)                VMEM  3-tap band matrix (cols)
    Rh_ref,     # (H_pad, h)            VMEM  bilinear row factor (f32)
    RwT_ref,    # (w, W_t)              VMEM  bilinear col factor tile (bf16)
    W1_s,       # (z, 3*dim+z)          SMEM
    g1_s,       # (z,)                  SMEM
    be1_s,      # (z,)                  SMEM
    W2_s,       # (z, z)                SMEM
    g2_s,       # (z,)                  SMEM
    be2_s,      # (z,)                  SMEM
    W3_s,       # (3, z)                SMEM
    b3_s,       # (3,)                  SMEM
    out_ref,    # (1, 3, H_pad, W_t)    VMEM
    ab_half,    # (6*H_pad, w) bf16     VMEM scratch: row-stacked Rh@{A,b}
):
    f32 = jnp.float32
    j = pl.program_id(1)

    # ---- Low-res work: once per batch element (first W tile only). ---------
    @pl.when(j == 0)
    def _():
        Bh9 = Bh9_ref[...]
        Bw = Bw_ref[...]
        Rh = Rh_ref[...]
        lr_x = lr_x_ref[0]   # (dim, h, w)
        lr_y = lr_y_ref[0]
        lr_z = lr_z_ref[0]
        h = lr_x.shape[1]

        # Box-filter statistics: ONE batched (4*dim*h, w) @ Bw right pass,
        # then per-slice Bh left passes (cold path, no relayout needed).
        pieces = []
        for c in range(dim):
            xc, yc = lr_x[c], lr_y[c]
            pieces += [xc, yc, xc * yc, xc * xc]
        S = jnp.concatenate(pieces, axis=0)                      # (4*dim*h, w)
        T = jnp.dot(S, Bw, preferred_element_type=f32)           # one MXU pass

        mean_x, mean_y, cov_xy, inv_var = [], [], [], []
        for c in range(dim):
            base = 4 * c
            mx = jnp.dot(Bh9, T[(base + 0) * h:(base + 1) * h],
                         preferred_element_type=f32)
            my = jnp.dot(Bh9, T[(base + 1) * h:(base + 2) * h],
                         preferred_element_type=f32)
            mxy = jnp.dot(Bh9, T[(base + 2) * h:(base + 3) * h],
                          preferred_element_type=f32)
            mxx = jnp.dot(Bh9, T[(base + 3) * h:(base + 4) * h],
                          preferred_element_type=f32)
            cov = mxy - mx * my
            var = mxx - mx * mx
            inv = pl.reciprocal(var + eps, approx=True)          # EUP slot
            mean_x.append(mx)
            mean_y.append(my)
            cov_xy.append(cov)
            inv_var.append(inv)
        A0 = [cov_xy[c] * inv_var[c] for c in range(dim)]

        feat = A0 + cov_xy + inv_var + [lr_z[c] for c in range(z_dim)]
        c_in = 3 * dim + z_dim

        def conv1x1(inputs, w_ref, cout, cin):
            # 1x1 conv as statically-unrolled scalar(SMEM) x tile FMAs (VPU).
            outs = []
            for o in range(cout):
                acc = w_ref[o, 0] * inputs[0]
                for ci in range(1, cin):
                    acc = acc + w_ref[o, ci] * inputs[ci]
                outs.append(acc)
            return outs

        def gn_silu(rows, g_ref, b_ref):
            # GroupNorm(1, C) with ONE-PASS statistics (sum & sum-of-squares).
            cnum = len(rows)
            hh, ww = rows[0].shape
            inv_n = 1.0 / float(cnum * hh * ww)
            s1 = jnp.sum(rows[0])
            s2 = jnp.sum(rows[0] * rows[0])
            for r in rows[1:]:
                s1 = s1 + jnp.sum(r)
                s2 = s2 + jnp.sum(r * r)
            mu = s1 * inv_n
            var = s2 * inv_n - mu * mu
            rstd = jax.lax.rsqrt(var + 1e-5)
            outs = []
            for ci in range(cnum):
                y = (rows[ci] - mu) * (rstd * g_ref[ci]) + b_ref[ci]
                outs.append(y * jax.nn.sigmoid(y))   # SiLU
            return outs

        h1 = gn_silu(conv1x1(feat, W1_s, z_dim, c_in), g1_s, be1_s)
        h2 = gn_silu(conv1x1(h1, W2_s, z_dim, z_dim), g2_s, be2_s)
        A = conv1x1(h2, W3_s, 3, z_dim)
        A = [A[c] + b3_s[c] for c in range(3)]       # (h, w) each

        # Hoist the Rh (row) half of the bilinear upsample out of the W-tile
        # loop; cache A/b half-products row-stacked (bf16) for the hot matmul.
        for c in range(3):
            cm = c if dim == 3 else 0
            b_c = mean_y[cm] - A[c] * mean_x[cm]
            ab_half[c * H_pad:(c + 1) * H_pad, :] = jnp.dot(
                Rh, A[c], preferred_element_type=f32).astype(ab_half.dtype)
            ab_half[(3 + c) * H_pad:(4 + c) * H_pad, :] = jnp.dot(
                Rh, b_c, preferred_element_type=f32).astype(ab_half.dtype)

    # ---- Per-W-tile hot path: one batched bf16 matmul + fused FMA. ---------
    up6 = jnp.dot(ab_half[...], RwT_ref[...],
                  preferred_element_type=jnp.float32)            # (6*H_pad, W_t)
    for c in range(3):
        cm = c if dim == 3 else 0
        out_ref[0, c] = (
            up6[c * H_pad:(c + 1) * H_pad] * hr_x_ref[0, cm]
            + up6[(3 + c) * H_pad:(4 + c) * H_pad]
        ).astype(out_ref.dtype)


# ----------------------------------------------------------------------------
# Wrapper
# ----------------------------------------------------------------------------
def _round_up(x, m):
    return -(-x // m) * m


def _pick_w_tile(w_pad):
    for cand in (512, 384, 256, 128):
        if w_pad % cand == 0:
            return cand
    return w_pad


def guided_refiner(lr_x, lr_y, hr_x, lr_z, params, eps=1e-5):
    N, dim, h, w = lr_x.shape
    Nh, hdim, H, W = hr_x.shape
    z_dim = lr_z.shape[1]
    assert lr_y.shape == lr_x.shape and Nh == N and hdim == dim
    assert lr_z.shape[0] == N and lr_z.shape[2:] == (h, w)
    # b = mean_y - A * mean_x broadcasts a 3-channel A against dim channels.
    assert dim in (1, 3), "GuidedRefiner broadcast requires dim in {1, 3}"

    # Lane-dense high-res padding (pad in wrapper, crop after the call).
    H_pad = _round_up(H, 16)
    W_pad = _round_up(W, 128)
    W_t = _pick_w_tile(W_pad)
    n_wt = W_pad // W_t

    hr_x_p = jnp.pad(hr_x, ((0, 0), (0, 0), (0, H_pad - H), (0, W_pad - W)))

    # Small separable structure matrices; 1/9 box normalization folded in Bh.
    Bh9 = box_matrix(h) * (1.0 / 9.0)                              # (h, h)
    Bw = box_matrix(w)                                             # (w, w)
    Rh = jnp.pad(interp_matrix(H, h), ((0, H_pad - H), (0, 0)))    # (H_pad, h)
    RwT = jnp.pad(interp_matrix(W, w).T, ((0, 0), (0, W_pad - W)))  # (w, W_pad)
    RwT = RwT.astype(jnp.bfloat16)   # bf16 operand for the hot upsample matmul
    # TODO(synk): for upscale ratios >= 8 the dense Rh/RwT factors could be
    # replaced by banded 2-tap interpolation matmuls to cut MACs further.

    W1, g1, be1, W2, g2, be2, W3, b3 = params

    lr_spec = lambda C: pl.BlockSpec((1, C, h, w), lambda n, j: (n, 0, 0, 0))
    hr_spec = pl.BlockSpec((1, dim, H_pad, W_t), lambda n, j: (n, 0, 0, j))
    out_spec = pl.BlockSpec((1, 3, H_pad, W_t), lambda n, j: (n, 0, 0, j))
    const_spec = lambda arr: pl.BlockSpec(arr.shape, lambda n, j: (0, 0))
    rwt_spec = pl.BlockSpec((w, W_t), lambda n, j: (0, j))
    smem = pl.BlockSpec(memory_space=pltpu.MemorySpace.SMEM)

    # VMEM budget: double-buffered streamed blocks + constants + scratch,
    # capped at 75% of the physical VMEM (<= ~48 MiB on v7x, more on v5e/v6e).
    try:
        vmem_cap = int(getattr(pltpu.get_tpu_info(), "vmem_capacity_bytes",
                               64 * 2 ** 20))
    except Exception:
        vmem_cap = 64 * 2 ** 20
    stream_bytes = (
        4 * ((2 * dim + z_dim) * h * w + (dim + 3) * H_pad * W_t
             + h * h + w * w + H_pad * h)
        + 2 * (w * W_t + 6 * H_pad * w)
    )
    vmem_limit_bytes = int(min(0.75 * vmem_cap,
                               max(32 * 2 ** 20, 8 * stream_bytes)))

    out = pl.pallas_call(
        functools.partial(_guided_refiner_kernel, dim, z_dim, eps, H_pad),
        out_shape=jax.ShapeDtypeStruct((N, 3, H_pad, W_pad), jnp.float32),
        grid=(N, n_wt),
        in_specs=[
            lr_spec(dim),          # lr_x
            lr_spec(dim),          # lr_y
            lr_spec(z_dim),        # lr_z
            hr_spec,               # hr_x (padded)
            const_spec(Bh9),       # Bh * 1/9
            const_spec(Bw),        # Bw
            const_spec(Rh),        # Rh (padded rows)
            rwt_spec,              # RwT tile (bf16)
            smem, smem, smem, smem, smem, smem, smem, smem,
        ],
        out_specs=out_spec,
        scratch_shapes=[pltpu.VMEM((6 * H_pad, w), jnp.bfloat16)],
        compiler_params=pltpu.CompilerParams(
            # Batch axis shards across TCs (v7x megacore).  The W-tile axis
            # carries the j == 0 scratch, so it must remain "arbitrary".
            dimension_semantics=("parallel", "arbitrary"),
            vmem_limit_bytes=vmem_limit_bytes,
        ),
    )(lr_x, lr_y, lr_z, hr_x_p, Bh9, Bw, Rh, RwT,
      W1, g1, be1, W2, g2, be2, W3, b3)

    return out[:, :, :H, :W]


# ----------------------------------------------------------------------------
# Pure-JAX reference (mirrors the PyTorch forward semantics, NCHW, full f32).
# ----------------------------------------------------------------------------
def guided_refiner_ref(lr_x, lr_y, hr_x, lr_z, params, eps=1e-5):
    W1, g1, be1, W2, g2, be2, W3, b3 = params
    N, dim, h, w = lr_x.shape
    _, _, H, W = hr_x.shape

    def box(v):  # depthwise 3x3 conv, weight 1/9, zero pad
        vp = jnp.pad(v, ((0, 0), (0, 0), (1, 1), (1, 1)))
        acc = jnp.zeros_like(v)
        for di in range(3):
            for dj in range(3):
                acc = acc + vp[:, :, di:di + h, dj:dj + w]
        return acc / 9.0

    mean_x, mean_y = box(lr_x), box(lr_y)
    cov_xy = box(lr_x * lr_y) - mean_x * mean_y
    var_x = box(lr_x * lr_x) - mean_x * mean_x
    inv = 1.0 / (var_x + eps)
    A = cov_xy * inv
    feat = jnp.concatenate([A, cov_xy, inv, lr_z], axis=1)

    hi = jax.lax.Precision.HIGHEST
    conv1x1 = lambda x, Wm: jnp.einsum("oc,nchw->nohw", Wm, x, precision=hi)

    def gn_silu(x, g, b):
        mu = x.mean(axis=(1, 2, 3), keepdims=True)
        var = ((x - mu) ** 2).mean(axis=(1, 2, 3), keepdims=True)
        y = (x - mu) / jnp.sqrt(var + 1e-5)
        y = y * g[None, :, None, None] + b[None, :, None, None]
        return y * jax.nn.sigmoid(y)

    h1 = gn_silu(conv1x1(feat, W1), g1, be1)
    h2 = gn_silu(conv1x1(h1, W2), g2, be2)
    A = conv1x1(h2, W3) + b3[None, :, None, None]
    b = mean_y - A * mean_x

    Rh, Rw = interp_matrix(H, h), interp_matrix(W, w)
    up = lambda v: jnp.einsum("Hh,nchw,Ww->ncHW", Rh, v, Rw, precision=hi)
    return up(A) * hr_x + up(b)


# ----------------------------------------------------------------------------
if __name__ == "__main__":
    # Small shapes: dim must be 3 (or 1) for the A * mean_x broadcast.
    N, dim, z_dim = 2, 3, 8
    h, w = 8, 8          # low-res
    H, W = 16, 16        # high-res
    eps = 1e-5

    key = jax.random.PRNGKey(0)
    ks = jax.random.split(key, 12)
    lr_x = jax.random.normal(ks[0], (N, dim, h, w), jnp.float32)
    lr_y = jax.random.normal(ks[1], (N, dim, h, w), jnp.float32)
    hr_x = jax.random.normal(ks[2], (N, dim, H, W), jnp.float32)
    lr_z = jax.random.normal(ks[3], (N, z_dim, h, w), jnp.float32)

    c_in = 3 * dim + z_dim
    params = (
        0.1 * jax.random.normal(ks[4], (z_dim, c_in), jnp.float32),   # W1
        1.0 + 0.1 * jax.random.normal(ks[5], (z_dim,), jnp.float32),  # g1
        0.1 * jax.random.normal(ks[6], (z_dim,), jnp.float32),        # be1
        0.1 * jax.random.normal(ks[7], (z_dim, z_dim), jnp.float32),  # W2
        1.0 + 0.1 * jax.random.normal(ks[8], (z_dim,), jnp.float32),  # g2
        0.1 * jax.random.normal(ks[9], (z_dim,), jnp.float32),        # be2
        0.1 * jax.random.normal(ks[10], (3, z_dim), jnp.float32),     # W3
        0.1 * jax.random.normal(ks[11], (3,), jnp.float32),           # b3
    )

    out = guided_refiner(lr_x, lr_y, hr_x, lr_z, params, eps)
    out = jax.block_until_ready(out)

    ref = guided_refiner_ref(lr_x, lr_y, hr_x, lr_z, params, eps)
    max_err = float(jnp.max(jnp.abs(out - ref)))
    assert out.shape == (N, 3, H, W)
    # bf16 upsample operands + approx reciprocal give ~1e-2-level deviation
    # from the all-f32 reference; 3e-2 leaves margin while catching real bugs.
    assert np.isfinite(max_err) and max_err < 3e-2, f"max_err={max_err}"

    print("KERNEL_OK")
</pallas_src>

<mosaic_0001>
module attributes {stable_mosaic.version = 11 : i64} {
  func.func @_guided_refiner_kernel(%arg0: i32, %arg1: i32, %arg2: memref<1x3x8x8xf32, #tpu.memory_space<vmem>>, %arg3: memref<1x3x8x8xf32, #tpu.memory_space<vmem>>, %arg4: memref<1x8x8x8xf32, #tpu.memory_space<vmem>>, %arg5: memref<1x3x16x128xf32, #tpu.memory_space<vmem>>, %arg6: memref<8x8xf32, #tpu.memory_space<vmem>>, %arg7: memref<8x8xf32, #tpu.memory_space<vmem>>, %arg8: memref<16x8xf32, #tpu.memory_space<vmem>>, %arg9: memref<8x128xbf16, #tpu.memory_space<vmem>>, %arg10: memref<8x17xf32, #tpu.memory_space<smem>>, %arg11: memref<8xf32, #tpu.memory_space<smem>>, %arg12: memref<8xf32, #tpu.memory_space<smem>>, %arg13: memref<8x8xf32, #tpu.memory_space<smem>>, %arg14: memref<8xf32, #tpu.memory_space<smem>>, %arg15: memref<8xf32, #tpu.memory_space<smem>>, %arg16: memref<3x8xf32, #tpu.memory_space<smem>>, %arg17: memref<3xf32, #tpu.memory_space<smem>>, %arg18: memref<1x3x16x128xf32, #tpu.memory_space<vmem>>, %arg19: memref<96x8xbf16, #tpu.memory_space<vmem>>) attributes {dimension_semantics = [#tpu.dimension_semantics<parallel>, #tpu.dimension_semantics<arbitrary>], iteration_bounds = array<i64: 2, 1>, scalar_prefetch = 0 : i64, scratch_operands = 1 : i64, tpu.core_type = #tpu.core_type<tc>, window_params = [{transform_indices = @transform_0, window_bounds = array<i64: 1, 3, 8, 8>}, {transform_indices = @transform_1, window_bounds = array<i64: 1, 3, 8, 8>}, {transform_indices = @transform_2, window_bounds = array<i64: 1, 8, 8, 8>}, {transform_indices = @transform_3, window_bounds = array<i64: 1, 3, 16, 128>}, {pipeline_mode = #tpu.pipeline_mode<synchronous>, transform_indices = @transform_4, window_bounds = array<i64: 8, 8>}, {pipeline_mode = #tpu.pipeline_mode<synchronous>, transform_indices = @transform_5, window_bounds = array<i64: 8, 8>}, {pipeline_mode = #tpu.pipeline_mode<synchronous>, transform_indices = @transform_6, window_bounds = array<i64: 16, 8>}, {transform_indices = @transform_7, window_bounds = array<i64: 8, 128>}, {transform_indices = @transform_8, window_bounds = array<i64: 8, 17>}, {transform_indices = @transform_9, window_bounds = array<i64: 8>}, {transform_indices = @transform_10, window_bounds = array<i64: 8>}, {transform_indices = @transform_11, window_bounds = array<i64: 8, 8>}, {transform_indices = @transform_12, window_bounds = array<i64: 8>}, {transform_indices = @transform_13, window_bounds = array<i64: 8>}, {transform_indices = @transform_14, window_bounds = array<i64: 3, 8>}, {transform_indices = @transform_15, window_bounds = array<i64: 3>}, {transform_indices = @transform_16, window_bounds = array<i64: 1, 3, 16, 128>}]} {
    %c0_i32 = arith.constant 0 : i32
    %0 = arith.cmpi eq, %arg1, %c0_i32 : i32
    %1 = arith.extui %0 : i1 to i32
    %c0_i32_0 = arith.constant 0 : i32
    %2 = arith.cmpi ne, %1, %c0_i32_0 : i32
    scf.if %2 {
      %c0_26 = arith.constant 0 : index
      %c0_27 = arith.constant 0 : index
      %33 = vector.load %arg6[%c0_26, %c0_27] : memref<8x8xf32, #tpu.memory_space<vmem>>, vector<8x8xf32>
      %c0_28 = arith.constant 0 : index
      %c0_29 = arith.constant 0 : index
      %34 = vector.load %arg7[%c0_28, %c0_29] : memref<8x8xf32, #tpu.memory_space<vmem>>, vector<8x8xf32>
      %c0_30 = arith.constant 0 : index
      %c0_31 = arith.constant 0 : index
      %35 = vector.load %arg8[%c0_30, %c0_31] : memref<16x8xf32, #tpu.memory_space<vmem>>, vector<16x8xf32>
      %c0_32 = arith.constant 0 : index
      %c0_33 = arith.constant 0 : index
      %c0_34 = arith.constant 0 : index
      %c0_35 = arith.constant 0 : index
      %36 = vector.load %arg2[%c0_32, %c0_33, %c0_34, %c0_35] : memref<1x3x8x8xf32, #tpu.memory_space<vmem>>, vector<1x3x8x8xf32>
      %37 = vector.shape_cast %36 : vector<1x3x8x8xf32> to vector<3x8x8xf32>
      %c0_36 = arith.constant 0 : index
      %c0_37 = arith.constant 0 : index
      %c0_38 = arith.constant 0 : index
      %c0_39 = arith.constant 0 : index
      %38 = vector.load %arg3[%c0_36, %c0_37, %c0_38, %c0_39] : memref<1x3x8x8xf32, #tpu.memory_space<vmem>>, vector<1x3x8x8xf32>
      %39 = vector.shape_cast %38 : vector<1x3x8x8xf32> to vector<3x8x8xf32>
      %c0_40 = arith.constant 0 : index
      %c0_41 = arith.constant 0 : index
      %c0_42 = arith.constant 0 : index
      %c0_43 = arith.constant 0 : index
      %40 = vector.load %arg4[%c0_40, %c0_41, %c0_42, %c0_43] : memref<1x8x8x8xf32, #tpu.memory_space<vmem>>, vector<1x8x8x8xf32>
      %41 = vector.shape_cast %40 : vector<1x8x8x8xf32> to vector<8x8x8xf32>
      %42 = vector.extract_strided_slice %37 {offsets = [0, 0, 0], sizes = [1, 8, 8], strides = [1, 1, 1]} : vector<3x8x8xf32> to vector<1x8x8xf32>
      %43 = vector.shape_cast %42 : vector<1x8x8xf32> to vector<8x8xf32>
      %44 = vector.extract_strided_slice %39 {offsets = [0, 0, 0], sizes = [1, 8, 8], strides = [1, 1, 1]} : vector<3x8x8xf32> to vector<1x8x8xf32>
      %45 = vector.shape_cast %44 : vector<1x8x8xf32> to vector<8x8xf32>
      %46 = arith.mulf %43, %45 : vector<8x8xf32>
      %47 = arith.mulf %43, %43 : vector<8x8xf32>
      %48 = vector.extract_strided_slice %37 {offsets = [1, 0, 0], sizes = [1, 8, 8], strides = [1, 1, 1]} : vector<3x8x8xf32> to vector<1x8x8xf32>
      %49 = vector.shape_cast %48 : vector<1x8x8xf32> to vector<8x8xf32>
      %50 = vector.extract_strided_slice %39 {offsets = [1, 0, 0], sizes = [1, 8, 8], strides = [1, 1, 1]} : vector<3x8x8xf32> to vector<1x8x8xf32>
      %51 = vector.shape_cast %50 : vector<1x8x8xf32> to vector<8x8xf32>
      %52 = arith.mulf %49, %51 : vector<8x8xf32>
      %53 = arith.mulf %49, %49 : vector<8x8xf32>
      %54 = vector.extract_strided_slice %37 {offsets = [2, 0, 0], sizes = [1, 8, 8], strides = [1, 1, 1]} : vector<3x8x8xf32> to vector<1x8x8xf32>
      %55 = vector.shape_cast %54 : vector<1x8x8xf32> to vector<8x8xf32>
      %56 = vector.extract_strided_slice %39 {offsets = [2, 0, 0], sizes = [1, 8, 8], strides = [1, 1, 1]} : vector<3x8x8xf32> to vector<1x8x8xf32>
      %57 = vector.shape_cast %56 : vector<1x8x8xf32> to vector<8x8xf32>
      %58 = arith.mulf %55, %57 : vector<8x8xf32>
      %59 = arith.mulf %55, %55 : vector<8x8xf32>
      %60 = tpu.concatenate %43, %45, %46, %47, %49, %51, %52, %53, %55, %57, %58, %59 in 0 : vector<8x8xf32>, vector<8x8xf32>, vector<8x8xf32>, vector<8x8xf32>, vector<8x8xf32>, vector<8x8xf32>, vector<8x8xf32>, vector<8x8xf32>, vector<8x8xf32>, vector<8x8xf32>, vector<8x8xf32>, vector<8x8xf32> -> vector<96x8xf32>
      %cst_44 = arith.constant dense<0.000000e+00> : vector<96x8xf32>
      %61 = tpu.matmul %60, %34, %cst_44 {dimension_numbers = #tpu.dot_dimension_numbers<[1], [0], [0], [1], [0, 0, 1, 1], [], []>} : vector<96x8xf32>, vector<8x8xf32>, vector<96x8xf32> -> vector<96x8xf32>
      %62 = vector.extract_strided_slice %61 {offsets = [0, 0], sizes = [8, 8], strides = [1, 1]} : vector<96x8xf32> to vector<8x8xf32>
      %cst_45 = arith.constant dense<0.000000e+00> : vector<8x8xf32>
      %63 = tpu.matmul %33, %62, %cst_45 {dimension_numbers = #tpu.dot_dimension_numbers<[1], [0], [0], [1], [0, 0, 1, 1], [], []>} : vector<8x8xf32>, vector<8x8xf32>, vector<8x8xf32> -> vector<8x8xf32>
      %64 = vector.extract_strided_slice %61 {offsets = [8, 0], sizes = [8, 8], strides = [1, 1]} : vector<96x8xf32> to vector<8x8xf32>
      %cst_46 = arith.constant dense<0.000000e+00> : vector<8x8xf32>
      %65 = tpu.matmul %33, %64, %cst_46 {dimension_numbers = #tpu.dot_dimension_numbers<[1], [0], [0], [1], [0, 0, 1, 1], [], []>} : vector<8x8xf32>, vector<8x8xf32>, vector<8x8xf32> -> vector<8x8xf32>
      %66 = vector.extract_strided_slice %61 {offsets = [16, 0], sizes = [8, 8], strides = [1, 1]} : vector<96x8xf32> to vector<8x8xf32>
      %cst_47 = arith.constant dense<0.000000e+00> : vector<8x8xf32>
      %67 = tpu.matmul %33, %66, %cst_47 {dimension_numbers = #tpu.dot_dimension_numbers<[1], [0], [0], [1], [0, 0, 1, 1], [], []>} : vector<8x8xf32>, vector<8x8xf32>, vector<8x8xf32> -> vector<8x8xf32>
      %68 = vector.extract_strided_slice %61 {offsets = [24, 0], sizes = [8, 8], strides = [1, 1]} : vector<96x8xf32> to vector<8x8xf32>
      %cst_48 = arith.constant dense<0.000000e+00> : vector<8x8xf32>
      %69 = tpu.matmul %33, %68, %cst_48 {dimension_numbers = #tpu.dot_dimension_numbers<[1], [0], [0], [1], [0, 0, 1, 1], [], []>} : vector<8x8xf32>, vector<8x8xf32>, vector<8x8xf32> -> vector<8x8xf32>
      %70 = arith.mulf %63, %65 : vector<8x8xf32>
      %71 = arith.subf %67, %70 : vector<8x8xf32>
      %72 = arith.mulf %63, %63 : vector<8x8xf32>
      %73 = arith.subf %69, %72 : vector<8x8xf32>
      %cst_49 = arith.constant 9.99999974E-6 : f32
      %74 = vector.broadcast %cst_49 : f32 to vector<8x8xf32>
      %75 = arith.addf %73, %74 : vector<8x8xf32>
      %76 = tpu.reciprocal %75 {approx = true} : vector<8x8xf32> -> vector<8x8xf32>
      %77 = vector.extract_strided_slice %61 {offsets = [32, 0], sizes = [8, 8], strides = [1, 1]} : vector<96x8xf32> to vector<8x8xf32>
      %cst_50 = arith.constant dense<0.000000e+00> : vector<8x8xf32>
      %78 = tpu.matmul %33, %77, %cst_50 {dimension_numbers = #tpu.dot_dimension_numbers<[1], [0], [0], [1], [0, 0, 1, 1], [], []>} : vector<8x8xf32>, vector<8x8xf32>, vector<8x8xf32> -> vector<8x8xf32>
      %79 = vector.extract_strided_slice %61 {offsets = [40, 0], sizes = [8, 8], strides = [1, 1]} : vector<96x8xf32> to vector<8x8xf32>
      %cst_51 = arith.constant dense<0.000000e+00> : vector<8x8xf32>
      %80 = tpu.matmul %33, %79, %cst_51 {dimension_numbers = #tpu.dot_dimension_numbers<[1], [0], [0], [1], [0, 0, 1, 1], [], []>} : vector<8x8xf32>, vector<8x8xf32>, vector<8x8xf32> -> vector<8x8xf32>
      %81 = vector.extract_strided_slice %61 {offsets = [48, 0], sizes = [8, 8], strides = [1, 1]} : vector<96x8xf32> to vector<8x8xf32>
      %cst_52 = arith.constant dense<0.000000e+00> : vector<8x8xf32>
      %82 = tpu.matmul %33, %81, %cst_52 {dimension_numbers = #tpu.dot_dimension_numbers<[1], [0], [0], [1], [0, 0, 1, 1], [], []>} : vector<8x8xf32>, vector<8x8xf32>, vector<8x8xf32> -> vector<8x8xf32>
      %83 = vector.extract_strided_slice %61 {offsets = [56, 0], sizes = [8, 8], strides = [1, 1]} : vector<96x8xf32> to vector<8x8xf32>
      %cst_53 = arith.constant dense<0.000000e+00> : vector<8x8xf32>
      %84 = tpu.matmul %33, %83, %cst_53 {dimension_numbers = #tpu.dot_dimension_numbers<[1], [0], [0], [1], [0, 0, 1, 1], [], []>} : vector<8x8xf32>, vector<8x8xf32>, vector<8x8xf32> -> vector<8x8xf32>
      %85 = arith.mulf %78, %80 : vector<8x8xf32>
      %86 = arith.subf %82, %85 : vector<8x8xf32>
      %87 = arith.mulf %78, %78 : vector<8x8xf32>
      %88 = arith.subf %84, %87 : vector<8x8xf32>
      %cst_54 = arith.constant 9.99999974E-6 : f32
      %89 = vector.broadcast %cst_54 : f32 to vector<8x8xf32>
      %90 = arith.addf %88, %89 : vector<8x8xf32>
      %91 = tpu.reciprocal %90 {approx = true} : vector<8x8xf32> -> vector<8x8xf32>
      %92 = vector.extract_strided_slice %61 {offsets = [64, 0], sizes = [8, 8], strides = [1, 1]} : vector<96x8xf32> to vector<8x8xf32>
      %cst_55 = arith.constant dense<0.000000e+00> : vector<8x8xf32>
      %93 = tpu.matmul %33, %92, %cst_55 {dimension_numbers = #tpu.dot_dimension_numbers<[1], [0], [0], [1], [0, 0, 1, 1], [], []>} : vector<8x8xf32>, vector<8x8xf32>, vector<8x8xf32> -> vector<8x8xf32>
      %94 = vector.extract_strided_slice %61 {offsets = [72, 0], sizes = [8, 8], strides = [1, 1]} : vector<96x8xf32> to vector<8x8xf32>
      %cst_56 = arith.constant dense<0.000000e+00> : vector<8x8xf32>
      %95 = tpu.matmul %33, %94, %cst_56 {dimension_numbers = #tpu.dot_dimension_numbers<[1], [0], [0], [1], [0, 0, 1, 1], [], []>} : vector<8x8xf32>, vector<8x8xf32>, vector<8x8xf32> -> vector<8x8xf32>
      %96 = vector.extract_strided_slice %61 {offsets = [80, 0], sizes = [8, 8], strides = [1, 1]} : vector<96x8xf32> to vector<8x8xf32>
      %cst_57 = arith.constant dense<0.000000e+00> : vector<8x8xf32>
      %97 = tpu.matmul %33, %96, %cst_57 {dimension_numbers = #tpu.dot_dimension_numbers<[1], [0], [0], [1], [0, 0, 1, 1], [], []>} : vector<8x8xf32>, vector<8x8xf32>, vector<8x8xf32> -> vector<8x8xf32>
      %98 = vector.extract_strided_slice %61 {offsets = [88, 0], sizes = [8, 8], strides = [1, 1]} : vector<96x8xf32> to vector<8x8xf32>
      %cst_58 = arith.constant dense<0.000000e+00> : vector<8x8xf32>
      %99 = tpu.matmul %33, %98, %cst_58 {dimension_numbers = #tpu.dot_dimension_numbers<[1], [0], [0], [1], [0, 0, 1, 1], [], []>} : vector<8x8xf32>, vector<8x8xf32>, vector<8x8xf32> -> vector<8x8xf32>
      %100 = arith.mulf %93, %95 : vector<8x8xf32>
      %101 = arith.subf %97, %100 : vector<8x8xf32>
      %102 = arith.mulf %93, %93 : vector<8x8xf32>
      %103 = arith.subf %99, %102 : vector<8x8xf32>
      %cst_59 = arith.constant 9.99999974E-6 : f32
      %104 = vector.broadcast %cst_59 : f32 to vector<8x8xf32>
      %105 = arith.addf %103, %104 : vector<8x8xf32>
      %106 = tpu.reciprocal %105 {approx = true} : vector<8x8xf32> -> vector<8x8xf32>
      %107 = arith.mulf %71, %76 : vector<8x8xf32>
      %108 = arith.mulf %86, %91 : vector<8x8xf32>
      %109 = arith.mulf %101, %106 : vector<8x8xf32>
      %110 = vector.extract_strided_slice %41 {offsets = [0, 0, 0], sizes = [1, 8, 8], strides = [1, 1, 1]} : vector<8x8x8xf32> to vector<1x8x8xf32>
      %111 = vector.shape_cast %110 : vector<1x8x8xf32> to vector<8x8xf32>
      %112 = vector.extract_strided_slice %41 {offsets = [1, 0, 0], sizes = [1, 8, 8], strides = [1, 1, 1]} : vector<8x8x8xf32> to vector<1x8x8xf32>
      %113 = vector.shape_cast %112 : vector<1x8x8xf32> to vector<8x8xf32>
      %114 = vector.extract_strided_slice %41 {offsets = [2, 0, 0], sizes = [1, 8, 8], strides = [1, 1, 1]} : vector<8x8x8xf32> to vector<1x8x8xf32>
      %115 = vector.shape_cast %114 : vector<1x8x8xf32> to vector<8x8xf32>
      %116 = vector.extract_strided_slice %41 {offsets = [3, 0, 0], sizes = [1, 8, 8], strides = [1, 1, 1]} : vector<8x8x8xf32> to vector<1x8x8xf32>
      %117 = vector.shape_cast %116 : vector<1x8x8xf32> to vector<8x8xf32>
      %118 = vector.extract_strided_slice %41 {offsets = [4, 0, 0], sizes = [1, 8, 8], strides = [1, 1, 1]} : vector<8x8x8xf32> to vector<1x8x8xf32>
      %119 = vector.shape_cast %118 : vector<1x8x8xf32> to vector<8x8xf32>
      %120 = vector.extract_strided_slice %41 {offsets = [5, 0, 0], sizes = [1, 8, 8], strides = [1, 1, 1]} : vector<8x8x8xf32> to vector<1x8x8xf32>
      %121 = vector.shape_cast %120 : vector<1x8x8xf32> to vector<8x8xf32>
      %122 = vector.extract_strided_slice %41 {offsets = [6, 0, 0], sizes = [1, 8, 8], strides = [1, 1, 1]} : vector<8x8x8xf32> to vector<1x8x8xf32>
      %123 = vector.shape_cast %122 : vector<1x8x8xf32> to vector<8x8xf32>
      %124 = vector.extract_strided_slice %41 {offsets = [7, 0, 0], sizes = [1, 8, 8], strides = [1, 1, 1]} : vector<8x8x8xf32> to vector<1x8x8xf32>
      %125 = vector.shape_cast %124 : vector<1x8x8xf32> to vector<8x8xf32>
      %c0_60 = arith.constant 0 : index
      %c0_61 = arith.constant 0 : index
      %126 = memref.load %arg10[%c0_60, %c0_61] : memref<8x17xf32, #tpu.memory_space<smem>>
      %127 = vector.broadcast %126 : f32 to vector<8x8xf32>
      %128 = arith.mulf %127, %107 : vector<8x8xf32>
      %c0_62 = arith.constant 0 : index
      %c1_63 = arith.constant 1 : index
      %129 = memref.load %arg10[%c0_62, %c1_63] : memref<8x17xf32, #tpu.memory_space<smem>>
      %130 = vector.broadcast %129 : f32 to vector<8x8xf32>
      %131 = arith.mulf %130, %108 : vector<8x8xf32>
      %132 = arith.addf %128, %131 : vector<8x8xf32>
      %c0_64 = arith.constant 0 : index
      %c2_65 = arith.constant 2 : index
      %133 = memref.load %arg10[%c0_64, %c2_65] : memref<8x17xf32, #tpu.memory_space<smem>>
      %134 = vector.broadcast %133 : f32 to vector<8x8xf32>
      %135 = arith.mulf %134, %109 : vector<8x8xf32>
      %136 = arith.addf %132, %135 : vector<8x8xf32>
      %c0_66 = arith.constant 0 : index
      %c3 = arith.constant 3 : index
      %137 = memref.load %arg10[%c0_66, %c3] : memref<8x17xf32, #tpu.memory_space<smem>>
      %138 = vector.broadcast %137 : f32 to vector<8x8xf32>
      %139 = arith.mulf %138, %71 : vector<8x8xf32>
      %140 = arith.addf %136, %139 : vector<8x8xf32>
      %c0_67 = arith.constant 0 : index
      %c4 = arith.constant 4 : index
      %141 = memref.load %arg10[%c0_67, %c4] : memref<8x17xf32, #tpu.memory_space<smem>>
      %142 = vector.broadcast %141 : f32 to vector<8x8xf32>
      %143 = arith.mulf %142, %86 : vector<8x8xf32>
      %144 = arith.addf %140, %143 : vector<8x8xf32>
      %c0_68 = arith.constant 0 : index
      %c5 = arith.constant 5 : index
      %145 = memref.load %arg10[%c0_68, %c5] : memref<8x17xf32, #tpu.memory_space<smem>>
      %146 = vector.broadcast %145 : f32 to vector<8x8xf32>
      %147 = arith.mulf %146, %101 : vector<8x8xf32>
      %148 = arith.addf %144, %147 : vector<8x8xf32>
      %c0_69 = arith.constant 0 : index
      %c6 = arith.constant 6 : index
      %149 = memref.load %arg10[%c0_69, %c6] : memref<8x17xf32, #tpu.memory_space<smem>>
      %150 = vector.broadcast %149 : f32 to vector<8x8xf32>
      %151 = arith.mulf %150, %76 : vector<8x8xf32>
      %152 = arith.addf %148, %151 : vector<8x8xf32>
      %c0_70 = arith.constant 0 : index
      %c7 = arith.constant 7 : index
      %153 = memref.load %arg10[%c0_70, %c7] : memref<8x17xf32, #tpu.memory_space<smem>>
      %154 = vector.broadcast %153 : f32 to vector<8x8xf32>
      %155 = arith.mulf %154, %91 : vector<8x8xf32>
      %156 = arith.addf %152, %155 : vector<8x8xf32>
      %c0_71 = arith.constant 0 : index
      %c8 = arith.constant 8 : index
      %157 = memref.load %arg10[%c0_71, %c8] : memref<8x17xf32, #tpu.memory_space<smem>>
      %158 = vector.broadcast %157 : f32 to vector<8x8xf32>
      %159 = arith.mulf %158, %106 : vector<8x8xf32>
      %160 = arith.addf %156, %159 : vector<8x8xf32>
      %c0_72 = arith.constant 0 : index
      %c9 = arith.constant 9 : index
      %161 = memref.load %arg10[%c0_72, %c9] : memref<8x17xf32, #tpu.memory_space<smem>>
      %162 = vector.broadcast %161 : f32 to vector<8x8xf32>
      %163 = arith.mulf %162, %111 : vector<8x8xf32>
      %164 = arith.addf %160, %163 : vector<8x8xf32>
      %c0_73 = arith.constant 0 : index
      %c10 = arith.constant 10 : index
      %165 = memref.load %arg10[%c0_73, %c10] : memref<8x17xf32, #tpu.memory_space<smem>>
      %166 = vector.broadcast %165 : f32 to vector<8x8xf32>
      %167 = arith.mulf %166, %113 : vector<8x8xf32>
      %168 = arith.addf %164, %167 : vector<8x8xf32>
      %c0_74 = arith.constant 0 : index
      %c11 = arith.constant 11 : index
      %169 = memref.load %arg10[%c0_74, %c11] : memref<8x17xf32, #tpu.memory_space<smem>>
      %170 = vector.broadcast %169 : f32 to vector<8x8xf32>
      %171 = arith.mulf %170, %115 : vector<8x8xf32>
      %172 = arith.addf %168, %171 : vector<8x8xf32>
      %c0_75 = arith.constant 0 : index
      %c12 = arith.constant 12 : index
      %173 = memref.load %arg10[%c0_75, %c12] : memref<8x17xf32, #tpu.memory_space<smem>>
      %174 = vector.broadcast %173 : f32 to vector<8x8xf32>
      %175 = arith.mulf %174, %117 : vector<8x8xf32>
      %176 = arith.addf %172, %175 : vector<8x8xf32>
      %c0_76 = arith.constant 0 : index
      %c13 = arith.constant 13 : index
      %177 = memref.load %arg10[%c0_76, %c13] : memref<8x17xf32, #tpu.memory_space<smem>>
      %178 = vector.broadcast %177 : f32 to vector<8x8xf32>
      %179 = arith.mulf %178, %119 : vector<8x8xf32>
      %180 = arith.addf %176, %179 : vector<8x8xf32>
      %c0_77 = arith.constant 0 : index
      %c14 = arith.constant 14 : index
      %181 = memref.load %arg10[%c0_77, %c14] : memref<8x17xf32, #tpu.memory_space<smem>>
      %182 = vector.broadcast %181 : f32 to vector<8x8xf32>
      %183 = arith.mulf %182, %121 : vector<8x8xf32>
      %184 = arith.addf %180, %183 : vector<8x8xf32>
      %c0_78 = arith.constant 0 : index
      %c15 = arith.constant 15 : index
      %185 = memref.load %arg10[%c0_78, %c15] : memref<8x17xf32, #tpu.memory_space<smem>>
      %186 = vector.broadcast %185 : f32 to vector<8x8xf32>
      %187 = arith.mulf %186, %123 : vector<8x8xf32>
      %188 = arith.addf %184, %187 : vector<8x8xf32>
      %c0_79 = arith.constant 0 : index
      %c16 = arith.constant 16 : index
      %189 = memref.load %arg10[%c0_79, %c16] : memref<8x17xf32, #tpu.memory_space<smem>>
      %190 = vector.broadcast %189 : f32 to vector<8x8xf32>
      %191 = arith.mulf %190, %125 : vector<8x8xf32>
      %192 = arith.addf %188, %191 : vector<8x8xf32>
      %c1_80 = arith.constant 1 : index
      %c0_81 = arith.constant 0 : index
      %193 = memref.load %arg10[%c1_80, %c0_81] : memref<8x17xf32, #tpu.memory_space<smem>>
      %194 = vector.broadcast %193 : f32 to vector<8x8xf32>
      %195 = arith.mulf %194, %107 : vector<8x8xf32>
      %c1_82 = arith.constant 1 : index
      %c1_83 = arith.constant 1 : index
      %196 = memref.load %arg10[%c1_82, %c1_83] : memref<8x17xf32, #tpu.memory_space<smem>>
      %197 = vector.broadcast %196 : f32 to vector<8x8xf32>
      %198 = arith.mulf %197, %108 : vector<8x8xf32>
      %199 = arith.addf %195, %198 : vector<8x8xf32>
      %c1_84 = arith.constant 1 : index
      %c2_85 = arith.constant 2 : index
      %200 = memref.load %arg10[%c1_84, %c2_85] : memref<8x17xf32, #tpu.memory_space<smem>>
      %201 = vector.broadcast %200 : f32 to vector<8x8xf32>
      %202 = arith.mulf %201, %109 : vector<8x8xf32>
      %203 = arith.addf %199, %202 : vector<8x8xf32>
      %c1_86 = arith.constant 1 : index
      %c3_87 = arith.constant 3 : index
      %204 = memref.load %arg10[%c1_86, %c3_87] : memref<8x17xf32, #tpu.memory_space<smem>>
      %205 = vector.broadcast %204 : f32 to vector<8x8xf32>
      %206 = arith.mulf %205, %71 : vector<8x8xf32>
      %207 = arith.addf %203, %206 : vector<8x8xf32>
      %c1_88 = arith.constant 1 : index
      %c4_89 = arith.constant 4 : index
      %208 = memref.load %arg10[%c1_88, %c4_89] : memref<8x17xf32, #tpu.memory_space<smem>>
      %209 = vector.broadcast %208 : f32 to vector<8x8xf32>
      %210 = arith.mulf %209, %86 : vector<8x8xf32>
      %211 = arith.addf %207, %210 : vector<8x8xf32>
      %c1_90 = arith.constant 1 : index
      %c5_91 = arith.constant 5 : index
      %212 = memref.load %arg10[%c1_90, %c5_91] : memref<8x17xf32, #tpu.memory_space<smem>>
      %213 = vector.broadcast %212 : f32 to vector<8x8xf32>
      %214 = arith.mulf %213, %101 : vector<8x8xf32>
      %215 = arith.addf %211, %214 : vector<8x8xf32>
      %c1_92 = arith.constant 1 : index
      %c6_93 = arith.constant 6 : index
      %216 = memref.load %arg10[%c1_92, %c6_93] : memref<8x17xf32, #tpu.memory_space<smem>>
      %217 = vector.broadcast %216 : f32 to vector<8x8xf32>
      %218 = arith.mulf %217, %76 : vector<8x8xf32>
      %219 = arith.addf %215, %218 : vector<8x8xf32>
      %c1_94 = arith.constant 1 : index
      %c7_95 = arith.constant 7 : index
      %220 = memref.load %arg10[%c1_94, %c7_95] : memref<8x17xf32, #tpu.memory_space<smem>>
      %221 = vector.broadcast %220 : f32 to vector<8x8xf32>
      %222 = arith.mulf %221, %91 : vector<8x8xf32>
      %223 = arith.addf %219, %222 : vector<8x8xf32>
      %c1_96 = arith.constant 1 : index
      %c8_97 = arith.constant 8 : index
      %224 = memref.load %arg10[%c1_96, %c8_97] : memref<8x17xf32, #tpu.memory_space<smem>>
      %225 = vector.broadcast %224 : f32 to vector<8x8xf32>
      %226 = arith.mulf %225, %106 : vector<8x8xf32>
      %227 = arith.addf %223, %226 : vector<8x8xf32>
      %c1_98 = arith.constant 1 : index
      %c9_99 = arith.constant 9 : index
      %228 = memref.load %arg10[%c1_98, %c9_99] : memref<8x17xf32, #tpu.memory_space<smem>>
      %229 = vector.broadcast %228 : f32 to vector<8x8xf32>
      %230 = arith.mulf %229, %111 : vector<8x8xf32>
      %231 = arith.addf %227, %230 : vector<8x8xf32>
      %c1_100 = arith.constant 1 : index
      %c10_101 = arith.constant 10 : index
      %232 = memref.load %arg10[%c1_100, %c10_101] : memref<8x17xf32, #tpu.memory_space<smem>>
      %233 = vector.broadcast %232 : f32 to vector<8x8xf32>
      %234 = arith.mulf %233, %113 : vector<8x8xf32>
      %235 = arith.addf %231, %234 : vector<8x8xf32>
      %c1_102 = arith.constant 1 : index
      %c11_103 = arith.constant 11 : index
      %236 = memref.load %arg10[%c1_102, %c11_103] : memref<8x17xf32, #tpu.memory_space<smem>>
      %237 = vector.broadcast %236 : f32 to vector<8x8xf32>
      %238 = arith.mulf %237, %115 : vector<8x8xf32>
      %239 = arith.addf %235, %238 : vector<8x8xf32>
      %c1_104 = arith.constant 1 : index
      %c12_105 = arith.constant 12 : index
      %240 = memref.load %arg10[%c1_104, %c12_105] : memref<8x17xf32, #tpu.memory_space<smem>>
      %241 = vector.broadcast %240 : f32 to vector<8x8xf32>
      %242 = arith.mulf %241, %117 : vector<8x8xf32>
      %243 = arith.addf %239, %242 : vector<8x8xf32>
      %c1_106 = arith.constant 1 : index
      %c13_107 = arith.constant 13 : index
      %244 = memref.load %arg10[%c1_106, %c13_107] : memref<8x17xf32, #tpu.memory_space<smem>>
      %245 = vector.broadcast %244 : f32 to vector<8x8xf32>
      %246 = arith.mulf %245, %119 : vector<8x8xf32>
      %247 = arith.addf %243, %246 : vector<8x8xf32>
      %c1_108 = arith.constant 1 : index
      %c14_109 = arith.constant 14 : index
      %248 = memref.load %arg10[%c1_108, %c14_109] : memref<8x17xf32, #tpu.memory_space<smem>>
      %249 = vector.broadcast %248 : f32 to vector<8x8xf32>
      %250 = arith.mulf %249, %121 : vector<8x8xf32>
      %251 = arith.addf %247, %250 : vector<8x8xf32>
      %c1_110 = arith.constant 1 : index
      %c15_111 = arith.constant 15 : index
      %252 = memref.load %arg10[%c1_110, %c15_111] : memref<8x17xf32, #tpu.memory_space<smem>>
      %253 = vector.broadcast %252 : f32 to vector<8x8xf32>
      %254 = arith.mulf %253, %123 : vector<8x8xf32>
      %255 = arith.addf %251, %254 : vector<8x8xf32>
      %c1_112 = arith.constant 1 : index
      %c16_113 = arith.constant 16 : index
      %256 = memref.load %arg10[%c1_112, %c16_113] : memref<8x17xf32, #tpu.memory_space<smem>>
      %257 = vector.broadcast %256 : f32 to vector<8x8xf32>
      %258 = arith.mulf %257, %125 : vector<8x8xf32>
      %259 = arith.addf %255, %258 : vector<8x8xf32>
      %c2_114 = arith.constant 2 : index
      %c0_115 = arith.constant 0 : index
      %260 = memref.load %arg10[%c2_114, %c0_115] : memref<8x17xf32, #tpu.memory_space<smem>>
      %261 = vector.broadcast %260 : f32 to vector<8x8xf32>
      %262 = arith.mulf %261, %107 : vector<8x8xf32>
      %c2_116 = arith.constant 2 : index
      %c1_117 = arith.constant 1 : index
      %263 = memref.load %arg10[%c2_116, %c1_117] : memref<8x17xf32, #tpu.memory_space<smem>>
      %264 = vector.broadcast %263 : f32 to vector<8x8xf32>
      %265 = arith.mulf %264, %108 : vector<8x8xf32>
      %266 = arith.addf %262, %265 : vector<8x8xf32>
      %c2_118 = arith.constant 2 : index
      %c2_119 = arith.constant 2 : index
      %267 = memref.load %arg10[%c2_118, %c2_119] : memref<8x17xf32, #tpu.memory_space<smem>>
      %268 = vector.broadcast %267 : f32 to vector<8x8xf32>
      %269 = arith.mulf %268, %109 : vector<8x8xf32>
      %270 = arith.addf %266, %269 : vector<8x8xf32>
      %c2_120 = arith.constant 2 : index
      %c3_121 = arith.constant 3 : index
      %271 = memref.load %arg10[%c2_120, %c3_121] : memref<8x17xf32, #tpu.memory_space<smem>>
      %272 = vector.broadcast %271 : f32 to vector<8x8xf32>
      %273 = arith.mulf %272, %71 : vector<8x8xf32>
      %274 = arith.addf %270, %273 : vector<8x8xf32>
      %c2_122 = arith.constant 2 : index
      %c4_123 = arith.constant 4 : index
      %275 = memref.load %arg10[%c2_122, %c4_123] : memref<8x17xf32, #tpu.memory_space<smem>>
      %276 = vector.broadcast %275 : f32 to vector<8x8xf32>
      %277 = arith.mulf %276, %86 : vector<8x8xf32>
      %278 = arith.addf %274, %277 : vector<8x8xf32>
      %c2_124 = arith.constant 2 : index
      %c5_125 = arith.constant 5 : index
      %279 = memref.load %arg10[%c2_124, %c5_125] : memref<8x17xf32, #tpu.memory_space<smem>>
      %280 = vector.broadcast %279 : f32 to vector<8x8xf32>
      %281 = arith.mulf %280, %101 : vector<8x8xf32>
      %282 = arith.addf %278, %281 : vector<8x8xf32>
      %c2_126 = arith.constant 2 : index
      %c6_127 = arith.constant 6 : index
      %283 = memref.load %arg10[%c2_126, %c6_127] : memref<8x17xf32, #tpu.memory_space<smem>>
      %284 = vector.broadcast %283 : f32 to vector<8x8xf32>
      %285 = arith.mulf %284, %76 : vector<8x8xf32>
      %286 = arith.addf %282, %285 : vector<8x8xf32>
      %c2_128 = arith.constant 2 : index
      %c7_129 = arith.constant 7 : index
      %287 = memref.load %arg10[%c2_128, %c7_129] : memref<8x17xf32, #tpu.memory_space<smem>>
      %288 = vector.broadcast %287 : f32 to vector<8x8xf32>
      %289 = arith.mulf %288, %91 : vector<8x8xf32>
      %290 = arith.addf %286, %289 : vector<8x8xf32>
      %c2_130 = arith.constant 2 : index
      %c8_131 = arith.constant 8 : index
      %291 = memref.load %arg10[%c2_130, %c8_131] : memref<8x17xf32, #tpu.memory_space<smem>>
      %292 = vector.broadcast %291 : f32 to vector<8x8xf32>
      %293 = arith.mulf %292, %106 : vector<8x8xf32>
      %294 = arith.addf %290, %293 : vector<8x8xf32>
      %c2_132 = arith.constant 2 : index
      %c9_133 = arith.constant 9 : index
      %295 = memref.load %arg10[%c2_132, %c9_133] : memref<8x17xf32, #tpu.memory_space<smem>>
      %296 = vector.broadcast %295 : f32 to vector<8x8xf32>
      %297 = arith.mulf %296, %111 : vector<8x8xf32>
      %298 = arith.addf %294, %297 : vector<8x8xf32>
      %c2_134 = arith.constant 2 : index
      %c10_135 = arith.constant 10 : index
      %299 = memref.load %arg10[%c2_134, %c10_135] : memref<8x17xf32, #tpu.memory_space<smem>>
      %300 = vector.broadcast %299 : f32 to vector<8x8xf32>
      %301 = arith.mulf %300, %113 : vector<8x8xf32>
      %302 = arith.addf %298, %301 : vector<8x8xf32>
      %c2_136 = arith.constant 2 : index
      %c11_137 = arith.constant 11 : index
      %303 = memref.load %arg10[%c2_136, %c11_137] : memref<8x17xf32, #tpu.memory_space<smem>>
      %304 = vector.broadcast %303 : f32 to vector<8x8xf32>
      %305 = arith.mulf %304, %115 : vector<8x8xf32>
      %306 = arith.addf %302, %305 : vector<8x8xf32>
      %c2_138 = arith.constant 2 : index
      %c12_139 = arith.constant 12 : index
      %307 = memref.load %arg10[%c2_138, %c12_139] : memref<8x17xf32, #tpu.memory_space<smem>>
      %308 = vector.broadcast %307 : f32 to vector<8x8xf32>
      %309 = arith.mulf %308, %117 : vector<8x8xf32>
      %310 = arith.addf %306, %309 : vector<8x8xf32>
      %c2_140 = arith.constant 2 : index
      %c13_141 = arith.constant 13 : index
      %311 = memref.load %arg10[%c2_140, %c13_141] : memref<8x17xf32, #tpu.memory_space<smem>>
      %312 = vector.broadcast %311 : f32 to vector<8x8xf32>
      %313 = arith.mulf %312, %119 : vector<8x8xf32>
      %314 = arith.addf %310, %313 : vector<8x8xf32>
      %c2_142 = arith.constant 2 : index
      %c14_143 = arith.constant 14 : index
      %315 = memref.load %arg10[%c2_142, %c14_143] : memref<8x17xf32, #tpu.memory_space<smem>>
      %316 = vector.broadcast %315 : f32 to vector<8x8xf32>
      %317 = arith.mulf %316, %121 : vector<8x8xf32>
      %318 = arith.addf %314, %317 : vector<8x8xf32>
      %c2_144 = arith.constant 2 : index
      %c15_145 = arith.constant 15 : index
      %319 = memref.load %arg10[%c2_144, %c15_145] : memref<8x17xf32, #tpu.memory_space<smem>>
      %320 = vector.broadcast %319 : f32 to vector<8x8xf32>
      %321 = arith.mulf %320, %123 : vector<8x8xf32>
      %322 = arith.addf %318, %321 : vector<8x8xf32>
      %c2_146 = arith.constant 2 : index
      %c16_147 = arith.constant 16 : index
      %323 = memref.load %arg10[%c2_146, %c16_147] : memref<8x17xf32, #tpu.memory_space<smem>>
      %324 = vector.broadcast %323 : f32 to vector<8x8xf32>
      %325 = arith.mulf %324, %125 : vector<8x8xf32>
      %326 = arith.addf %322, %325 : vector<8x8xf32>
      %c3_148 = arith.constant 3 : index
      %c0_149 = arith.constant 0 : index
      %327 = memref.load %arg10[%c3_148, %c0_149] : memref<8x17xf32, #tpu.memory_space<smem>>
      %328 = vector.broadcast %327 : f32 to vector<8x8xf32>
      %329 = arith.mulf %328, %107 : vector<8x8xf32>
      %c3_150 = arith.constant 3 : index
      %c1_151 = arith.constant 1 : index
      %330 = memref.load %arg10[%c3_150, %c1_151] : memref<8x17xf32, #tpu.memory_space<smem>>
      %331 = vector.broadcast %330 : f32 to vector<8x8xf32>
      %332 = arith.mulf %331, %108 : vector<8x8xf32>
      %333 = arith.addf %329, %332 : vector<8x8xf32>
      %c3_152 = arith.constant 3 : index
      %c2_153 = arith.constant 2 : index
      %334 = memref.load %arg10[%c3_152, %c2_153] : memref<8x17xf32, #tpu.memory_space<smem>>
      %335 = vector.broadcast %334 : f32 to vector<8x8xf32>
      %336 = arith.mulf %335, %109 : vector<8x8xf32>
      %337 = arith.addf %333, %336 : vector<8x8xf32>
      %c3_154 = arith.constant 3 : index
      %c3_155 = arith.constant 3 : index
      %338 = memref.load %arg10[%c3_154, %c3_155] : memref<8x17xf32, #tpu.memory_space<smem>>
      %339 = vector.broadcast %338 : f32 to vector<8x8xf32>
      %340 = arith.mulf %339, %71 : vector<8x8xf32>
      %341 = arith.addf %337, %340 : vector<8x8xf32>
      %c3_156 = arith.constant 3 : index
      %c4_157 = arith.constant 4 : index
      %342 = memref.load %arg10[%c3_156, %c4_157] : memref<8x17xf32, #tpu.memory_space<smem>>
      %343 = vector.broadcast %342 : f32 to vector<8x8xf32>
      %344 = arith.mulf %343, %86 : vector<8x8xf32>
      %345 = arith.addf %341, %344 : vector<8x8xf32>
      %c3_158 = arith.constant 3 : index
      %c5_159 = arith.constant 5 : index
      %346 = memref.load %arg10[%c3_158, %c5_159] : memref<8x17xf32, #tpu.memory_space<smem>>
      %347 = vector.broadcast %346 : f32 to vector<8x8xf32>
      %348 = arith.mulf %347, %101 : vector<8x8xf32>
      %349 = arith.addf %345, %348 : vector<8x8xf32>
      %c3_160 = arith.constant 3 : index
      %c6_161 = arith.constant 6 : index
      %350 = memref.load %arg10[%c3_160, %c6_161] : memref<8x17xf32, #tpu.memory_space<smem>>
      %351 = vector.broadcast %350 : f32 to vector<8x8xf32>
      %352 = arith.mulf %351, %76 : vector<8x8xf32>
      %353 = arith.addf %349, %352 : vector<8x8xf32>
      %c3_162 = arith.constant 3 : index
      %c7_163 = arith.constant 7 : index
      %354 = memref.load %arg10[%c3_162, %c7_163] : memref<8x17xf32, #tpu.memory_space<smem>>
      %355 = vector.broadcast %354 : f32 to vector<8x8xf32>
      %356 = arith.mulf %355, %91 : vector<8x8xf32>
      %357 = arith.addf %353, %356 : vector<8x8xf32>
      %c3_164 = arith.constant 3 : index
      %c8_165 = arith.constant 8 : index
      %358 = memref.load %arg10[%c3_164, %c8_165] : memref<8x17xf32, #tpu.memory_space<smem>>
      %359 = vector.broadcast %358 : f32 to vector<8x8xf32>
      %360 = arith.mulf %359, %106 : vector<8x8xf32>
      %361 = arith.addf %357, %360 : vector<8x8xf32>
      %c3_166 = arith.constant 3 : index
      %c9_167 = arith.constant 9 : index
      %362 = memref.load %arg10[%c3_166, %c9_167] : memref<8x17xf32, #tpu.memory_space<smem>>
      %363 = vector.broadcast %362 : f32 to vector<8x8xf32>
      %364 = arith.mulf %363, %111 : vector<8x8xf32>
      %365 = arith.addf %361, %364 : vector<8x8xf32>
      %c3_168 = arith.constant 3 : index
      %c10_169 = arith.constant 10 : index
      %366 = memref.load %arg10[%c3_168, %c10_169] : memref<8x17xf32, #tpu.memory_space<smem>>
      %367 = vector.broadcast %366 : f32 to vector<8x8xf32>
      %368 = arith.mulf %367, %113 : vector<8x8xf32>
      %369 = arith.addf %365, %368 : vector<8x8xf32>
      %c3_170 = arith.constant 3 : index
      %c11_171 = arith.constant 11 : index
      %370 = memref.load %arg10[%c3_170, %c11_171] : memref<8x17xf32, #tpu.memory_space<smem>>
      %371 = vector.broadcast %370 : f32 to vector<8x8xf32>
      %372 = arith.mulf %371, %115 : vector<8x8xf32>
      %373 = arith.addf %369, %372 : vector<8x8xf32>
      %c3_172 = arith.constant 3 : index
      %c12_173 = arith.constant 12 : index
      %374 = memref.load %arg10[%c3_172, %c12_173] : memref<8x17xf32, #tpu.memory_space<smem>>
      %375 = vector.broadcast %374 : f32 to vector<8x8xf32>
      %376 = arith.mulf %375, %117 : vector<8x8xf32>
      %377 = arith.addf %373, %376 : vector<8x8xf32>
      %c3_174 = arith.constant 3 : index
      %c13_175 = arith.constant 13 : index
      %378 = memref.load %arg10[%c3_174, %c13_175] : memref<8x17xf32, #tpu.memory_space<smem>>
      %379 = vector.broadcast %378 : f32 to vector<8x8xf32>
      %380 = arith.mulf %379, %119 : vector<8x8xf32>
      %381 = arith.addf %377, %380 : vector<8x8xf32>
      %c3_176 = arith.constant 3 : index
      %c14_177 = arith.constant 14 : index
      %382 = memref.load %arg10[%c3_176, %c14_177] : memref<8x17xf32, #tpu.memory_space<smem>>
      %383 = vector.broadcast %382 : f32 to vector<8x8xf32>
      %384 = arith.mulf %383, %121 : vector<8x8xf32>
      %385 = arith.addf %381, %384 : vector<8x8xf32>
      %c3_178 = arith.constant 3 : index
      %c15_179 = arith.constant 15 : index
      %386 = memref.load %arg10[%c3_178, %c15_179] : memref<8x17xf32, #tpu.memory_space<smem>>
      %387 = vector.broadcast %386 : f32 to vector<8x8xf32>
      %388 = arith.mulf %387, %123 : vector<8x8xf32>
      %389 = arith.addf %385, %388 : vector<8x8xf32>
      %c3_180 = arith.constant 3 : index
      %c16_181 = arith.constant 16 : index
      %390 = memref.load %arg10[%c3_180, %c16_181] : memref<8x17xf32, #tpu.memory_space<smem>>
      %391 = vector.broadcast %390 : f32 to vector<8x8xf32>
      %392 = arith.mulf %391, %125 : vector<8x8xf32>
      %393 = arith.addf %389, %392 : vector<8x8xf32>
      %c4_182 = arith.constant 4 : index
      %c0_183 = arith.constant 0 : index
      %394 = memref.load %arg10[%c4_182, %c0_183] : memref<8x17xf32, #tpu.memory_space<smem>>
      %395 = vector.broadcast %394 : f32 to vector<8x8xf32>
      %396 = arith.mulf %395, %107 : vector<8x8xf32>
      %c4_184 = arith.constant 4 : index
      %c1_185 = arith.constant 1 : index
      %397 = memref.load %arg10[%c4_184, %c1_185] : memref<8x17xf32, #tpu.memory_space<smem>>
      %398 = vector.broadcast %397 : f32 to vector<8x8xf32>
      %399 = arith.mulf %398, %108 : vector<8x8xf32>
      %400 = arith.addf %396, %399 : vector<8x8xf32>
      %c4_186 = arith.constant 4 : index
      %c2_187 = arith.constant 2 : index
      %401 = memref.load %arg10[%c4_186, %c2_187] : memref<8x17xf32, #tpu.memory_space<smem>>
      %402 = vector.broadcast %401 : f32 to vector<8x8xf32>
      %403 = arith.mulf %402, %109 : vector<8x8xf32>
      %404 = arith.addf %400, %403 : vector<8x8xf32>
      %c4_188 = arith.constant 4 : index
      %c3_189 = arith.constant 3 : index
      %405 = memref.load %arg10[%c4_188, %c3_189] : memref<8x17xf32, #tpu.memory_space<smem>>
      %406 = vector.broadcast %405 : f32 to vector<8x8xf32>
      %407 = arith.mulf %406, %71 : vector<8x8xf32>
      %408 = arith.addf %404, %407 : vector<8x8xf32>
      %c4_190 = arith.constant 4 : index
      %c4_191 = arith.constant 4 : index
      %409 = memref.load %arg10[%c4_190, %c4_191] : memref<8x17xf32, #tpu.memory_space<smem>>
      %410 = vector.broadcast %409 : f32 to vector<8x8xf32>
      %411 = arith.mulf %410, %86 : vector<8x8xf32>
      %412 = arith.addf %408, %411 : vector<8x8xf32>
      %c4_192 = arith.constant 4 : index
      %c5_193 = arith.constant 5 : index
      %413 = memref.load %arg10[%c4_192, %c5_193] : memref<8x17xf32, #tpu.memory_space<smem>>
      %414 = vector.broadcast %413 : f32 to vector<8x8xf32>
      %415 = arith.mulf %414, %101 : vector<8x8xf32>
      %416 = arith.addf %412, %415 : vector<8x8xf32>
      %c4_194 = arith.constant 4 : index
      %c6_195 = arith.constant 6 : index
      %417 = memref.load %arg10[%c4_194, %c6_195] : memref<8x17xf32, #tpu.memory_space<smem>>
      %418 = vector.broadcast %417 : f32 to vector<8x8xf32>
      %419 = arith.mulf %418, %76 : vector<8x8xf32>
      %420 = arith.addf %416, %419 : vector<8x8xf32>
      %c4_196 = arith.constant 4 : index
      %c7_197 = arith.constant 7 : index
      %421 = memref.load %arg10[%c4_196, %c7_197] : memref<8x17xf32, #tpu.memory_space<smem>>
      %422 = vector.broadcast %421 : f32 to vector<8x8xf32>
      %423 = arith.mulf %422, %91 : vector<8x8xf32>
      %424 = arith.addf %420, %423 : vector<8x8xf32>
      %c4_198 = arith.constant 4 : index
      %c8_199 = arith.constant 8 : index
      %425 = memref.load %arg10[%c4_198, %c8_199] : memref<8x17xf32, #tpu.memory_space<smem>>
      %426 = vector.broadcast %425 : f32 to vector<8x8xf32>
      %427 = arith.mulf %426, %106 : vector<8x8xf32>
      %428 = arith.addf %424, %427 : vector<8x8xf32>
      %c4_200 = arith.constant 4 : index
      %c9_201 = arith.constant 9 : index
      %429 = memref.load %arg10[%c4_200, %c9_201] : memref<8x17xf32, #tpu.memory_space<smem>>
      %430 = vector.broadcast %429 : f32 to vector<8x8xf32>
      %431 = arith.mulf %430, %111 : vector<8x8xf32>
      %432 = arith.addf %428, %431 : vector<8x8xf32>
      %c4_202 = arith.constant 4 : index
      %c10_203 = arith.constant 10 : index
      %433 = memref.load %arg10[%c4_202, %c10_203] : memref<8x17xf32, #tpu.memory_space<smem>>
      %434 = vector.broadcast %433 : f32 to vector<8x8xf32>
      %435 = arith.mulf %434, %113 : vector<8x8xf32>
      %436 = arith.addf %432, %435 : vector<8x8xf32>
      %c4_204 = arith.constant 4 : index
      %c11_205 = arith.constant 11 : index
      %437 = memref.load %arg10[%c4_204, %c11_205] : memref<8x17xf32, #tpu.memory_space<smem>>
      %438 = vector.broadcast %437 : f32 to vector<8x8xf32>
      %439 = arith.mulf %438, %115 : vector<8x8xf32>
      %440 = arith.addf %436, %439 : vector<8x8xf32>
      %c4_206 = arith.constant 4 : index
      %c12_207 = arith.constant 12 : index
      %441 = memref.load %arg10[%c4_206, %c12_207] : memref<8x17xf32, #tpu.memory_space<smem>>
      %442 = vector.broadcast %441 : f32 to vector<8x8xf32>
      %443 = arith.mulf %442, %117 : vector<8x8xf32>
      %444 = arith.addf %440, %443 : vector<8x8xf32>
      %c4_208 = arith.constant 4 : index
      %c13_209 = arith.constant 13 : index
      %445 = memref.load %arg10[%c4_208, %c13_209] : memref<8x17xf32, #tpu.memory_space<smem>>
      %446 = vector.broadcast %445 : f32 to vector<8x8xf32>
      %447 = arith.mulf %446, %119 : vector<8x8xf32>
      %448 = arith.addf %444, %447 : vector<8x8xf32>
      %c4_210 = arith.constant 4 : index
      %c14_211 = arith.constant 14 : index
      %449 = memref.load %arg10[%c4_210, %c14_211] : memref<8x17xf32, #tpu.memory_space<smem>>
      %450 = vector.broadcast %449 : f32 to vector<8x8xf32>
      %451 = arith.mulf %450, %121 : vector<8x8xf32>
      %452 = arith.addf %448, %451 : vector<8x8xf32>
      %c4_212 = arith.constant 4 : index
      %c15_213 = arith.constant 15 : index
      %453 = memref.load %arg10[%c4_212, %c15_213] : memref<8x17xf32, #tpu.memory_space<smem>>
      %454 = vector.broadcast %453 : f32 to vector<8x8xf32>
      %455 = arith.mulf %454, %123 : vector<8x8xf32>
      %456 = arith.addf %452, %455 : vector<8x8xf32>
      %c4_214 = arith.constant 4 : index
      %c16_215 = arith.constant 16 : index
      %457 = memref.load %arg10[%c4_214, %c16_215] : memref<8x17xf32, #tpu.memory_space<smem>>
      %458 = vector.broadcast %457 : f32 to vector<8x8xf32>
      %459 = arith.mulf %458, %125 : vector<8x8xf32>
      %460 = arith.addf %456, %459 : vector<8x8xf32>
      %c5_216 = arith.constant 5 : index
      %c0_217 = arith.constant 0 : index
      %461 = memref.load %arg10[%c5_216, %c0_217] : memref<8x17xf32, #tpu.memory_space<smem>>
      %462 = vector.broadcast %461 : f32 to vector<8x8xf32>
      %463 = arith.mulf %462, %107 : vector<8x8xf32>
      %c5_218 = arith.constant 5 : index
      %c1_219 = arith.constant 1 : index
      %464 = memref.load %arg10[%c5_218, %c1_219] : memref<8x17xf32, #tpu.memory_space<smem>>
      %465 = vector.broadcast %464 : f32 to vector<8x8xf32>
      %466 = arith.mulf %465, %108 : vector<8x8xf32>
      %467 = arith.addf %463, %466 : vector<8x8xf32>
      %c5_220 = arith.constant 5 : index
      %c2_221 = arith.constant 2 : index
      %468 = memref.load %arg10[%c5_220, %c2_221] : memref<8x17xf32, #tpu.memory_space<smem>>
      %469 = vector.broadcast %468 : f32 to vector<8x8xf32>
      %470 = arith.mulf %469, %109 : vector<8x8xf32>
      %471 = arith.addf %467, %470 : vector<8x8xf32>
      %c5_222 = arith.constant 5 : index
      %c3_223 = arith.constant 3 : index
      %472 = memref.load %arg10[%c5_222, %c3_223] : memref<8x17xf32, #tpu.memory_space<smem>>
      %473 = vector.broadcast %472 : f32 to vector<8x8xf32>
      %474 = arith.mulf %473, %71 : vector<8x8xf32>
      %475 = arith.addf %471, %474 : vector<8x8xf32>
      %c5_224 = arith.constant 5 : index
      %c4_225 = arith.constant 4 : index
      %476 = memref.load %arg10[%c5_224, %c4_225] : memref<8x17xf32, #tpu.memory_space<smem>>
      %477 = vector.broadcast %476 : f32 to vector<8x8xf32>
      %478 = arith.mulf %477, %86 : vector<8x8xf32>
      %479 = arith.addf %475, %478 : vector<8x8xf32>
      %c5_226 = arith.constant 5 : index
      %c5_227 = arith.constant 5 : index
      %480 = memref.load %arg10[%c5_226, %c5_227] : memref<8x17xf32, #tpu.memory_space<smem>>
      %481 = vector.broadcast %480 : f32 to vector<8x8xf32>
      %482 = arith.mulf %481, %101 : vector<8x8xf32>
      %483 = arith.addf %479, %482 : vector<8x8xf32>
      %c5_228 = arith.constant 5 : index
      %c6_229 = arith.constant 6 : index
      %484 = memref.load %arg10[%c5_228, %c6_229] : memref<8x17xf32, #tpu.memory_space<smem>>
      %485 = vector.broadcast %484 : f32 to vector<8x8xf32>
      %486 = arith.mulf %485, %76 : vector<8x8xf32>
      %487 = arith.addf %483, %486 : vector<8x8xf32>
      %c5_230 = arith.constant 5 : index
      %c7_231 = arith.constant 7 : index
      %488 = memref.load %arg10[%c5_230, %c7_231] : memref<8x17xf32, #tpu.memory_space<smem>>
      %489 = vector.broadcast %488 : f32 to vector<8x8xf32>
      %490 = arith.mulf %489, %91 : vector<8x8xf32>
      %491 = arith.addf %487, %490 : vector<8x8xf32>
      %c5_232 = arith.constant 5 : index
      %c8_233 = arith.constant 8 : index
      %492 = memref.load %arg10[%c5_232, %c8_233] : memref<8x17xf32, #tpu.memory_space<smem>>
      %493 = vector.broadcast %492 : f32 to vector<8x8xf32>
      %494 = arith.mulf %493, %106 : vector<8x8xf32>
      %495 = arith.addf %491, %494 : vector<8x8xf32>
      %c5_234 = arith.constant 5 : index
      %c9_235 = arith.constant 9 : index
      %496 = memref.load %arg10[%c5_234, %c9_235] : memref<8x17xf32, #tpu.memory_space<smem>>
      %497 = vector.broadcast %496 : f32 to vector<8x8xf32>
      %498 = arith.mulf %497, %111 : vector<8x8xf32>
      %499 = arith.addf %495, %498 : vector<8x8xf32>
      %c5_236 = arith.constant 5 : index
      %c10_237 = arith.constant 10 : index
      %500 = memref.load %arg10[%c5_236, %c10_237] : memref<8x17xf32, #tpu.memory_space<smem>>
      %501 = vector.broadcast %500 : f32 to vector<8x8xf32>
      %502 = arith.mulf %501, %113 : vector<8x8xf32>
      %503 = arith.addf %499, %502 : vector<8x8xf32>
      %c5_238 = arith.constant 5 : index
      %c11_239 = arith.constant 11 : index
      %504 = memref.load %arg10[%c5_238, %c11_239] : memref<8x17xf32, #tpu.memory_space<smem>>
      %505 = vector.broadcast %504 : f32 to vector<8x8xf32>
      %506 = arith.mulf %505, %115 : vector<8x8xf32>
      %507 = arith.addf %503, %506 : vector<8x8xf32>
      %c5_240 = arith.constant 5 : index
      %c12_241 = arith.constant 12 : index
      %508 = memref.load %arg10[%c5_240, %c12_241] : memref<8x17xf32, #tpu.memory_space<smem>>
      %509 = vector.broadcast %508 : f32 to vector<8x8xf32>
      %510 = arith.mulf %509, %117 : vector<8x8xf32>
      %511 = arith.addf %507, %510 : vector<8x8xf32>
      %c5_242 = arith.constant 5 : index
      %c13_243 = arith.constant 13 : index
      %512 = memref.load %arg10[%c5_242, %c13_243] : memref<8x17xf32, #tpu.memory_space<smem>>
      %513 = vector.broadcast %512 : f32 to vector<8x8xf32>
      %514 = arith.mulf %513, %119 : vector<8x8xf32>
      %515 = arith.addf %511, %514 : vector<8x8xf32>
      %c5_244 = arith.constant 5 : index
      %c14_245 = arith.constant 14 : index
      %516 = memref.load %arg10[%c5_244, %c14_245] : memref<8x17xf32, #tpu.memory_space<smem>>
      %517 = vector.broadcast %516 : f32 to vector<8x8xf32>
      %518 = arith.mulf %517, %121 : vector<8x8xf32>
      %519 = arith.addf %515, %518 : vector<8x8xf32>
      %c5_246 = arith.constant 5 : index
      %c15_247 = arith.constant 15 : index
      %520 = memref.load %arg10[%c5_246, %c15_247] : memref<8x17xf32, #tpu.memory_space<smem>>
      %521 = vector.broadcast %520 : f32 to vector<8x8xf32>
      %522 = arith.mulf %521, %123 : vector<8x8xf32>
      %523 = arith.addf %519, %522 : vector<8x8xf32>
      %c5_248 = arith.constant 5 : index
      %c16_249 = arith.constant 16 : index
      %524 = memref.load %arg10[%c5_248, %c16_249] : memref<8x17xf32, #tpu.memory_space<smem>>
      %525 = vector.broadcast %524 : f32 to vector<8x8xf32>
      %526 = arith.mulf %525, %125 : vector<8x8xf32>
      %527 = arith.addf %523, %526 : vector<8x8xf32>
      %c6_250 = arith.constant 6 : index
      %c0_251 = arith.constant 0 : index
      %528 = memref.load %arg10[%c6_250, %c0_251] : memref<8x17xf32, #tpu.memory_space<smem>>
      %529 = vector.broadcast %528 : f32 to vector<8x8xf32>
      %530 = arith.mulf %529, %107 : vector<8x8xf32>
      %c6_252 = arith.constant 6 : index
      %c1_253 = arith.constant 1 : index
      %531 = memref.load %arg10[%c6_252, %c1_253] : memref<8x17xf32, #tpu.memory_space<smem>>
      %532 = vector.broadcast %531 : f32 to vector<8x8xf32>
      %533 = arith.mulf %532, %108 : vector<8x8xf32>
      %534 = arith.addf %530, %533 : vector<8x8xf32>
      %c6_254 = arith.constant 6 : index
      %c2_255 = arith.constant 2 : index
      %535 = memref.load %arg10[%c6_254, %c2_255] : memref<8x17xf32, #tpu.memory_space<smem>>
      %536 = vector.broadcast %535 : f32 to vector<8x8xf32>
      %537 = arith.mulf %536, %109 : vector<8x8xf32>
      %538 = arith.addf %534, %537 : vector<8x8xf32>
      %c6_256 = arith.constant 6 : index
      %c3_257 = arith.constant 3 : index
      %539 = memref.load %arg10[%c6_256, %c3_257] : memref<8x17xf32, #tpu.memory_space<smem>>
      %540 = vector.broadcast %539 : f32 to vector<8x8xf32>
      %541 = arith.mulf %540, %71 : vector<8x8xf32>
      %542 = arith.addf %538, %541 : vector<8x8xf32>
      %c6_258 = arith.constant 6 : index
      %c4_259 = arith.constant 4 : index
      %543 = memref.load %arg10[%c6_258, %c4_259] : memref<8x17xf32, #tpu.memory_space<smem>>
      %544 = vector.broadcast %543 : f32 to vector<8x8xf32>
      %545 = arith.mulf %544, %86 : vector<8x8xf32>
      %546 = arith.addf %542, %545 : vector<8x8xf32>
      %c6_260 = arith.constant 6 : index
      %c5_261 = arith.constant 5 : index
      %547 = memref.load %arg10[%c6_260, %c5_261] : memref<8x17xf32, #tpu.memory_space<smem>>
      %548 = vector.broadcast %547 : f32 to vector<8x8xf32>
      %549 = arith.mulf %548, %101 : vector<8x8xf32>
      %550 = arith.addf %546, %549 : vector<8x8xf32>
      %c6_262 = arith.constant 6 : index
      %c6_263 = arith.constant 6 : index
      %551 = memref.load %arg10[%c6_262, %c6_263] : memref<8x17xf32, #tpu.memory_space<smem>>
      %552 = vector.broadcast %551 : f32 to vector<8x8xf32>
      %553 = arith.mulf %552, %76 : vector<8x8xf32>
      %554 = arith.addf %550, %553 : vector<8x8xf32>
      %c6_264 = arith.constant 6 : index
      %c7_265 = arith.constant 7 : index
      %555 = memref.load %arg10[%c6_264, %c7_265] : memref<8x17xf32, #tpu.memory_space<smem>>
      %556 = vector.broadcast %555 : f32 to vector<8x8xf32>
      %557 = arith.mulf %556, %91 : vector<8x8xf32>
      %558 = arith.addf %554, %557 : vector<8x8xf32>
      %c6_266 = arith.constant 6 : index
      %c8_267 = arith.constant 8 : index
      %559 = memref.load %arg10[%c6_266, %c8_267] : memref<8x17xf32, #tpu.memory_space<smem>>
      %560 = vector.broadcast %559 : f32 to vector<8x8xf32>
      %561 = arith.mulf %560, %106 : vector<8x8xf32>
      %562 = arith.addf %558, %561 : vector<8x8xf32>
      %c6_268 = arith.constant 6 : index
      %c9_269 = arith.constant 9 : index
      %563 = memref.load %arg10[%c6_268, %c9_269] : memref<8x17xf32, #tpu.memory_space<smem>>
      %564 = vector.broadcast %563 : f32 to vector<8x8xf32>
      %565 = arith.mulf %564, %111 : vector<8x8xf32>
      %566 = arith.addf %562, %565 : vector<8x8xf32>
      %c6_270 = arith.constant 6 : index
      %c10_271 = arith.constant 10 : index
      %567 = memref.load %arg10[%c6_270, %c10_271] : memref<8x17xf32, #tpu.memory_space<smem>>
      %568 = vector.broadcast %567 : f32 to vector<8x8xf32>
      %569 = arith.mulf %568, %113 : vector<8x8xf32>
      %570 = arith.addf %566, %569 : vector<8x8xf32>
      %c6_272 = arith.constant 6 : index
      %c11_273 = arith.constant 11 : index
      %571 = memref.load %arg10[%c6_272, %c11_273] : memref<8x17xf32, #tpu.memory_space<smem>>
      %572 = vector.broadcast %571 : f32 to vector<8x8xf32>
      %573 = arith.mulf %572, %115 : vector<8x8xf32>
      %574 = arith.addf %570, %573 : vector<8x8xf32>
      %c6_274 = arith.constant 6 : index
      %c12_275 = arith.constant 12 : index
      %575 = memref.load %arg10[%c6_274, %c12_275] : memref<8x17xf32, #tpu.memory_space<smem>>
      %576 = vector.broadcast %575 : f32 to vector<8x8xf32>
      %577 = arith.mulf %576, %117 : vector<8x8xf32>
      %578 = arith.addf %574, %577 : vector<8x8xf32>
      %c6_276 = arith.constant 6 : index
      %c13_277 = arith.constant 13 : index
      %579 = memref.load %arg10[%c6_276, %c13_277] : memref<8x17xf32, #tpu.memory_space<smem>>
      %580 = vector.broadcast %579 : f32 to vector<8x8xf32>
      %581 = arith.mulf %580, %119 : vector<8x8xf32>
      %582 = arith.addf %578, %581 : vector<8x8xf32>
      %c6_278 = arith.constant 6 : index
      %c14_279 = arith.constant 14 : index
      %583 = memref.load %arg10[%c6_278, %c14_279] : memref<8x17xf32, #tpu.memory_space<smem>>
      %584 = vector.broadcast %583 : f32 to vector<8x8xf32>
      %585 = arith.mulf %584, %121 : vector<8x8xf32>
      %586 = arith.addf %582, %585 : vector<8x8xf32>
      %c6_280 = arith.constant 6 : index
      %c15_281 = arith.constant 15 : index
      %587 = memref.load %arg10[%c6_280, %c15_281] : memref<8x17xf32, #tpu.memory_space<smem>>
      %588 = vector.broadcast %587 : f32 to vector<8x8xf32>
      %589 = arith.mulf %588, %123 : vector<8x8xf32>
      %590 = arith.addf %586, %589 : vector<8x8xf32>
      %c6_282 = arith.constant 6 : index
      %c16_283 = arith.constant 16 : index
      %591 = memref.load %arg10[%c6_282, %c16_283] : memref<8x17xf32, #tpu.memory_space<smem>>
      %592 = vector.broadcast %591 : f32 to vector<8x8xf32>
      %593 = arith.mulf %592, %125 : vector<8x8xf32>
      %594 = arith.addf %590, %593 : vector<8x8xf32>
      %c7_284 = arith.constant 7 : index
      %c0_285 = arith.constant 0 : index
      %595 = memref.load %arg10[%c7_284, %c0_285] : memref<8x17xf32, #tpu.memory_space<smem>>
      %596 = vector.broadcast %595 : f32 to vector<8x8xf32>
      %597 = arith.mulf %596, %107 : vector<8x8xf32>
      %c7_286 = arith.constant 7 : index
      %c1_287 = arith.constant 1 : index
      %598 = memref.load %arg10[%c7_286, %c1_287] : memref<8x17xf32, #tpu.memory_space<smem>>
      %599 = vector.broadcast %598 : f32 to vector<8x8xf32>
      %600 = arith.mulf %599, %108 : vector<8x8xf32>
      %601 = arith.addf %597, %600 : vector<8x8xf32>
      %c7_288 = arith.constant 7 : index
      %c2_289 = arith.constant 2 : index
      %602 = memref.load %arg10[%c7_288, %c2_289] : memref<8x17xf32, #tpu.memory_space<smem>>
      %603 = vector.broadcast %602 : f32 to vector<8x8xf32>
      %604 = arith.mulf %603, %109 : vector<8x8xf32>
      %605 = arith.addf %601, %604 : vector<8x8xf32>
      %c7_290 = arith.constant 7 : index
      %c3_291 = arith.constant 3 : index
      %606 = memref.load %arg10[%c7_290, %c3_291] : memref<8x17xf32, #tpu.memory_space<smem>>
      %607 = vector.broadcast %606 : f32 to vector<8x8xf32>
      %608 = arith.mulf %607, %71 : vector<8x8xf32>
      %609 = arith.addf %605, %608 : vector<8x8xf32>
      %c7_292 = arith.constant 7 : index
      %c4_293 = arith.constant 4 : index
      %610 = memref.load %arg10[%c7_292, %c4_293] : memref<8x17xf32, #tpu.memory_space<smem>>
      %611 = vector.broadcast %610 : f32 to vector<8x8xf32>
      %612 = arith.mulf %611, %86 : vector<8x8xf32>
      %613 = arith.addf %609, %612 : vector<8x8xf32>
      %c7_294 = arith.constant 7 : index
      %c5_295 = arith.constant 5 : index
      %614 = memref.load %arg10[%c7_294, %c5_295] : memref<8x17xf32, #tpu.memory_space<smem>>
      %615 = vector.broadcast %614 : f32 to vector<8x8xf32>
      %616 = arith.mulf %615, %101 : vector<8x8xf32>
      %617 = arith.addf %613, %616 : vector<8x8xf32>
      %c7_296 = arith.constant 7 : index
      %c6_297 = arith.constant 6 : index
      %618 = memref.load %arg10[%c7_296, %c6_297] : memref<8x17xf32, #tpu.memory_space<smem>>
      %619 = vector.broadcast %618 : f32 to vector<8x8xf32>
      %620 = arith.mulf %619, %76 : vector<8x8xf32>
      %621 = arith.addf %617, %620 : vector<8x8xf32>
      %c7_298 = arith.constant 7 : index
      %c7_299 = arith.constant 7 : index
      %622 = memref.load %arg10[%c7_298, %c7_299] : memref<8x17xf32, #tpu.memory_space<smem>>
      %623 = vector.broadcast %622 : f32 to vector<8x8xf32>
      %624 = arith.mulf %623, %91 : vector<8x8xf32>
      %625 = arith.addf %621, %624 : vector<8x8xf32>
      %c7_300 = arith.constant 7 : index
      %c8_301 = arith.constant 8 : index
      %626 = memref.load %arg10[%c7_300, %c8_301] : memref<8x17xf32, #tpu.memory_space<smem>>
      %627 = vector.broadcast %626 : f32 to vector<8x8xf32>
      %628 = arith.mulf %627, %106 : vector<8x8xf32>
      %629 = arith.addf %625, %628 : vector<8x8xf32>
      %c7_302 = arith.constant 7 : index
      %c9_303 = arith.constant 9 : index
      %630 = memref.load %arg10[%c7_302, %c9_303] : memref<8x17xf32, #tpu.memory_space<smem>>
      %631 = vector.broadcast %630 : f32 to vector<8x8xf32>
      %632 = arith.mulf %631, %111 : vector<8x8xf32>
      %633 = arith.addf %629, %632 : vector<8x8xf32>
      %c7_304 = arith.constant 7 : index
      %c10_305 = arith.constant 10 : index
      %634 = memref.load %arg10[%c7_304, %c10_305] : memref<8x17xf32, #tpu.memory_space<smem>>
      %635 = vector.broadcast %634 : f32 to vector<8x8xf32>
      %636 = arith.mulf %635, %113 : vector<8x8xf32>
      %637 = arith.addf %633, %636 : vector<8x8xf32>
      %c7_306 = arith.constant 7 : index
      %c11_307 = arith.constant 11 : index
      %638 = memref.load %arg10[%c7_306, %c11_307] : memref<8x17xf32, #tpu.memory_space<smem>>
      %639 = vector.broadcast %638 : f32 to vector<8x8xf32>
      %640 = arith.mulf %639, %115 : vector<8x8xf32>
      %641 = arith.addf %637, %640 : vector<8x8xf32>
      %c7_308 = arith.constant 7 : index
      %c12_309 = arith.constant 12 : index
      %642 = memref.load %arg10[%c7_308, %c12_309] : memref<8x17xf32, #tpu.memory_space<smem>>
      %643 = vector.broadcast %642 : f32 to vector<8x8xf32>
      %644 = arith.mulf %643, %117 : vector<8x8xf32>
      %645 = arith.addf %641, %644 : vector<8x8xf32>
      %c7_310 = arith.constant 7 : index
      %c13_311 = arith.constant 13 : index
      %646 = memref.load %arg10[%c7_310, %c13_311] : memref<8x17xf32, #tpu.memory_space<smem>>
      %647 = vector.broadcast %646 : f32 to vector<8x8xf32>
      %648 = arith.mulf %647, %119 : vector<8x8xf32>
      %649 = arith.addf %645, %648 : vector<8x8xf32>
      %c7_312 = arith.constant 7 : index
      %c14_313 = arith.constant 14 : index
      %650 = memref.load %arg10[%c7_312, %c14_313] : memref<8x17xf32, #tpu.memory_space<smem>>
      %651 = vector.broadcast %650 : f32 to vector<8x8xf32>
      %652 = arith.mulf %651, %121 : vector<8x8xf32>
      %653 = arith.addf %649, %652 : vector<8x8xf32>
      %c7_314 = arith.constant 7 : index
      %c15_315 = arith.constant 15 : index
      %654 = memref.load %arg10[%c7_314, %c15_315] : memref<8x17xf32, #tpu.memory_space<smem>>
      %655 = vector.broadcast %654 : f32 to vector<8x8xf32>
      %656 = arith.mulf %655, %123 : vector<8x8xf32>
      %657 = arith.addf %653, %656 : vector<8x8xf32>
      %c7_316 = arith.constant 7 : index
      %c16_317 = arith.constant 16 : index
      %658 = memref.load %arg10[%c7_316, %c16_317] : memref<8x17xf32, #tpu.memory_space<smem>>
      %659 = vector.broadcast %658 : f32 to vector<8x8xf32>
      %660 = arith.mulf %659, %125 : vector<8x8xf32>
      %661 = arith.addf %657, %660 : vector<8x8xf32>
      %662 = vector.shape_cast %192 : vector<8x8xf32> to vector<1x8x8xf32>
      %cst_318 = arith.constant dense<0.000000e+00> : vector<1xf32>
      %663 = vector.multi_reduction <add>, %662, %cst_318 [1, 2] : vector<1x8x8xf32> to vector<1xf32>
      %664 = vector.shape_cast %663 : vector<1xf32> to vector<1x1x1xf32>
      %665 = vector.extract %664[0, 0, 0] : f32 from vector<1x1x1xf32>
      %666 = arith.mulf %192, %192 : vector<8x8xf32>
      %667 = vector.shape_cast %666 : vector<8x8xf32> to vector<1x8x8xf32>
      %cst_319 = arith.constant dense<0.000000e+00> : vector<1xf32>
      %668 = vector.multi_reduction <add>, %667, %cst_319 [1, 2] : vector<1x8x8xf32> to vector<1xf32>
      %669 = vector.shape_cast %668 : vector<1xf32> to vector<1x1x1xf32>
      %670 = vector.extract %669[0, 0, 0] : f32 from vector<1x1x1xf32>
      %671 = vector.shape_cast %259 : vector<8x8xf32> to vector<1x8x8xf32>
      %cst_320 = arith.constant dense<0.000000e+00> : vector<1xf32>
      %672 = vector.multi_reduction <add>, %671, %cst_320 [1, 2] : vector<1x8x8xf32> to vector<1xf32>
      %673 = vector.shape_cast %672 : vector<1xf32> to vector<1x1x1xf32>
      %674 = vector.extract %673[0, 0, 0] : f32 from vector<1x1x1xf32>
      %675 = arith.addf %665, %674 : f32
      %676 = arith.mulf %259, %259 : vector<8x8xf32>
      %677 = vector.shape_cast %676 : vector<8x8xf32> to vector<1x8x8xf32>
      %cst_321 = arith.constant dense<0.000000e+00> : vector<1xf32>
      %678 = vector.multi_reduction <add>, %677, %cst_321 [1, 2] : vector<1x8x8xf32> to vector<1xf32>
      %679 = vector.shape_cast %678 : vector<1xf32> to vector<1x1x1xf32>
      %680 = vector.extract %679[0, 0, 0] : f32 from vector<1x1x1xf32>
      %681 = arith.addf %670, %680 : f32
      %682 = vector.shape_cast %326 : vector<8x8xf32> to vector<1x8x8xf32>
      %cst_322 = arith.constant dense<0.000000e+00> : vector<1xf32>
      %683 = vector.multi_reduction <add>, %682, %cst_322 [1, 2] : vector<1x8x8xf32> to vector<1xf32>
      %684 = vector.shape_cast %683 : vector<1xf32> to vector<1x1x1xf32>
      %685 = vector.extract %684[0, 0, 0] : f32 from vector<1x1x1xf32>
      %686 = arith.addf %675, %685 : f32
      %687 = arith.mulf %326, %326 : vector<8x8xf32>
      %688 = vector.shape_cast %687 : vector<8x8xf32> to vector<1x8x8xf32>
      %cst_323 = arith.constant dense<0.000000e+00> : vector<1xf32>
      %689 = vector.multi_reduction <add>, %688, %cst_323 [1, 2] : vector<1x8x8xf32> to vector<1xf32>
      %690 = vector.shape_cast %689 : vector<1xf32> to vector<1x1x1xf32>
      %691 = vector.extract %690[0, 0, 0] : f32 from vector<1x1x1xf32>
      %692 = arith.addf %681, %691 : f32
      %693 = vector.shape_cast %393 : vector<8x8xf32> to vector<1x8x8xf32>
      %cst_324 = arith.constant dense<0.000000e+00> : vector<1xf32>
      %694 = vector.multi_reduction <add>, %693, %cst_324 [1, 2] : vector<1x8x8xf32> to vector<1xf32>
      %695 = vector.shape_cast %694 : vector<1xf32> to vector<1x1x1xf32>
      %696 = vector.extract %695[0, 0, 0] : f32 from vector<1x1x1xf32>
      %697 = arith.addf %686, %696 : f32
      %698 = arith.mulf %393, %393 : vector<8x8xf32>
      %699 = vector.shape_cast %698 : vector<8x8xf32> to vector<1x8x8xf32>
      %cst_325 = arith.constant dense<0.000000e+00> : vector<1xf32>
      %700 = vector.multi_reduction <add>, %699, %cst_325 [1, 2] : vector<1x8x8xf32> to vector<1xf32>
      %701 = vector.shape_cast %700 : vector<1xf32> to vector<1x1x1xf32>
      %702 = vector.extract %701[0, 0, 0] : f32 from vector<1x1x1xf32>
      %703 = arith.addf %692, %702 : f32
      %704 = vector.shape_cast %460 : vector<8x8xf32> to vector<1x8x8xf32>
      %cst_326 = arith.constant dense<0.000000e+00> : vector<1xf32>
      %705 = vector.multi_reduction <add>, %704, %cst_326 [1, 2] : vector<1x8x8xf32> to vector<1xf32>
      %706 = vector.shape_cast %705 : vector<1xf32> to vector<1x1x1xf32>
      %707 = vector.extract %706[0, 0, 0] : f32 from vector<1x1x1xf32>
      %708 = arith.addf %697, %707 : f32
      %709 = arith.mulf %460, %460 : vector<8x8xf32>
      %710 = vector.shape_cast %709 : vector<8x8xf32> to vector<1x8x8xf32>
      %cst_327 = arith.constant dense<0.000000e+00> : vector<1xf32>
      %711 = vector.multi_reduction <add>, %710, %cst_327 [1, 2] : vector<1x8x8xf32> to vector<1xf32>
      %712 = vector.shape_cast %711 : vector<1xf32> to vector<1x1x1xf32>
      %713 = vector.extract %712[0, 0, 0] : f32 from vector<1x1x1xf32>
      %714 = arith.addf %703, %713 : f32
      %715 = vector.shape_cast %527 : vector<8x8xf32> to vector<1x8x8xf32>
      %cst_328 = arith.constant dense<0.000000e+00> : vector<1xf32>
      %716 = vector.multi_reduction <add>, %715, %cst_328 [1, 2] : vector<1x8x8xf32> to vector<1xf32>
      %717 = vector.shape_cast %716 : vector<1xf32> to vector<1x1x1xf32>
      %718 = vector.extract %717[0, 0, 0] : f32 from vector<1x1x1xf32>
      %719 = arith.addf %708, %718 : f32
      %720 = arith.mulf %527, %527 : vector<8x8xf32>
      %721 = vector.shape_cast %720 : vector<8x8xf32> to vector<1x8x8xf32>
      %cst_329 = arith.constant dense<0.000000e+00> : vector<1xf32>
      %722 = vector.multi_reduction <add>, %721, %cst_329 [1, 2] : vector<1x8x8xf32> to vector<1xf32>
      %723 = vector.shape_cast %722 : vector<1xf32> to vector<1x1x1xf32>
      %724 = vector.extract %723[0, 0, 0] : f32 from vector<1x1x1xf32>
      %725 = arith.addf %714, %724 : f32
      %726 = vector.shape_cast %594 : vector<8x8xf32> to vector<1x8x8xf32>
      %cst_330 = arith.constant dense<0.000000e+00> : vector<1xf32>
      %727 = vector.multi_reduction <add>, %726, %cst_330 [1, 2] : vector<1x8x8xf32> to vector<1xf32>
      %728 = vector.shape_cast %727 : vector<1xf32> to vector<1x1x1xf32>
      %729 = vector.extract %728[0, 0, 0] : f32 from vector<1x1x1xf32>
      %730 = arith.addf %719, %729 : f32
      %731 = arith.mulf %594, %594 : vector<8x8xf32>
      %732 = vector.shape_cast %731 : vector<8x8xf32> to vector<1x8x8xf32>
      %cst_331 = arith.constant dense<0.000000e+00> : vector<1xf32>
      %733 = vector.multi_reduction <add>, %732, %cst_331 [1, 2] : vector<1x8x8xf32> to vector<1xf32>
      %734 = vector.shape_cast %733 : vector<1xf32> to vector<1x1x1xf32>
      %735 = vector.extract %734[0, 0, 0] : f32 from vector<1x1x1xf32>
      %736 = arith.addf %725, %735 : f32
      %737 = vector.shape_cast %661 : vector<8x8xf32> to vector<1x8x8xf32>
      %cst_332 = arith.constant dense<0.000000e+00> : vector<1xf32>
      %738 = vector.multi_reduction <add>, %737, %cst_332 [1, 2] : vector<1x8x8xf32> to vector<1xf32>
      %739 = vector.shape_cast %738 : vector<1xf32> to vector<1x1x1xf32>
      %740 = vector.extract %739[0, 0, 0] : f32 from vector<1x1x1xf32>
      %741 = arith.addf %730, %740 : f32
      %742 = arith.mulf %661, %661 : vector<8x8xf32>
      %743 = vector.shape_cast %742 : vector<8x8xf32> to vector<1x8x8xf32>
      %cst_333 = arith.constant dense<0.000000e+00> : vector<1xf32>
      %744 = vector.multi_reduction <add>, %743, %cst_333 [1, 2] : vector<1x8x8xf32> to vector<1xf32>
      %745 = vector.shape_cast %744 : vector<1xf32> to vector<1x1x1xf32>
      %746 = vector.extract %745[0, 0, 0] : f32 from vector<1x1x1xf32>
      %747 = arith.addf %736, %746 : f32
      %cst_334 = arith.constant 0.001953125 : f32
      %748 = arith.mulf %741, %cst_334 : f32
      %cst_335 = arith.constant 0.001953125 : f32
      %749 = arith.mulf %747, %cst_335 : f32
      %750 = arith.mulf %748, %748 : f32
      %751 = arith.subf %749, %750 : f32
      %cst_336 = arith.constant 9.99999974E-6 : f32
      %752 = arith.addf %751, %cst_336 : f32
      %753 = math.rsqrt %752 : f32
      %754 = vector.broadcast %748 : f32 to vector<8x8xf32>
      %755 = arith.subf %192, %754 : vector<8x8xf32>
      %c0_337 = arith.constant 0 : index
      %756 = memref.load %arg11[%c0_337] : memref<8xf32, #tpu.memory_space<smem>>
      %757 = arith.mulf %753, %756 : f32
      %758 = vector.broadcast %757 : f32 to vector<8x8xf32>
      %759 = arith.mulf %755, %758 : vector<8x8xf32>
      %c0_338 = arith.constant 0 : index
      %760 = memref.load %arg12[%c0_338] : memref<8xf32, #tpu.memory_space<smem>>
      %761 = vector.broadcast %760 : f32 to vector<8x8xf32>
      %762 = arith.addf %759, %761 : vector<8x8xf32>
      %763 = arith.negf %762 : vector<8x8xf32>
      %764 = math.exp %763 : vector<8x8xf32>
      %cst_339 = arith.constant 1.000000e+00 : f32
      %765 = vector.broadcast %cst_339 : f32 to vector<8x8xf32>
      %766 = arith.addf %765, %764 : vector<8x8xf32>
      %767 = arith.divf %765, %766 : vector<8x8xf32>
      %768 = arith.mulf %762, %767 : vector<8x8xf32>
      %769 = vector.broadcast %748 : f32 to vector<8x8xf32>
      %770 = arith.subf %259, %769 : vector<8x8xf32>
      %c1_340 = arith.constant 1 : index
      %771 = memref.load %arg11[%c1_340] : memref<8xf32, #tpu.memory_space<smem>>
      %772 = arith.mulf %753, %771 : f32
      %773 = vector.broadcast %772 : f32 to vector<8x8xf32>
      %774 = arith.mulf %770, %773 : vector<8x8xf32>
      %c1_341 = arith.constant 1 : index
      %775 = memref.load %arg12[%c1_341] : memref<8xf32, #tpu.memory_space<smem>>
      %776 = vector.broadcast %775 : f32 to vector<8x8xf32>
      %777 = arith.addf %774, %776 : vector<8x8xf32>
      %778 = arith.negf %777 : vector<8x8xf32>
      %779 = math.exp %778 : vector<8x8xf32>
      %cst_342 = arith.constant 1.000000e+00 : f32
      %780 = vector.broadcast %cst_342 : f32 to vector<8x8xf32>
      %781 = arith.addf %780, %779 : vector<8x8xf32>
      %782 = arith.divf %780, %781 : vector<8x8xf32>
      %783 = arith.mulf %777, %782 : vector<8x8xf32>
      %784 = vector.broadcast %748 : f32 to vector<8x8xf32>
      %785 = arith.subf %326, %784 : vector<8x8xf32>
      %c2_343 = arith.constant 2 : index
      %786 = memref.load %arg11[%c2_343] : memref<8xf32, #tpu.memory_space<smem>>
      %787 = arith.mulf %753, %786 : f32
      %788 = vector.broadcast %787 : f32 to vector<8x8xf32>
      %789 = arith.mulf %785, %788 : vector<8x8xf32>
      %c2_344 = arith.constant 2 : index
      %790 = memref.load %arg12[%c2_344] : memref<8xf32, #tpu.memory_space<smem>>
      %791 = vector.broadcast %790 : f32 to vector<8x8xf32>
      %792 = arith.addf %789, %791 : vector<8x8xf32>
      %793 = arith.negf %792 : vector<8x8xf32>
      %794 = math.exp %793 : vector<8x8xf32>
      %cst_345 = arith.constant 1.000000e+00 : f32
      %795 = vector.broadcast %cst_345 : f32 to vector<8x8xf32>
      %796 = arith.addf %795, %794 : vector<8x8xf32>
      %797 = arith.divf %795, %796 : vector<8x8xf32>
      %798 = arith.mulf %792, %797 : vector<8x8xf32>
      %799 = vector.broadcast %748 : f32 to vector<8x8xf32>
      %800 = arith.subf %393, %799 : vector<8x8xf32>
      %c3_346 = arith.constant 3 : index
      %801 = memref.load %arg11[%c3_346] : memref<8xf32, #tpu.memory_space<smem>>
      %802 = arith.mulf %753, %801 : f32
      %803 = vector.broadcast %802 : f32 to vector<8x8xf32>
      %804 = arith.mulf %800, %803 : vector<8x8xf32>
      %c3_347 = arith.constant 3 : index
      %805 = memref.load %arg12[%c3_347] : memref<8xf32, #tpu.memory_space<smem>>
      %806 = vector.broadcast %805 : f32 to vector<8x8xf32>
      %807 = arith.addf %804, %806 : vector<8x8xf32>
      %808 = arith.negf %807 : vector<8x8xf32>
      %809 = math.exp %808 : vector<8x8xf32>
      %cst_348 = arith.constant 1.000000e+00 : f32
      %810 = vector.broadcast %cst_348 : f32 to vector<8x8xf32>
      %811 = arith.addf %810, %809 : vector<8x8xf32>
      %812 = arith.divf %810, %811 : vector<8x8xf32>
      %813 = arith.mulf %807, %812 : vector<8x8xf32>
      %814 = vector.broadcast %748 : f32 to vector<8x8xf32>
      %815 = arith.subf %460, %814 : vector<8x8xf32>
      %c4_349 = arith.constant 4 : index
      %816 = memref.load %arg11[%c4_349] : memref<8xf32, #tpu.memory_space<smem>>
      %817 = arith.mulf %753, %816 : f32
      %818 = vector.broadcast %817 : f32 to vector<8x8xf32>
      %819 = arith.mulf %815, %818 : vector<8x8xf32>
      %c4_350 = arith.constant 4 : index
      %820 = memref.load %arg12[%c4_350] : memref<8xf32, #tpu.memory_space<smem>>
      %821 = vector.broadcast %820 : f32 to vector<8x8xf32>
      %822 = arith.addf %819, %821 : vector<8x8xf32>
      %823 = arith.negf %822 : vector<8x8xf32>
      %824 = math.exp %823 : vector<8x8xf32>
      %cst_351 = arith.constant 1.000000e+00 : f32
      %825 = vector.broadcast %cst_351 : f32 to vector<8x8xf32>
      %826 = arith.addf %825, %824 : vector<8x8xf32>
      %827 = arith.divf %825, %826 : vector<8x8xf32>
      %828 = arith.mulf %822, %827 : vector<8x8xf32>
      %829 = vector.broadcast %748 : f32 to vector<8x8xf32>
      %830 = arith.subf %527, %829 : vector<8x8xf32>
      %c5_352 = arith.constant 5 : index
      %831 = memref.load %arg11[%c5_352] : memref<8xf32, #tpu.memory_space<smem>>
      %832 = arith.mulf %753, %831 : f32
      %833 = vector.broadcast %832 : f32 to vector<8x8xf32>
      %834 = arith.mulf %830, %833 : vector<8x8xf32>
      %c5_353 = arith.constant 5 : index
      %835 = memref.load %arg12[%c5_353] : memref<8xf32, #tpu.memory_space<smem>>
      %836 = vector.broadcast %835 : f32 to vector<8x8xf32>
      %837 = arith.addf %834, %836 : vector<8x8xf32>
      %838 = arith.negf %837 : vector<8x8xf32>
      %839 = math.exp %838 : vector<8x8xf32>
      %cst_354 = arith.constant 1.000000e+00 : f32
      %840 = vector.broadcast %cst_354 : f32 to vector<8x8xf32>
      %841 = arith.addf %840, %839 : vector<8x8xf32>
      %842 = arith.divf %840, %841 : vector<8x8xf32>
      %843 = arith.mulf %837, %842 : vector<8x8xf32>
      %844 = vector.broadcast %748 : f32 to vector<8x8xf32>
      %845 = arith.subf %594, %844 : vector<8x8xf32>
      %c6_355 = arith.constant 6 : index
      %846 = memref.load %arg11[%c6_355] : memref<8xf32, #tpu.memory_space<smem>>
      %847 = arith.mulf %753, %846 : f32
      %848 = vector.broadcast %847 : f32 to vector<8x8xf32>
      %849 = arith.mulf %845, %848 : vector<8x8xf32>
      %c6_356 = arith.constant 6 : index
      %850 = memref.load %arg12[%c6_356] : memref<8xf32, #tpu.memory_space<smem>>
      %851 = vector.broadcast %850 : f32 to vector<8x8xf32>
      %852 = arith.addf %849, %851 : vector<8x8xf32>
      %853 = arith.negf %852 : vector<8x8xf32>
      %854 = math.exp %853 : vector<8x8xf32>
      %cst_357 = arith.constant 1.000000e+00 : f32
      %855 = vector.broadcast %cst_357 : f32 to vector<8x8xf32>
      %856 = arith.addf %855, %854 : vector<8x8xf32>
      %857 = arith.divf %855, %856 : vector<8x8xf32>
      %858 = arith.mulf %852, %857 : vector<8x8xf32>
      %859 = vector.broadcast %748 : f32 to vector<8x8xf32>
      %860 = arith.subf %661, %859 : vector<8x8xf32>
      %c7_358 = arith.constant 7 : index
      %861 = memref.load %arg11[%c7_358] : memref<8xf32, #tpu.memory_space<smem>>
      %862 = arith.mulf %753, %861 : f32
      %863 = vector.broadcast %862 : f32 to vector<8x8xf32>
      %864 = arith.mulf %860, %863 : vector<8x8xf32>
      %c7_359 = arith.constant 7 : index
      %865 = memref.load %arg12[%c7_359] : memref<8xf32, #tpu.memory_space<smem>>
      %866 = vector.broadcast %865 : f32 to vector<8x8xf32>
      %867 = arith.addf %864, %866 : vector<8x8xf32>
      %868 = arith.negf %867 : vector<8x8xf32>
      %869 = math.exp %868 : vector<8x8xf32>
      %cst_360 = arith.constant 1.000000e+00 : f32
      %870 = vector.broadcast %cst_360 : f32 to vector<8x8xf32>
      %871 = arith.addf %870, %869 : vector<8x8xf32>
      %872 = arith.divf %870, %871 : vector<8x8xf32>
      %873 = arith.mulf %867, %872 : vector<8x8xf32>
      %c0_361 = arith.constant 0 : index
      %c0_362 = arith.constant 0 : index
      %874 = memref.load %arg13[%c0_361, %c0_362] : memref<8x8xf32, #tpu.memory_space<smem>>
      %875 = vector.broadcast %874 : f32 to vector<8x8xf32>
      %876 = arith.mulf %875, %768 : vector<8x8xf32>
      %c0_363 = arith.constant 0 : index
      %c1_364 = arith.constant 1 : index
      %877 = memref.load %arg13[%c0_363, %c1_364] : memref<8x8xf32, #tpu.memory_space<smem>>
      %878 = vector.broadcast %877 : f32 to vector<8x8xf32>
      %879 = arith.mulf %878, %783 : vector<8x8xf32>
      %880 = arith.addf %876, %879 : vector<8x8xf32>
      %c0_365 = arith.constant 0 : index
      %c2_366 = arith.constant 2 : index
      %881 = memref.load %arg13[%c0_365, %c2_366] : memref<8x8xf32, #tpu.memory_space<smem>>
      %882 = vector.broadcast %881 : f32 to vector<8x8xf32>
      %883 = arith.mulf %882, %798 : vector<8x8xf32>
      %884 = arith.addf %880, %883 : vector<8x8xf32>
      %c0_367 = arith.constant 0 : index
      %c3_368 = arith.constant 3 : index
      %885 = memref.load %arg13[%c0_367, %c3_368] : memref<8x8xf32, #tpu.memory_space<smem>>
      %886 = vector.broadcast %885 : f32 to vector<8x8xf32>
      %887 = arith.mulf %886, %813 : vector<8x8xf32>
      %888 = arith.addf %884, %887 : vector<8x8xf32>
      %c0_369 = arith.constant 0 : index
      %c4_370 = arith.constant 4 : index
      %889 = memref.load %arg13[%c0_369, %c4_370] : memref<8x8xf32, #tpu.memory_space<smem>>
      %890 = vector.broadcast %889 : f32 to vector<8x8xf32>
      %891 = arith.mulf %890, %828 : vector<8x8xf32>
      %892 = arith.addf %888, %891 : vector<8x8xf32>
      %c0_371 = arith.constant 0 : index
      %c5_372 = arith.constant 5 : index
      %893 = memref.load %arg13[%c0_371, %c5_372] : memref<8x8xf32, #tpu.memory_space<smem>>
      %894 = vector.broadcast %893 : f32 to vector<8x8xf32>
      %895 = arith.mulf %894, %843 : vector<8x8xf32>
      %896 = arith.addf %892, %895 : vector<8x8xf32>
      %c0_373 = arith.constant 0 : index
      %c6_374 = arith.constant 6 : index
      %897 = memref.load %arg13[%c0_373, %c6_374] : memref<8x8xf32, #tpu.memory_space<smem>>
      %898 = vector.broadcast %897 : f32 to vector<8x8xf32>
      %899 = arith.mulf %898, %858 : vector<8x8xf32>
      %900 = arith.addf %896, %899 : vector<8x8xf32>
      %c0_375 = arith.constant 0 : index
      %c7_376 = arith.constant 7 : index
      %901 = memref.load %arg13[%c0_375, %c7_376] : memref<8x8xf32, #tpu.memory_space<smem>>
      %902 = vector.broadcast %901 : f32 to vector<8x8xf32>
      %903 = arith.mulf %902, %873 : vector<8x8xf32>
      %904 = arith.addf %900, %903 : vector<8x8xf32>
      %c1_377 = arith.constant 1 : index
      %c0_378 = arith.constant 0 : index
      %905 = memref.load %arg13[%c1_377, %c0_378] : memref<8x8xf32, #tpu.memory_space<smem>>
      %906 = vector.broadcast %905 : f32 to vector<8x8xf32>
      %907 = arith.mulf %906, %768 : vector<8x8xf32>
      %c1_379 = arith.constant 1 : index
      %c1_380 = arith.constant 1 : index
      %908 = memref.load %arg13[%c1_379, %c1_380] : memref<8x8xf32, #tpu.memory_space<smem>>
      %909 = vector.broadcast %908 : f32 to vector<8x8xf32>
      %910 = arith.mulf %909, %783 : vector<8x8xf32>
      %911 = arith.addf %907, %910 : vector<8x8xf32>
      %c1_381 = arith.constant 1 : index
      %c2_382 = arith.constant 2 : index
      %912 = memref.load %arg13[%c1_381, %c2_382] : memref<8x8xf32, #tpu.memory_space<smem>>
      %913 = vector.broadcast %912 : f32 to vector<8x8xf32>
      %914 = arith.mulf %913, %798 : vector<8x8xf32>
      %915 = arith.addf %911, %914 : vector<8x8xf32>
      %c1_383 = arith.constant 1 : index
      %c3_384 = arith.constant 3 : index
      %916 = memref.load %arg13[%c1_383, %c3_384] : memref<8x8xf32, #tpu.memory_space<smem>>
      %917 = vector.broadcast %916 : f32 to vector<8x8xf32>
      %918 = arith.mulf %917, %813 : vector<8x8xf32>
      %919 = arith.addf %915, %918 : vector<8x8xf32>
      %c1_385 = arith.constant 1 : index
      %c4_386 = arith.constant 4 : index
      %920 = memref.load %arg13[%c1_385, %c4_386] : memref<8x8xf32, #tpu.memory_space<smem>>
      %921 = vector.broadcast %920 : f32 to vector<8x8xf32>
      %922 = arith.mulf %921, %828 : vector<8x8xf32>
      %923 = arith.addf %919, %922 : vector<8x8xf32>
      %c1_387 = arith.constant 1 : index
      %c5_388 = arith.constant 5 : index
      %924 = memref.load %arg13[%c1_387, %c5_388] : memref<8x8xf32, #tpu.memory_space<smem>>
      %925 = vector.broadcast %924 : f32 to vector<8x8xf32>
      %926 = arith.mulf %925, %843 : vector<8x8xf32>
      %927 = arith.addf %923, %926 : vector<8x8xf32>
      %c1_389 = arith.constant 1 : index
      %c6_390 = arith.constant 6 : index
      %928 = memref.load %arg13[%c1_389, %c6_390] : memref<8x8xf32, #tpu.memory_space<smem>>
      %929 = vector.broadcast %928 : f32 to vector<8x8xf32>
      %930 = arith.mulf %929, %858 : vector<8x8xf32>
      %931 = arith.addf %927, %930 : vector<8x8xf32>
      %c1_391 = arith.constant 1 : index
      %c7_392 = arith.constant 7 : index
      %932 = memref.load %arg13[%c1_391, %c7_392] : memref<8x8xf32, #tpu.memory_space<smem>>
      %933 = vector.broadcast %932 : f32 to vector<8x8xf32>
      %934 = arith.mulf %933, %873 : vector<8x8xf32>
      %935 = arith.addf %931, %934 : vector<8x8xf32>
      %c2_393 = arith.constant 2 : index
      %c0_394 = arith.constant 0 : index
      %936 = memref.load %arg13[%c2_393, %c0_394] : memref<8x8xf32, #tpu.memory_space<smem>>
      %937 = vector.broadcast %936 : f32 to vector<8x8xf32>
      %938 = arith.mulf %937, %768 : vector<8x8xf32>
      %c2_395 = arith.constant 2 : index
      %c1_396 = arith.constant 1 : index
      %939 = memref.load %arg13[%c2_395, %c1_396] : memref<8x8xf32, #tpu.memory_space<smem>>
      %940 = vector.broadcast %939 : f32 to vector<8x8xf32>
      %941 = arith.mulf %940, %783 : vector<8x8xf32>
      %942 = arith.addf %938, %941 : vector<8x8xf32>
      %c2_397 = arith.constant 2 : index
      %c2_398 = arith.constant 2 : index
      %943 = memref.load %arg13[%c2_397, %c2_398] : memref<8x8xf32, #tpu.memory_space<smem>>
      %944 = vector.broadcast %943 : f32 to vector<8x8xf32>
      %945 = arith.mulf %944, %798 : vector<8x8xf32>
      %946 = arith.addf %942, %945 : vector<8x8xf32>
      %c2_399 = arith.constant 2 : index
      %c3_400 = arith.constant 3 : index
      %947 = memref.load %arg13[%c2_399, %c3_400] : memref<8x8xf32, #tpu.memory_space<smem>>
      %948 = vector.broadcast %947 : f32 to vector<8x8xf32>
      %949 = arith.mulf %948, %813 : vector<8x8xf32>
      %950 = arith.addf %946, %949 : vector<8x8xf32>
      %c2_401 = arith.constant 2 : index
      %c4_402 = arith.constant 4 : index
      %951 = memref.load %arg13[%c2_401, %c4_402] : memref<8x8xf32, #tpu.memory_space<smem>>
      %952 = vector.broadcast %951 : f32 to vector<8x8xf32>
      %953 = arith.mulf %952, %828 : vector<8x8xf32>
      %954 = arith.addf %950, %953 : vector<8x8xf32>
      %c2_403 = arith.constant 2 : index
      %c5_404 = arith.constant 5 : index
      %955 = memref.load %arg13[%c2_403, %c5_404] : memref<8x8xf32, #tpu.memory_space<smem>>
      %956 = vector.broadcast %955 : f32 to vector<8x8xf32>
      %957 = arith.mulf %956, %843 : vector<8x8xf32>
      %958 = arith.addf %954, %957 : vector<8x8xf32>
      %c2_405 = arith.constant 2 : index
      %c6_406 = arith.constant 6 : index
      %959 = memref.load %arg13[%c2_405, %c6_406] : memref<8x8xf32, #tpu.memory_space<smem>>
      %960 = vector.broadcast %959 : f32 to vector<8x8xf32>
      %961 = arith.mulf %960, %858 : vector<8x8xf32>
      %962 = arith.addf %958, %961 : vector<8x8xf32>
      %c2_407 = arith.constant 2 : index
      %c7_408 = arith.constant 7 : index
      %963 = memref.load %arg13[%c2_407, %c7_408] : memref<8x8xf32, #tpu.memory_space<smem>>
      %964 = vector.broadcast %963 : f32 to vector<8x8xf32>
      %965 = arith.mulf %964, %873 : vector<8x8xf32>
      %966 = arith.addf %962, %965 : vector<8x8xf32>
      %c3_409 = arith.constant 3 : index
      %c0_410 = arith.constant 0 : index
      %967 = memref.load %arg13[%c3_409, %c0_410] : memref<8x8xf32, #tpu.memory_space<smem>>
      %968 = vector.broadcast %967 : f32 to vector<8x8xf32>
      %969 = arith.mulf %968, %768 : vector<8x8xf32>
      %c3_411 = arith.constant 3 : index
      %c1_412 = arith.constant 1 : index
      %970 = memref.load %arg13[%c3_411, %c1_412] : memref<8x8xf32, #tpu.memory_space<smem>>
      %971 = vector.broadcast %970 : f32 to vector<8x8xf32>
      %972 = arith.mulf %971, %783 : vector<8x8xf32>
      %973 = arith.addf %969, %972 : vector<8x8xf32>
      %c3_413 = arith.constant 3 : index
      %c2_414 = arith.constant 2 : index
      %974 = memref.load %arg13[%c3_413, %c2_414] : memref<8x8xf32, #tpu.memory_space<smem>>
      %975 = vector.broadcast %974 : f32 to vector<8x8xf32>
      %976 = arith.mulf %975, %798 : vector<8x8xf32>
      %977 = arith.addf %973, %976 : vector<8x8xf32>
      %c3_415 = arith.constant 3 : index
      %c3_416 = arith.constant 3 : index
      %978 = memref.load %arg13[%c3_415, %c3_416] : memref<8x8xf32, #tpu.memory_space<smem>>
      %979 = vector.broadcast %978 : f32 to vector<8x8xf32>
      %980 = arith.mulf %979, %813 : vector<8x8xf32>
      %981 = arith.addf %977, %980 : vector<8x8xf32>
      %c3_417 = arith.constant 3 : index
      %c4_418 = arith.constant 4 : index
      %982 = memref.load %arg13[%c3_417, %c4_418] : memref<8x8xf32, #tpu.memory_space<smem>>
      %983 = vector.broadcast %982 : f32 to vector<8x8xf32>
      %984 = arith.mulf %983, %828 : vector<8x8xf32>
      %985 = arith.addf %981, %984 : vector<8x8xf32>
      %c3_419 = arith.constant 3 : index
      %c5_420 = arith.constant 5 : index
      %986 = memref.load %arg13[%c3_419, %c5_420] : memref<8x8xf32, #tpu.memory_space<smem>>
      %987 = vector.broadcast %986 : f32 to vector<8x8xf32>
      %988 = arith.mulf %987, %843 : vector<8x8xf32>
      %989 = arith.addf %985, %988 : vector<8x8xf32>
      %c3_421 = arith.constant 3 : index
      %c6_422 = arith.constant 6 : index
      %990 = memref.load %arg13[%c3_421, %c6_422] : memref<8x8xf32, #tpu.memory_space<smem>>
      %991 = vector.broadcast %990 : f32 to vector<8x8xf32>
      %992 = arith.mulf %991, %858 : vector<8x8xf32>
      %993 = arith.addf %989, %992 : vector<8x8xf32>
      %c3_423 = arith.constant 3 : index
      %c7_424 = arith.constant 7 : index
      %994 = memref.load %arg13[%c3_423, %c7_424] : memref<8x8xf32, #tpu.memory_space<smem>>
      %995 = vector.broadcast %994 : f32 to vector<8x8xf32>
      %996 = arith.mulf %995, %873 : vector<8x8xf32>
      %997 = arith.addf %993, %996 : vector<8x8xf32>
      %c4_425 = arith.constant 4 : index
      %c0_426 = arith.constant 0 : index
      %998 = memref.load %arg13[%c4_425, %c0_426] : memref<8x8xf32, #tpu.memory_space<smem>>
      %999 = vector.broadcast %998 : f32 to vector<8x8xf32>
      %1000 = arith.mulf %999, %768 : vector<8x8xf32>
      %c4_427 = arith.constant 4 : index
      %c1_428 = arith.constant 1 : index
      %1001 = memref.load %arg13[%c4_427, %c1_428] : memref<8x8xf32, #tpu.memory_space<smem>>
      %1002 = vector.broadcast %1001 : f32 to vector<8x8xf32>
      %1003 = arith.mulf %1002, %783 : vector<8x8xf32>
      %1004 = arith.addf %1000, %1003 : vector<8x8xf32>
      %c4_429 = arith.constant 4 : index
      %c2_430 = arith.constant 2 : index
      %1005 = memref.load %arg13[%c4_429, %c2_430] : memref<8x8xf32, #tpu.memory_space<smem>>
      %1006 = vector.broadcast %1005 : f32 to vector<8x8xf32>
      %1007 = arith.mulf %1006, %798 : vector<8x8xf32>
      %1008 = arith.addf %1004, %1007 : vector<8x8xf32>
      %c4_431 = arith.constant 4 : index
      %c3_432 = arith.constant 3 : index
      %1009 = memref.load %arg13[%c4_431, %c3_432] : memref<8x8xf32, #tpu.memory_space<smem>>
      %1010 = vector.broadcast %1009 : f32 to vector<8x8xf32>
      %1011 = arith.mulf %1010, %813 : vector<8x8xf32>
      %1012 = arith.addf %1008, %1011 : vector<8x8xf32>
      %c4_433 = arith.constant 4 : index
      %c4_434 = arith.constant 4 : index
      %1013 = memref.load %arg13[%c4_433, %c4_434] : memref<8x8xf32, #tpu.memory_space<smem>>
      %1014 = vector.broadcast %1013 : f32 to vector<8x8xf32>
      %1015 = arith.mulf %1014, %828 : vector<8x8xf32>
      %1016 = arith.addf %1012, %1015 : vector<8x8xf32>
      %c4_435 = arith.constant 4 : index
      %c5_436 = arith.constant 5 : index
      %1017 = memref.load %arg13[%c4_435, %c5_436] : memref<8x8xf32, #tpu.memory_space<smem>>
      %1018 = vector.broadcast %1017 : f32 to vector<8x8xf32>
      %1019 = arith.mulf %1018, %843 : vector<8x8xf32>
      %1020 = arith.addf %1016, %1019 : vector<8x8xf32>
      %c4_437 = arith.constant 4 : index
      %c6_438 = arith.constant 6 : index
      %1021 = memref.load %arg13[%c4_437, %c6_438] : memref<8x8xf32, #tpu.memory_space<smem>>
      %1022 = vector.broadcast %1021 : f32 to vector<8x8xf32>
      %1023 = arith.mulf %1022, %858 : vector<8x8xf32>
      %1024 = arith.addf %1020, %1023 : vector<8x8xf32>
      %c4_439 = arith.constant 4 : index
      %c7_440 = arith.constant 7 : index
      %1025 = memref.load %arg13[%c4_439, %c7_440] : memref<8x8xf32, #tpu.memory_space<smem>>
      %1026 = vector.broadcast %1025 : f32 to vector<8x8xf32>
      %1027 = arith.mulf %1026, %873 : vector<8x8xf32>
      %1028 = arith.addf %1024, %1027 : vector<8x8xf32>
      %c5_441 = arith.constant 5 : index
      %c0_442 = arith.constant 0 : index
      %1029 = memref.load %arg13[%c5_441, %c0_442] : memref<8x8xf32, #tpu.memory_space<smem>>
      %1030 = vector.broadcast %1029 : f32 to vector<8x8xf32>
      %1031 = arith.mulf %1030, %768 : vector<8x8xf32>
      %c5_443 = arith.constant 5 : index
      %c1_444 = arith.constant 1 : index
      %1032 = memref.load %arg13[%c5_443, %c1_444] : memref<8x8xf32, #tpu.memory_space<smem>>
      %1033 = vector.broadcast %1032 : f32 to vector<8x8xf32>
      %1034 = arith.mulf %1033, %783 : vector<8x8xf32>
      %1035 = arith.addf %1031, %1034 : vector<8x8xf32>
      %c5_445 = arith.constant 5 : index
      %c2_446 = arith.constant 2 : index
      %1036 = memref.load %arg13[%c5_445, %c2_446] : memref<8x8xf32, #tpu.memory_space<smem>>
      %1037 = vector.broadcast %1036 : f32 to vector<8x8xf32>
      %1038 = arith.mulf %1037, %798 : vector<8x8xf32>
      %1039 = arith.addf %1035, %1038 : vector<8x8xf32>
      %c5_447 = arith.constant 5 : index
      %c3_448 = arith.constant 3 : index
      %1040 = memref.load %arg13[%c5_447, %c3_448] : memref<8x8xf32, #tpu.memory_space<smem>>
      %1041 = vector.broadcast %1040 : f32 to vector<8x8xf32>
      %1042 = arith.mulf %1041, %813 : vector<8x8xf32>
      %1043 = arith.addf %1039, %1042 : vector<8x8xf32>
      %c5_449 = arith.constant 5 : index
      %c4_450 = arith.constant 4 : index
      %1044 = memref.load %arg13[%c5_449, %c4_450] : memref<8x8xf32, #tpu.memory_space<smem>>
      %1045 = vector.broadcast %1044 : f32 to vector<8x8xf32>
      %1046 = arith.mulf %1045, %828 : vector<8x8xf32>
      %1047 = arith.addf %1043, %1046 : vector<8x8xf32>
      %c5_451 = arith.constant 5 : index
      %c5_452 = arith.constant 5 : index
      %1048 = memref.load %arg13[%c5_451, %c5_452] : memref<8x8xf32, #tpu.memory_space<smem>>
      %1049 = vector.broadcast %1048 : f32 to vector<8x8xf32>
      %1050 = arith.mulf %1049, %843 : vector<8x8xf32>
      %1051 = arith.addf %1047, %1050 : vector<8x8xf32>
      %c5_453 = arith.constant 5 : index
      %c6_454 = arith.constant 6 : index
      %1052 = memref.load %arg13[%c5_453, %c6_454] : memref<8x8xf32, #tpu.memory_space<smem>>
      %1053 = vector.broadcast %1052 : f32 to vector<8x8xf32>
      %1054 = arith.mulf %1053, %858 : vector<8x8xf32>
      %1055 = arith.addf %1051, %1054 : vector<8x8xf32>
      %c5_455 = arith.constant 5 : index
      %c7_456 = arith.constant 7 : index
      %1056 = memref.load %arg13[%c5_455, %c7_456] : memref<8x8xf32, #tpu.memory_space<smem>>
      %1057 = vector.broadcast %1056 : f32 to vector<8x8xf32>
      %1058 = arith.mulf %1057, %873 : vector<8x8xf32>
      %1059 = arith.addf %1055, %1058 : vector<8x8xf32>
      %c6_457 = arith.constant 6 : index
      %c0_458 = arith.constant 0 : index
      %1060 = memref.load %arg13[%c6_457, %c0_458] : memref<8x8xf32, #tpu.memory_space<smem>>
      %1061 = vector.broadcast %1060 : f32 to vector<8x8xf32>
      %1062 = arith.mulf %1061, %768 : vector<8x8xf32>
      %c6_459 = arith.constant 6 : index
      %c1_460 = arith.constant 1 : index
      %1063 = memref.load %arg13[%c6_459, %c1_460] : memref<8x8xf32, #tpu.memory_space<smem>>
      %1064 = vector.broadcast %1063 : f32 to vector<8x8xf32>
      %1065 = arith.mulf %1064, %783 : vector<8x8xf32>
      %1066 = arith.addf %1062, %1065 : vector<8x8xf32>
      %c6_461 = arith.constant 6 : index
      %c2_462 = arith.constant 2 : index
      %1067 = memref.load %arg13[%c6_461, %c2_462] : memref<8x8xf32, #tpu.memory_space<smem>>
      %1068 = vector.broadcast %1067 : f32 to vector<8x8xf32>
      %1069 = arith.mulf %1068, %798 : vector<8x8xf32>
      %1070 = arith.addf %1066, %1069 : vector<8x8xf32>
      %c6_463 = arith.constant 6 : index
      %c3_464 = arith.constant 3 : index
      %1071 = memref.load %arg13[%c6_463, %c3_464] : memref<8x8xf32, #tpu.memory_space<smem>>
      %1072 = vector.broadcast %1071 : f32 to vector<8x8xf32>
      %1073 = arith.mulf %1072, %813 : vector<8x8xf32>
      %1074 = arith.addf %1070, %1073 : vector<8x8xf32>
      %c6_465 = arith.constant 6 : index
      %c4_466 = arith.constant 4 : index
      %1075 = memref.load %arg13[%c6_465, %c4_466] : memref<8x8xf32, #tpu.memory_space<smem>>
      %1076 = vector.broadcast %1075 : f32 to vector<8x8xf32>
      %1077 = arith.mulf %1076, %828 : vector<8x8xf32>
      %1078 = arith.addf %1074, %1077 : vector<8x8xf32>
      %c6_467 = arith.constant 6 : index
      %c5_468 = arith.constant 5 : index
      %1079 = memref.load %arg13[%c6_467, %c5_468] : memref<8x8xf32, #tpu.memory_space<smem>>
      %1080 = vector.broadcast %1079 : f32 to vector<8x8xf32>
      %1081 = arith.mulf %1080, %843 : vector<8x8xf32>
      %1082 = arith.addf %1078, %1081 : vector<8x8xf32>
      %c6_469 = arith.constant 6 : index
      %c6_470 = arith.constant 6 : index
      %1083 = memref.load %arg13[%c6_469, %c6_470] : memref<8x8xf32, #tpu.memory_space<smem>>
      %1084 = vector.broadcast %1083 : f32 to vector<8x8xf32>
      %1085 = arith.mulf %1084, %858 : vector<8x8xf32>
      %1086 = arith.addf %1082, %1085 : vector<8x8xf32>
      %c6_471 = arith.constant 6 : index
      %c7_472 = arith.constant 7 : index
      %1087 = memref.load %arg13[%c6_471, %c7_472] : memref<8x8xf32, #tpu.memory_space<smem>>
      %1088 = vector.broadcast %1087 : f32 to vector<8x8xf32>
      %1089 = arith.mulf %1088, %873 : vector<8x8xf32>
      %1090 = arith.addf %1086, %1089 : vector<8x8xf32>
      %c7_473 = arith.constant 7 : index
      %c0_474 = arith.constant 0 : index
      %1091 = memref.load %arg13[%c7_473, %c0_474] : memref<8x8xf32, #tpu.memory_space<smem>>
      %1092 = vector.broadcast %1091 : f32 to vector<8x8xf32>
      %1093 = arith.mulf %1092, %768 : vector<8x8xf32>
      %c7_475 = arith.constant 7 : index
      %c1_476 = arith.constant 1 : index
      %1094 = memref.load %arg13[%c7_475, %c1_476] : memref<8x8xf32, #tpu.memory_space<smem>>
      %1095 = vector.broadcast %1094 : f32 to vector<8x8xf32>
      %1096 = arith.mulf %1095, %783 : vector<8x8xf32>
      %1097 = arith.addf %1093, %1096 : vector<8x8xf32>
      %c7_477 = arith.constant 7 : index
      %c2_478 = arith.constant 2 : index
      %1098 = memref.load %arg13[%c7_477, %c2_478] : memref<8x8xf32, #tpu.memory_space<smem>>
      %1099 = vector.broadcast %1098 : f32 to vector<8x8xf32>
      %1100 = arith.mulf %1099, %798 : vector<8x8xf32>
      %1101 = arith.addf %1097, %1100 : vector<8x8xf32>
      %c7_479 = arith.constant 7 : index
      %c3_480 = arith.constant 3 : index
      %1102 = memref.load %arg13[%c7_479, %c3_480] : memref<8x8xf32, #tpu.memory_space<smem>>
      %1103 = vector.broadcast %1102 : f32 to vector<8x8xf32>
      %1104 = arith.mulf %1103, %813 : vector<8x8xf32>
      %1105 = arith.addf %1101, %1104 : vector<8x8xf32>
      %c7_481 = arith.constant 7 : index
      %c4_482 = arith.constant 4 : index
      %1106 = memref.load %arg13[%c7_481, %c4_482] : memref<8x8xf32, #tpu.memory_space<smem>>
      %1107 = vector.broadcast %1106 : f32 to vector<8x8xf32>
      %1108 = arith.mulf %1107, %828 : vector<8x8xf32>
      %1109 = arith.addf %1105, %1108 : vector<8x8xf32>
      %c7_483 = arith.constant 7 : index
      %c5_484 = arith.constant 5 : index
      %1110 = memref.load %arg13[%c7_483, %c5_484] : memref<8x8xf32, #tpu.memory_space<smem>>
      %1111 = vector.broadcast %1110 : f32 to vector<8x8xf32>
      %1112 = arith.mulf %1111, %843 : vector<8x8xf32>
      %1113 = arith.addf %1109, %1112 : vector<8x8xf32>
      %c7_485 = arith.constant 7 : index
      %c6_486 = arith.constant 6 : index
      %1114 = memref.load %arg13[%c7_485, %c6_486] : memref<8x8xf32, #tpu.memory_space<smem>>
      %1115 = vector.broadcast %1114 : f32 to vector<8x8xf32>
      %1116 = arith.mulf %1115, %858 : vector<8x8xf32>
      %1117 = arith.addf %1113, %1116 : vector<8x8xf32>
      %c7_487 = arith.constant 7 : index
      %c7_488 = arith.constant 7 : index
      %1118 = memref.load %arg13[%c7_487, %c7_488] : memref<8x8xf32, #tpu.memory_space<smem>>
      %1119 = vector.broadcast %1118 : f32 to vector<8x8xf32>
      %1120 = arith.mulf %1119, %873 : vector<8x8xf32>
      %1121 = arith.addf %1117, %1120 : vector<8x8xf32>
      %1122 = vector.shape_cast %904 : vector<8x8xf32> to vector<1x8x8xf32>
      %cst_489 = arith.constant dense<0.000000e+00> : vector<1xf32>
      %1123 = vector.multi_reduction <add>, %1122, %cst_489 [1, 2] : vector<1x8x8xf32> to vector<1xf32>
      %1124 = vector.shape_cast %1123 : vector<1xf32> to vector<1x1x1xf32>
      %1125 = vector.extract %1124[0, 0, 0] : f32 from vector<1x1x1xf32>
      %1126 = arith.mulf %904, %904 : vector<8x8xf32>
      %1127 = vector.shape_cast %1126 : vector<8x8xf32> to vector<1x8x8xf32>
      %cst_490 = arith.constant dense<0.000000e+00> : vector<1xf32>
      %1128 = vector.multi_reduction <add>, %1127, %cst_490 [1, 2] : vector<1x8x8xf32> to vector<1xf32>
      %1129 = vector.shape_cast %1128 : vector<1xf32> to vector<1x1x1xf32>
      %1130 = vector.extract %1129[0, 0, 0] : f32 from vector<1x1x1xf32>
      %1131 = vector.shape_cast %935 : vector<8x8xf32> to vector<1x8x8xf32>
      %cst_491 = arith.constant dense<0.000000e+00> : vector<1xf32>
      %1132 = vector.multi_reduction <add>, %1131, %cst_491 [1, 2] : vector<1x8x8xf32> to vector<1xf32>
      %1133 = vector.shape_cast %1132 : vector<1xf32> to vector<1x1x1xf32>
      %1134 = vector.extract %1133[0, 0, 0] : f32 from vector<1x1x1xf32>
      %1135 = arith.addf %1125, %1134 : f32
      %1136 = arith.mulf %935, %935 : vector<8x8xf32>
      %1137 = vector.shape_cast %1136 : vector<8x8xf32> to vector<1x8x8xf32>
      %cst_492 = arith.constant dense<0.000000e+00> : vector<1xf32>
      %1138 = vector.multi_reduction <add>, %1137, %cst_492 [1, 2] : vector<1x8x8xf32> to vector<1xf32>
      %1139 = vector.shape_cast %1138 : vector<1xf32> to vector<1x1x1xf32>
      %1140 = vector.extract %1139[0, 0, 0] : f32 from vector<1x1x1xf32>
      %1141 = arith.addf %1130, %1140 : f32
      %1142 = vector.shape_cast %966 : vector<8x8xf32> to vector<1x8x8xf32>
      %cst_493 = arith.constant dense<0.000000e+00> : vector<1xf32>
      %1143 = vector.multi_reduction <add>, %1142, %cst_493 [1, 2] : vector<1x8x8xf32> to vector<1xf32>
      %1144 = vector.shape_cast %1143 : vector<1xf32> to vector<1x1x1xf32>
      %1145 = vector.extract %1144[0, 0, 0] : f32 from vector<1x1x1xf32>
      %1146 = arith.addf %1135, %1145 : f32
      %1147 = arith.mulf %966, %966 : vector<8x8xf32>
      %1148 = vector.shape_cast %1147 : vector<8x8xf32> to vector<1x8x8xf32>
      %cst_494 = arith.constant dense<0.000000e+00> : vector<1xf32>
      %1149 = vector.multi_reduction <add>, %1148, %cst_494 [1, 2] : vector<1x8x8xf32> to vector<1xf32>
      %1150 = vector.shape_cast %1149 : vector<1xf32> to vector<1x1x1xf32>
      %1151 = vector.extract %1150[0, 0, 0] : f32 from vector<1x1x1xf32>
      %1152 = arith.addf %1141, %1151 : f32
      %1153 = vector.shape_cast %997 : vector<8x8xf32> to vector<1x8x8xf32>
      %cst_495 = arith.constant dense<0.000000e+00> : vector<1xf32>
      %1154 = vector.multi_reduction <add>, %1153, %cst_495 [1, 2] : vector<1x8x8xf32> to vector<1xf32>
      %1155 = vector.shape_cast %1154 : vector<1xf32> to vector<1x1x1xf32>
      %1156 = vector.extract %1155[0, 0, 0] : f32 from vector<1x1x1xf32>
      %1157 = arith.addf %1146, %1156 : f32
      %1158 = arith.mulf %997, %997 : vector<8x8xf32>
      %1159 = vector.shape_cast %1158 : vector<8x8xf32> to vector<1x8x8xf32>
      %cst_496 = arith.constant dense<0.000000e+00> : vector<1xf32>
      %1160 = vector.multi_reduction <add>, %1159, %cst_496 [1, 2] : vector<1x8x8xf32> to vector<1xf32>
      %1161 = vector.shape_cast %1160 : vector<1xf32> to vector<1x1x1xf32>
      %1162 = vector.extract %1161[0, 0, 0] : f32 from vector<1x1x1xf32>
      %1163 = arith.addf %1152, %1162 : f32
      %1164 = vector.shape_cast %1028 : vector<8x8xf32> to vector<1x8x8xf32>
      %cst_497 = arith.constant dense<0.000000e+00> : vector<1xf32>
      %1165 = vector.multi_reduction <add>, %1164, %cst_497 [1, 2] : vector<1x8x8xf32> to vector<1xf32>
      %1166 = vector.shape_cast %1165 : vector<1xf32> to vector<1x1x1xf32>
      %1167 = vector.extract %1166[0, 0, 0] : f32 from vector<1x1x1xf32>
      %1168 = arith.addf %1157, %1167 : f32
      %1169 = arith.mulf %1028, %1028 : vector<8x8xf32>
      %1170 = vector.shape_cast %1169 : vector<8x8xf32> to vector<1x8x8xf32>
      %cst_498 = arith.constant dense<0.000000e+00> : vector<1xf32>
      %1171 = vector.multi_reduction <add>, %1170, %cst_498 [1, 2] : vector<1x8x8xf32> to vector<1xf32>
      %1172 = vector.shape_cast %1171 : vector<1xf32> to vector<1x1x1xf32>
      %1173 = vector.extract %1172[0, 0, 0] : f32 from vector<1x1x1xf32>
      %1174 = arith.addf %1163, %1173 : f32
      %1175 = vector.shape_cast %1059 : vector<8x8xf32> to vector<1x8x8xf32>
      %cst_499 = arith.constant dense<0.000000e+00> : vector<1xf32>
      %1176 = vector.multi_reduction <add>, %1175, %cst_499 [1, 2] : vector<1x8x8xf32> to vector<1xf32>
      %1177 = vector.shape_cast %1176 : vector<1xf32> to vector<1x1x1xf32>
      %1178 = vector.extract %1177[0, 0, 0] : f32 from vector<1x1x1xf32>
      %1179 = arith.addf %1168, %1178 : f32
      %1180 = arith.mulf %1059, %1059 : vector<8x8xf32>
      %1181 = vector.shape_cast %1180 : vector<8x8xf32> to vector<1x8x8xf32>
      %cst_500 = arith.constant dense<0.000000e+00> : vector<1xf32>
      %1182 = vector.multi_reduction <add>, %1181, %cst_500 [1, 2] : vector<1x8x8xf32> to vector<1xf32>
      %1183 = vector.shape_cast %1182 : vector<1xf32> to vector<1x1x1xf32>
      %1184 = vector.extract %1183[0, 0, 0] : f32 from vector<1x1x1xf32>
      %1185 = arith.addf %1174, %1184 : f32
      %1186 = vector.shape_cast %1090 : vector<8x8xf32> to vector<1x8x8xf32>
      %cst_501 = arith.constant dense<0.000000e+00> : vector<1xf32>
      %1187 = vector.multi_reduction <add>, %1186, %cst_501 [1, 2] : vector<1x8x8xf32> to vector<1xf32>
      %1188 = vector.shape_cast %1187 : vector<1xf32> to vector<1x1x1xf32>
      %1189 = vector.extract %1188[0, 0, 0] : f32 from vector<1x1x1xf32>
      %1190 = arith.addf %1179, %1189 : f32
      %1191 = arith.mulf %1090, %1090 : vector<8x8xf32>
      %1192 = vector.shape_cast %1191 : vector<8x8xf32> to vector<1x8x8xf32>
      %cst_502 = arith.constant dense<0.000000e+00> : vector<1xf32>
      %1193 = vector.multi_reduction <add>, %1192, %cst_502 [1, 2] : vector<1x8x8xf32> to vector<1xf32>
      %1194 = vector.shape_cast %1193 : vector<1xf32> to vector<1x1x1xf32>
      %1195 = vector.extract %1194[0, 0, 0] : f32 from vector<1x1x1xf32>
      %1196 = arith.addf %1185, %1195 : f32
      %1197 = vector.shape_cast %1121 : vector<8x8xf32> to vector<1x8x8xf32>
      %cst_503 = arith.constant dense<0.000000e+00> : vector<1xf32>
      %1198 = vector.multi_reduction <add>, %1197, %cst_503 [1, 2] : vector<1x8x8xf32> to vector<1xf32>
      %1199 = vector.shape_cast %1198 : vector<1xf32> to vector<1x1x1xf32>
      %1200 = vector.extract %1199[0, 0, 0] : f32 from vector<1x1x1xf32>
      %1201 = arith.addf %1190, %1200 : f32
      %1202 = arith.mulf %1121, %1121 : vector<8x8xf32>
      %1203 = vector.shape_cast %1202 : vector<8x8xf32> to vector<1x8x8xf32>
      %cst_504 = arith.constant dense<0.000000e+00> : vector<1xf32>
      %1204 = vector.multi_reduction <add>, %1203, %cst_504 [1, 2] : vector<1x8x8xf32> to vector<1xf32>
      %1205 = vector.shape_cast %1204 : vector<1xf32> to vector<1x1x1xf32>
      %1206 = vector.extract %1205[0, 0, 0] : f32 from vector<1x1x1xf32>
      %1207 = arith.addf %1196, %1206 : f32
      %cst_505 = arith.constant 0.001953125 : f32
      %1208 = arith.mulf %1201, %cst_505 : f32
      %cst_506 = arith.constant 0.001953125 : f32
      %1209 = arith.mulf %1207, %cst_506 : f32
      %1210 = arith.mulf %1208, %1208 : f32
      %1211 = arith.subf %1209, %1210 : f32
      %cst_507 = arith.constant 9.99999974E-6 : f32
      %1212 = arith.addf %1211, %cst_507 : f32
      %1213 = math.rsqrt %1212 : f32
      %1214 = vector.broadcast %1208 : f32 to vector<8x8xf32>
      %1215 = arith.subf %904, %1214 : vector<8x8xf32>
      %c0_508 = arith.constant 0 : index
      %1216 = memref.load %arg14[%c0_508] : memref<8xf32, #tpu.memory_space<smem>>
      %1217 = arith.mulf %1213, %1216 : f32
      %1218 = vector.broadcast %1217 : f32 to vector<8x8xf32>
      %1219 = arith.mulf %1215, %1218 : vector<8x8xf32>
      %c0_509 = arith.constant 0 : index
      %1220 = memref.load %arg15[%c0_509] : memref<8xf32, #tpu.memory_space<smem>>
      %1221 = vector.broadcast %1220 : f32 to vector<8x8xf32>
      %1222 = arith.addf %1219, %1221 : vector<8x8xf32>
      %1223 = arith.negf %1222 : vector<8x8xf32>
      %1224 = math.exp %1223 : vector<8x8xf32>
      %cst_510 = arith.constant 1.000000e+00 : f32
      %1225 = vector.broadcast %cst_510 : f32 to vector<8x8xf32>
      %1226 = arith.addf %1225, %1224 : vector<8x8xf32>
      %1227 = arith.divf %1225, %1226 : vector<8x8xf32>
      %1228 = arith.mulf %1222, %1227 : vector<8x8xf32>
      %1229 = vector.broadcast %1208 : f32 to vector<8x8xf32>
      %1230 = arith.subf %935, %1229 : vector<8x8xf32>
      %c1_511 = arith.constant 1 : index
      %1231 = memref.load %arg14[%c1_511] : memref<8xf32, #tpu.memory_space<smem>>
      %1232 = arith.mulf %1213, %1231 : f32
      %1233 = vector.broadcast %1232 : f32 to vector<8x8xf32>
      %1234 = arith.mulf %1230, %1233 : vector<8x8xf32>
      %c1_512 = arith.constant 1 : index
      %1235 = memref.load %arg15[%c1_512] : memref<8xf32, #tpu.memory_space<smem>>
      %1236 = vector.broadcast %1235 : f32 to vector<8x8xf32>
      %1237 = arith.addf %1234, %1236 : vector<8x8xf32>
      %1238 = arith.negf %1237 : vector<8x8xf32>
      %1239 = math.exp %1238 : vector<8x8xf32>
      %cst_513 = arith.constant 1.000000e+00 : f32
      %1240 = vector.broadcast %cst_513 : f32 to vector<8x8xf32>
      %1241 = arith.addf %1240, %1239 : vector<8x8xf32>
      %1242 = arith.divf %1240, %1241 : vector<8x8xf32>
      %1243 = arith.mulf %1237, %1242 : vector<8x8xf32>
      %1244 = vector.broadcast %1208 : f32 to vector<8x8xf32>
      %1245 = arith.subf %966, %1244 : vector<8x8xf32>
      %c2_514 = arith.constant 2 : index
      %1246 = memref.load %arg14[%c2_514] : memref<8xf32, #tpu.memory_space<smem>>
      %1247 = arith.mulf %1213, %1246 : f32
      %1248 = vector.broadcast %1247 : f32 to vector<8x8xf32>
      %1249 = arith.mulf %1245, %1248 : vector<8x8xf32>
      %c2_515 = arith.constant 2 : index
      %1250 = memref.load %arg15[%c2_515] : memref<8xf32, #tpu.memory_space<smem>>
      %1251 = vector.broadcast %1250 : f32 to vector<8x8xf32>
      %1252 = arith.addf %1249, %1251 : vector<8x8xf32>
      %1253 = arith.negf %1252 : vector<8x8xf32>
      %1254 = math.exp %1253 : vector<8x8xf32>
      %cst_516 = arith.constant 1.000000e+00 : f32
      %1255 = vector.broadcast %cst_516 : f32 to vector<8x8xf32>
      %1256 = arith.addf %1255, %1254 : vector<8x8xf32>
      %1257 = arith.divf %1255, %1256 : vector<8x8xf32>
      %1258 = arith.mulf %1252, %1257 : vector<8x8xf32>
      %1259 = vector.broadcast %1208 : f32 to vector<8x8xf32>
      %1260 = arith.subf %997, %1259 : vector<8x8xf32>
      %c3_517 = arith.constant 3 : index
      %1261 = memref.load %arg14[%c3_517] : memref<8xf32, #tpu.memory_space<smem>>
      %1262 = arith.mulf %1213, %1261 : f32
      %1263 = vector.broadcast %1262 : f32 to vector<8x8xf32>
      %1264 = arith.mulf %1260, %1263 : vector<8x8xf32>
      %c3_518 = arith.constant 3 : index
      %1265 = memref.load %arg15[%c3_518] : memref<8xf32, #tpu.memory_space<smem>>
      %1266 = vector.broadcast %1265 : f32 to vector<8x8xf32>
      %1267 = arith.addf %1264, %1266 : vector<8x8xf32>
      %1268 = arith.negf %1267 : vector<8x8xf32>
      %1269 = math.exp %1268 : vector<8x8xf32>
      %cst_519 = arith.constant 1.000000e+00 : f32
      %1270 = vector.broadcast %cst_519 : f32 to vector<8x8xf32>
      %1271 = arith.addf %1270, %1269 : vector<8x8xf32>
      %1272 = arith.divf %1270, %1271 : vector<8x8xf32>
      %1273 = arith.mulf %1267, %1272 : vector<8x8xf32>
      %1274 = vector.broadcast %1208 : f32 to vector<8x8xf32>
      %1275 = arith.subf %1028, %1274 : vector<8x8xf32>
      %c4_520 = arith.constant 4 : index
      %1276 = memref.load %arg14[%c4_520] : memref<8xf32, #tpu.memory_space<smem>>
      %1277 = arith.mulf %1213, %1276 : f32
      %1278 = vector.broadcast %1277 : f32 to vector<8x8xf32>
      %1279 = arith.mulf %1275, %1278 : vector<8x8xf32>
      %c4_521 = arith.constant 4 : index
      %1280 = memref.load %arg15[%c4_521] : memref<8xf32, #tpu.memory_space<smem>>
      %1281 = vector.broadcast %1280 : f32 to vector<8x8xf32>
      %1282 = arith.addf %1279, %1281 : vector<8x8xf32>
      %1283 = arith.negf %1282 : vector<8x8xf32>
      %1284 = math.exp %1283 : vector<8x8xf32>
      %cst_522 = arith.constant 1.000000e+00 : f32
      %1285 = vector.broadcast %cst_522 : f32 to vector<8x8xf32>
      %1286 = arith.addf %1285, %1284 : vector<8x8xf32>
      %1287 = arith.divf %1285, %1286 : vector<8x8xf32>
      %1288 = arith.mulf %1282, %1287 : vector<8x8xf32>
      %1289 = vector.broadcast %1208 : f32 to vector<8x8xf32>
      %1290 = arith.subf %1059, %1289 : vector<8x8xf32>
      %c5_523 = arith.constant 5 : index
      %1291 = memref.load %arg14[%c5_523] : memref<8xf32, #tpu.memory_space<smem>>
      %1292 = arith.mulf %1213, %1291 : f32
      %1293 = vector.broadcast %1292 : f32 to vector<8x8xf32>
      %1294 = arith.mulf %1290, %1293 : vector<8x8xf32>
      %c5_524 = arith.constant 5 : index
      %1295 = memref.load %arg15[%c5_524] : memref<8xf32, #tpu.memory_space<smem>>
      %1296 = vector.broadcast %1295 : f32 to vector<8x8xf32>
      %1297 = arith.addf %1294, %1296 : vector<8x8xf32>
      %1298 = arith.negf %1297 : vector<8x8xf32>
      %1299 = math.exp %1298 : vector<8x8xf32>
      %cst_525 = arith.constant 1.000000e+00 : f32
      %1300 = vector.broadcast %cst_525 : f32 to vector<8x8xf32>
      %1301 = arith.addf %1300, %1299 : vector<8x8xf32>
      %1302 = arith.divf %1300, %1301 : vector<8x8xf32>
      %1303 = arith.mulf %1297, %1302 : vector<8x8xf32>
      %1304 = vector.broadcast %1208 : f32 to vector<8x8xf32>
      %1305 = arith.subf %1090, %1304 : vector<8x8xf32>
      %c6_526 = arith.constant 6 : index
      %1306 = memref.load %arg14[%c6_526] : memref<8xf32, #tpu.memory_space<smem>>
      %1307 = arith.mulf %1213, %1306 : f32
      %1308 = vector.broadcast %1307 : f32 to vector<8x8xf32>
      %1309 = arith.mulf %1305, %1308 : vector<8x8xf32>
      %c6_527 = arith.constant 6 : index
      %1310 = memref.load %arg15[%c6_527] : memref<8xf32, #tpu.memory_space<smem>>
      %1311 = vector.broadcast %1310 : f32 to vector<8x8xf32>
      %1312 = arith.addf %1309, %1311 : vector<8x8xf32>
      %1313 = arith.negf %1312 : vector<8x8xf32>
      %1314 = math.exp %1313 : vector<8x8xf32>
      %cst_528 = arith.constant 1.000000e+00 : f32
      %1315 = vector.broadcast %cst_528 : f32 to vector<8x8xf32>
      %1316 = arith.addf %1315, %1314 : vector<8x8xf32>
      %1317 = arith.divf %1315, %1316 : vector<8x8xf32>
      %1318 = arith.mulf %1312, %1317 : vector<8x8xf32>
      %1319 = vector.broadcast %1208 : f32 to vector<8x8xf32>
      %1320 = arith.subf %1121, %1319 : vector<8x8xf32>
      %c7_529 = arith.constant 7 : index
      %1321 = memref.load %arg14[%c7_529] : memref<8xf32, #tpu.memory_space<smem>>
      %1322 = arith.mulf %1213, %1321 : f32
      %1323 = vector.broadcast %1322 : f32 to vector<8x8xf32>
      %1324 = arith.mulf %1320, %1323 : vector<8x8xf32>
      %c7_530 = arith.constant 7 : index
      %1325 = memref.load %arg15[%c7_530] : memref<8xf32, #tpu.memory_space<smem>>
      %1326 = vector.broadcast %1325 : f32 to vector<8x8xf32>
      %1327 = arith.addf %1324, %1326 : vector<8x8xf32>
      %1328 = arith.negf %1327 : vector<8x8xf32>
      %1329 = math.exp %1328 : vector<8x8xf32>
      %cst_531 = arith.constant 1.000000e+00 : f32
      %1330 = vector.broadcast %cst_531 : f32 to vector<8x8xf32>
      %1331 = arith.addf %1330, %1329 : vector<8x8xf32>
      %1332 = arith.divf %1330, %1331 : vector<8x8xf32>
      %1333 = arith.mulf %1327, %1332 : vector<8x8xf32>
      %c0_532 = arith.constant 0 : index
      %c0_533 = arith.constant 0 : index
      %1334 = memref.load %arg16[%c0_532, %c0_533] : memref<3x8xf32, #tpu.memory_space<smem>>
      %1335 = vector.broadcast %1334 : f32 to vector<8x8xf32>
      %1336 = arith.mulf %1335, %1228 : vector<8x8xf32>
      %c0_534 = arith.constant 0 : index
      %c1_535 = arith.constant 1 : index
      %1337 = memref.load %arg16[%c0_534, %c1_535] : memref<3x8xf32, #tpu.memory_space<smem>>
      %1338 = vector.broadcast %1337 : f32 to vector<8x8xf32>
      %1339 = arith.mulf %1338, %1243 : vector<8x8xf32>
      %1340 = arith.addf %1336, %1339 : vector<8x8xf32>
      %c0_536 = arith.constant 0 : index
      %c2_537 = arith.constant 2 : index
      %1341 = memref.load %arg16[%c0_536, %c2_537] : memref<3x8xf32, #tpu.memory_space<smem>>
      %1342 = vector.broadcast %1341 : f32 to vector<8x8xf32>
      %1343 = arith.mulf %1342, %1258 : vector<8x8xf32>
      %1344 = arith.addf %1340, %1343 : vector<8x8xf32>
      %c0_538 = arith.constant 0 : index
      %c3_539 = arith.constant 3 : index
      %1345 = memref.load %arg16[%c0_538, %c3_539] : memref<3x8xf32, #tpu.memory_space<smem>>
      %1346 = vector.broadcast %1345 : f32 to vector<8x8xf32>
      %1347 = arith.mulf %1346, %1273 : vector<8x8xf32>
      %1348 = arith.addf %1344, %1347 : vector<8x8xf32>
      %c0_540 = arith.constant 0 : index
      %c4_541 = arith.constant 4 : index
      %1349 = memref.load %arg16[%c0_540, %c4_541] : memref<3x8xf32, #tpu.memory_space<smem>>
      %1350 = vector.broadcast %1349 : f32 to vector<8x8xf32>
      %1351 = arith.mulf %1350, %1288 : vector<8x8xf32>
      %1352 = arith.addf %1348, %1351 : vector<8x8xf32>
      %c0_542 = arith.constant 0 : index
      %c5_543 = arith.constant 5 : index
      %1353 = memref.load %arg16[%c0_542, %c5_543] : memref<3x8xf32, #tpu.memory_space<smem>>
      %1354 = vector.broadcast %1353 : f32 to vector<8x8xf32>
      %1355 = arith.mulf %1354, %1303 : vector<8x8xf32>
      %1356 = arith.addf %1352, %1355 : vector<8x8xf32>
      %c0_544 = arith.constant 0 : index
      %c6_545 = arith.constant 6 : index
      %1357 = memref.load %arg16[%c0_544, %c6_545] : memref<3x8xf32, #tpu.memory_space<smem>>
      %1358 = vector.broadcast %1357 : f32 to vector<8x8xf32>
      %1359 = arith.mulf %1358, %1318 : vector<8x8xf32>
      %1360 = arith.addf %1356, %1359 : vector<8x8xf32>
      %c0_546 = arith.constant 0 : index
      %c7_547 = arith.constant 7 : index
      %1361 = memref.load %arg16[%c0_546, %c7_547] : memref<3x8xf32, #tpu.memory_space<smem>>
      %1362 = vector.broadcast %1361 : f32 to vector<8x8xf32>
      %1363 = arith.mulf %1362, %1333 : vector<8x8xf32>
      %1364 = arith.addf %1360, %1363 : vector<8x8xf32>
      %c1_548 = arith.constant 1 : index
      %c0_549 = arith.constant 0 : index
      %1365 = memref.load %arg16[%c1_548, %c0_549] : memref<3x8xf32, #tpu.memory_space<smem>>
      %1366 = vector.broadcast %1365 : f32 to vector<8x8xf32>
      %1367 = arith.mulf %1366, %1228 : vector<8x8xf32>
      %c1_550 = arith.constant 1 : index
      %c1_551 = arith.constant 1 : index
      %1368 = memref.load %arg16[%c1_550, %c1_551] : memref<3x8xf32, #tpu.memory_space<smem>>
      %1369 = vector.broadcast %1368 : f32 to vector<8x8xf32>
      %1370 = arith.mulf %1369, %1243 : vector<8x8xf32>
      %1371 = arith.addf %1367, %1370 : vector<8x8xf32>
      %c1_552 = arith.constant 1 : index
      %c2_553 = arith.constant 2 : index
      %1372 = memref.load %arg16[%c1_552, %c2_553] : memref<3x8xf32, #tpu.memory_space<smem>>
      %1373 = vector.broadcast %1372 : f32 to vector<8x8xf32>
      %1374 = arith.mulf %1373, %1258 : vector<8x8xf32>
      %1375 = arith.addf %1371, %1374 : vector<8x8xf32>
      %c1_554 = arith.constant 1 : index
      %c3_555 = arith.constant 3 : index
      %1376 = memref.load %arg16[%c1_554, %c3_555] : memref<3x8xf32, #tpu.memory_space<smem>>
      %1377 = vector.broadcast %1376 : f32 to vector<8x8xf32>
      %1378 = arith.mulf %1377, %1273 : vector<8x8xf32>
      %1379 = arith.addf %1375, %1378 : vector<8x8xf32>
      %c1_556 = arith.constant 1 : index
      %c4_557 = arith.constant 4 : index
      %1380 = memref.load %arg16[%c1_556, %c4_557] : memref<3x8xf32, #tpu.memory_space<smem>>
      %1381 = vector.broadcast %1380 : f32 to vector<8x8xf32>
      %1382 = arith.mulf %1381, %1288 : vector<8x8xf32>
      %1383 = arith.addf %1379, %1382 : vector<8x8xf32>
      %c1_558 = arith.constant 1 : index
      %c5_559 = arith.constant 5 : index
      %1384 = memref.load %arg16[%c1_558, %c5_559] : memref<3x8xf32, #tpu.memory_space<smem>>
      %1385 = vector.broadcast %1384 : f32 to vector<8x8xf32>
      %1386 = arith.mulf %1385, %1303 : vector<8x8xf32>
      %1387 = arith.addf %1383, %1386 : vector<8x8xf32>
      %c1_560 = arith.constant 1 : index
      %c6_561 = arith.constant 6 : index
      %1388 = memref.load %arg16[%c1_560, %c6_561] : memref<3x8xf32, #tpu.memory_space<smem>>
      %1389 = vector.broadcast %1388 : f32 to vector<8x8xf32>
      %1390 = arith.mulf %1389, %1318 : vector<8x8xf32>
      %1391 = arith.addf %1387, %1390 : vector<8x8xf32>
      %c1_562 = arith.constant 1 : index
      %c7_563 = arith.constant 7 : index
      %1392 = memref.load %arg16[%c1_562, %c7_563] : memref<3x8xf32, #tpu.memory_space<smem>>
      %1393 = vector.broadcast %1392 : f32 to vector<8x8xf32>
      %1394 = arith.mulf %1393, %1333 : vector<8x8xf32>
      %1395 = arith.addf %1391, %1394 : vector<8x8xf32>
      %c2_564 = arith.constant 2 : index
      %c0_565 = arith.constant 0 : index
      %1396 = memref.load %arg16[%c2_564, %c0_565] : memref<3x8xf32, #tpu.memory_space<smem>>
      %1397 = vector.broadcast %1396 : f32 to vector<8x8xf32>
      %1398 = arith.mulf %1397, %1228 : vector<8x8xf32>
      %c2_566 = arith.constant 2 : index
      %c1_567 = arith.constant 1 : index
      %1399 = memref.load %arg16[%c2_566, %c1_567] : memref<3x8xf32, #tpu.memory_space<smem>>
      %1400 = vector.broadcast %1399 : f32 to vector<8x8xf32>
      %1401 = arith.mulf %1400, %1243 : vector<8x8xf32>
      %1402 = arith.addf %1398, %1401 : vector<8x8xf32>
      %c2_568 = arith.constant 2 : index
      %c2_569 = arith.constant 2 : index
      %1403 = memref.load %arg16[%c2_568, %c2_569] : memref<3x8xf32, #tpu.memory_space<smem>>
      %1404 = vector.broadcast %1403 : f32 to vector<8x8xf32>
      %1405 = arith.mulf %1404, %1258 : vector<8x8xf32>
      %1406 = arith.addf %1402, %1405 : vector<8x8xf32>
      %c2_570 = arith.constant 2 : index
      %c3_571 = arith.constant 3 : index
      %1407 = memref.load %arg16[%c2_570, %c3_571] : memref<3x8xf32, #tpu.memory_space<smem>>
      %1408 = vector.broadcast %1407 : f32 to vector<8x8xf32>
      %1409 = arith.mulf %1408, %1273 : vector<8x8xf32>
      %1410 = arith.addf %1406, %1409 : vector<8x8xf32>
      %c2_572 = arith.constant 2 : index
      %c4_573 = arith.constant 4 : index
      %1411 = memref.load %arg16[%c2_572, %c4_573] : memref<3x8xf32, #tpu.memory_space<smem>>
      %1412 = vector.broadcast %1411 : f32 to vector<8x8xf32>
      %1413 = arith.mulf %1412, %1288 : vector<8x8xf32>
      %1414 = arith.addf %1410, %1413 : vector<8x8xf32>
      %c2_574 = arith.constant 2 : index
      %c5_575 = arith.constant 5 : index
      %1415 = memref.load %arg16[%c2_574, %c5_575] : memref<3x8xf32, #tpu.memory_space<smem>>
      %1416 = vector.broadcast %1415 : f32 to vector<8x8xf32>
      %1417 = arith.mulf %1416, %1303 : vector<8x8xf32>
      %1418 = arith.addf %1414, %1417 : vector<8x8xf32>
      %c2_576 = arith.constant 2 : index
      %c6_577 = arith.constant 6 : index
      %1419 = memref.load %arg16[%c2_576, %c6_577] : memref<3x8xf32, #tpu.memory_space<smem>>
      %1420 = vector.broadcast %1419 : f32 to vector<8x8xf32>
      %1421 = arith.mulf %1420, %1318 : vector<8x8xf32>
      %1422 = arith.addf %1418, %1421 : vector<8x8xf32>
      %c2_578 = arith.constant 2 : index
      %c7_579 = arith.constant 7 : index
      %1423 = memref.load %arg16[%c2_578, %c7_579] : memref<3x8xf32, #tpu.memory_space<smem>>
      %1424 = vector.broadcast %1423 : f32 to vector<8x8xf32>
      %1425 = arith.mulf %1424, %1333 : vector<8x8xf32>
      %1426 = arith.addf %1422, %1425 : vector<8x8xf32>
      %c0_580 = arith.constant 0 : index
      %1427 = memref.load %arg17[%c0_580] : memref<3xf32, #tpu.memory_space<smem>>
      %1428 = vector.broadcast %1427 : f32 to vector<8x8xf32>
      %1429 = arith.addf %1364, %1428 : vector<8x8xf32>
      %c1_581 = arith.constant 1 : index
      %1430 = memref.load %arg17[%c1_581] : memref<3xf32, #tpu.memory_space<smem>>
      %1431 = vector.broadcast %1430 : f32 to vector<8x8xf32>
      %1432 = arith.addf %1395, %1431 : vector<8x8xf32>
      %c2_582 = arith.constant 2 : index
      %1433 = memref.load %arg17[%c2_582] : memref<3xf32, #tpu.memory_space<smem>>
      %1434 = vector.broadcast %1433 : f32 to vector<8x8xf32>
      %1435 = arith.addf %1426, %1434 : vector<8x8xf32>
      %1436 = arith.mulf %1429, %63 : vector<8x8xf32>
      %1437 = arith.subf %65, %1436 : vector<8x8xf32>
      %cst_583 = arith.constant dense<0.000000e+00> : vector<16x8xf32>
      %1438 = tpu.matmul %35, %1429, %cst_583 {dimension_numbers = #tpu.dot_dimension_numbers<[1], [0], [0], [1], [0, 0, 1, 1], [], []>} : vector<16x8xf32>, vector<8x8xf32>, vector<16x8xf32> -> vector<16x8xf32>
      %1439 = arith.truncf %1438 : vector<16x8xf32> to vector<16x8xbf16>
      %c0_584 = arith.constant 0 : index
      %c0_585 = arith.constant 0 : index
      %1440 = vector.load %arg19[%c0_584, %c0_585] : memref<96x8xbf16, #tpu.memory_space<vmem>>, vector<16x8xbf16>
      tpu.vector_store %arg19[%c0_584, %c0_585], %1439 {strides = array<i32>} : memref<96x8xbf16, #tpu.memory_space<vmem>>, vector<16x8xbf16>,
      %cst_586 = arith.constant dense<0.000000e+00> : vector<16x8xf32>
      %1441 = tpu.matmul %35, %1437, %cst_586 {dimension_numbers = #tpu.dot_dimension_numbers<[1], [0], [0], [1], [0, 0, 1, 1], [], []>} : vector<16x8xf32>, vector<8x8xf32>, vector<16x8xf32> -> vector<16x8xf32>
      %1442 = arith.truncf %1441 : vector<16x8xf32> to vector<16x8xbf16>
      %c48 = arith.constant 48 : index
      %c0_587 = arith.constant 0 : index
      %1443 = vector.load %arg19[%c48, %c0_587] : memref<96x8xbf16, #tpu.memory_space<vmem>>, vector<16x8xbf16>
      tpu.vector_store %arg19[%c48, %c0_587], %1442 {strides = array<i32>} : memref<96x8xbf16, #tpu.memory_space<vmem>>, vector<16x8xbf16>,
      %1444 = arith.mulf %1432, %78 : vector<8x8xf32>
      %1445 = arith.subf %80, %1444 : vector<8x8xf32>
      %cst_588 = arith.constant dense<0.000000e+00> : vector<16x8xf32>
      %1446 = tpu.matmul %35, %1432, %cst_588 {dimension_numbers = #tpu.dot_dimension_numbers<[1], [0], [0], [1], [0, 0, 1, 1], [], []>} : vector<16x8xf32>, vector<8x8xf32>, vector<16x8xf32> -> vector<16x8xf32>
      %1447 = arith.truncf %1446 : vector<16x8xf32> to vector<16x8xbf16>
      %c16_589 = arith.constant 16 : index
      %c0_590 = arith.constant 0 : index
      %1448 = vector.load %arg19[%c16_589, %c0_590] : memref<96x8xbf16, #tpu.memory_space<vmem>>, vector<16x8xbf16>
      tpu.vector_store %arg19[%c16_589, %c0_590], %1447 {strides = array<i32>} : memref<96x8xbf16, #tpu.memory_space<vmem>>, vector<16x8xbf16>,
      %cst_591 = arith.constant dense<0.000000e+00> : vector<16x8xf32>
      %1449 = tpu.matmul %35, %1445, %cst_591 {dimension_numbers = #tpu.dot_dimension_numbers<[1], [0], [0], [1], [0, 0, 1, 1], [], []>} : vector<16x8xf32>, vector<8x8xf32>, vector<16x8xf32> -> vector<16x8xf32>
      %1450 = arith.truncf %1449 : vector<16x8xf32> to vector<16x8xbf16>
      %c64 = arith.constant 64 : index
      %c0_592 = arith.constant 0 : index
      %1451 = vector.load %arg19[%c64, %c0_592] : memref<96x8xbf16, #tpu.memory_space<vmem>>, vector<16x8xbf16>
      tpu.vector_store %arg19[%c64, %c0_592], %1450 {strides = array<i32>} : memref<96x8xbf16, #tpu.memory_space<vmem>>, vector<16x8xbf16>,
      %1452 = arith.mulf %1435, %93 : vector<8x8xf32>
      %1453 = arith.subf %95, %1452 : vector<8x8xf32>
      %cst_593 = arith.constant dense<0.000000e+00> : vector<16x8xf32>
      %1454 = tpu.matmul %35, %1435, %cst_593 {dimension_numbers = #tpu.dot_dimension_numbers<[1], [0], [0], [1], [0, 0, 1, 1], [], []>} : vector<16x8xf32>, vector<8x8xf32>, vector<16x8xf32> -> vector<16x8xf32>
      %1455 = arith.truncf %1454 : vector<16x8xf32> to vector<16x8xbf16>
      %c32 = arith.constant 32 : index
      %c0_594 = arith.constant 0 : index
      %1456 = vector.load %arg19[%c32, %c0_594] : memref<96x8xbf16, #tpu.memory_space<vmem>>, vector<16x8xbf16>
      tpu.vector_store %arg19[%c32, %c0_594], %1455 {strides = array<i32>} : memref<96x8xbf16, #tpu.memory_space<vmem>>, vector<16x8xbf16>,
      %cst_595 = arith.constant dense<0.000000e+00> : vector<16x8xf32>
      %1457 = tpu.matmul %35, %1453, %cst_595 {dimension_numbers = #tpu.dot_dimension_numbers<[1], [0], [0], [1], [0, 0, 1, 1], [], []>} : vector<16x8xf32>, vector<8x8xf32>, vector<16x8xf32> -> vector<16x8xf32>
      %1458 = arith.truncf %1457 : vector<16x8xf32> to vector<16x8xbf16>
      %c80 = arith.constant 80 : index
      %c0_596 = arith.constant 0 : index
      %1459 = vector.load %arg19[%c80, %c0_596] : memref<96x8xbf16, #tpu.memory_space<vmem>>, vector<16x8xbf16>
      tpu.vector_store %arg19[%c80, %c0_596], %1458 {strides = array<i32>} : memref<96x8xbf16, #tpu.memory_space<vmem>>, vector<16x8xbf16>,
    } else {
    }
    %c0 = arith.constant 0 : index
    %c0_1 = arith.constant 0 : index
    %3 = vector.load %arg19[%c0, %c0_1] : memref<96x8xbf16, #tpu.memory_space<vmem>>, vector<96x8xbf16>
    %c0_2 = arith.constant 0 : index
    %c0_3 = arith.constant 0 : index
    %4 = vector.load %arg9[%c0_2, %c0_3] : memref<8x128xbf16, #tpu.memory_space<vmem>>, vector<8x128xbf16>
    %cst = arith.constant dense<0.000000e+00> : vector<96x128xf32>
    %5 = tpu.matmul %3, %4, %cst {dimension_numbers = #tpu.dot_dimension_numbers<[1], [0], [0], [1], [0, 0, 1, 1], [], []>} : vector<96x8xbf16>, vector<8x128xbf16>, vector<96x128xf32> -> vector<96x128xf32>
    %6 = vector.extract_strided_slice %5 {offsets = [0, 0], sizes = [16, 128], strides = [1, 1]} : vector<96x128xf32> to vector<16x128xf32>
    %c0_4 = arith.constant 0 : index
    %c0_5 = arith.constant 0 : index
    %c0_6 = arith.constant 0 : index
    %c0_7 = arith.constant 0 : index
    %7 = vector.load %arg5[%c0_4, %c0_5, %c0_6, %c0_7] : memref<1x3x16x128xf32, #tpu.memory_space<vmem>>, vector<1x1x16x128xf32>
    %8 = vector.shape_cast %7 : vector<1x1x16x128xf32> to vector<16x128xf32>
    %9 = arith.mulf %6, %8 : vector<16x128xf32>
    %10 = vector.extract_strided_slice %5 {offsets = [48, 0], sizes = [16, 128], strides = [1, 1]} : vector<96x128xf32> to vector<16x128xf32>
    %11 = arith.addf %9, %10 : vector<16x128xf32>
    %c0_8 = arith.constant 0 : index
    %c0_9 = arith.constant 0 : index
    %c0_10 = arith.constant 0 : index
    %c0_11 = arith.constant 0 : index
    %12 = vector.load %arg18[%c0_8, %c0_9, %c0_10, %c0_11] : memref<1x3x16x128xf32, #tpu.memory_space<vmem>>, vector<1x1x16x128xf32>
    %13 = vector.shape_cast %12 : vector<1x1x16x128xf32> to vector<16x128xf32>
    %14 = vector.shape_cast %11 : vector<16x128xf32> to vector<1x1x16x128xf32>
    tpu.vector_store %arg18[%c0_8, %c0_9, %c0_10, %c0_11], %14 {strides = array<i32>} : memref<1x3x16x128xf32, #tpu.memory_space<vmem>>, vector<1x1x16x128xf32>,
    %15 = vector.extract_strided_slice %5 {offsets = [16, 0], sizes = [16, 128], strides = [1, 1]} : vector<96x128xf32> to vector<16x128xf32>
    %c0_12 = arith.constant 0 : index
    %c1 = arith.constant 1 : index
    %c0_13 = arith.constant 0 : index
    %c0_14 = arith.constant 0 : index
    %16 = vector.load %arg5[%c0_12, %c1, %c0_13, %c0_14] : memref<1x3x16x128xf32, #tpu.memory_space<vmem>>, vector<1x1x16x128xf32>
    %17 = vector.shape_cast %16 : vector<1x1x16x128xf32> to vector<16x128xf32>
    %18 = arith.mulf %15, %17 : vector<16x128xf32>
    %19 = vector.extract_strided_slice %5 {offsets = [64, 0], sizes = [16, 128], strides = [1, 1]} : vector<96x128xf32> to vector<16x128xf32>
    %20 = arith.addf %18, %19 : vector<16x128xf32>
    %c0_15 = arith.constant 0 : index
    %c1_16 = arith.constant 1 : index
    %c0_17 = arith.constant 0 : index
    %c0_18 = arith.constant 0 : index
    %21 = vector.load %arg18[%c0_15, %c1_16, %c0_17, %c0_18] : memref<1x3x16x128xf32, #tpu.memory_space<vmem>>, vector<1x1x16x128xf32>
    %22 = vector.shape_cast %21 : vector<1x1x16x128xf32> to vector<16x128xf32>
    %23 = vector.shape_cast %20 : vector<16x128xf32> to vector<1x1x16x128xf32>
    tpu.vector_store %arg18[%c0_15, %c1_16, %c0_17, %c0_18], %23 {strides = array<i32>} : memref<1x3x16x128xf32, #tpu.memory_space<vmem>>, vector<1x1x16x128xf32>,
    %24 = vector.extract_strided_slice %5 {offsets = [32, 0], sizes = [16, 128], strides = [1, 1]} : vector<96x128xf32> to vector<16x128xf32>
    %c0_19 = arith.constant 0 : index
    %c2 = arith.constant 2 : index
    %c0_20 = arith.constant 0 : index
    %c0_21 = arith.constant 0 : index
    %25 = vector.load %arg5[%c0_19, %c2, %c0_20, %c0_21] : memref<1x3x16x128xf32, #tpu.memory_space<vmem>>, vector<1x1x16x128xf32>
    %26 = vector.shape_cast %25 : vector<1x1x16x128xf32> to vector<16x128xf32>
    %27 = arith.mulf %24, %26 : vector<16x128xf32>
    %28 = vector.extract_strided_slice %5 {offsets = [80, 0], sizes = [16, 128], strides = [1, 1]} : vector<96x128xf32> to vector<16x128xf32>
    %29 = arith.addf %27, %28 : vector<16x128xf32>
    %c0_22 = arith.constant 0 : index
    %c2_23 = arith.constant 2 : index
    %c0_24 = arith.constant 0 : index
    %c0_25 = arith.constant 0 : index
    %30 = vector.load %arg18[%c0_22, %c2_23, %c0_24, %c0_25] : memref<1x3x16x128xf32, #tpu.memory_space<vmem>>, vector<1x1x16x128xf32>
    %31 = vector.shape_cast %30 : vector<1x1x16x128xf32> to vector<16x128xf32>
    %32 = vector.shape_cast %29 : vector<16x128xf32> to vector<1x1x16x128xf32>
    tpu.vector_store %arg18[%c0_22, %c2_23, %c0_24, %c0_25], %32 {strides = array<i32>} : memref<1x3x16x128xf32, #tpu.memory_space<vmem>>, vector<1x1x16x128xf32>,
    return
  }
  func.func @transform_0(%arg0: i32, %arg1: i32) -> (i32, i32, i32, i32) {
    %c0_i32 = arith.constant 0 : i32
    %c0_i32_0 = arith.constant 0 : i32
    %c0_i32_1 = arith.constant 0 : i32
    %c0_i32_2 = arith.constant 0 : i32
    return %arg0, %c0_i32, %c0_i32_0, %c0_i32_1 : i32, i32, i32, i32
  }
  func.func @transform_1(%arg0: i32, %arg1: i32) -> (i32, i32, i32, i32) {
    %c0_i32 = arith.constant 0 : i32
    %c0_i32_0 = arith.constant 0 : i32
    %c0_i32_1 = arith.constant 0 : i32
    %c0_i32_2 = arith.constant 0 : i32
    return %arg0, %c0_i32, %c0_i32_0, %c0_i32_1 : i32, i32, i32, i32
  }
  func.func @transform_2(%arg0: i32, %arg1: i32) -> (i32, i32, i32, i32) {
    %c0_i32 = arith.constant 0 : i32
    %c0_i32_0 = arith.constant 0 : i32
    %c0_i32_1 = arith.constant 0 : i32
    %c0_i32_2 = arith.constant 0 : i32
    return %arg0, %c0_i32, %c0_i32_0, %c0_i32_1 : i32, i32, i32, i32
  }
  func.func @transform_3(%arg0: i32, %arg1: i32) -> (i32, i32, i32, i32) {
    %c0_i32 = arith.constant 0 : i32
    %c0_i32_0 = arith.constant 0 : i32
    %c0_i32_1 = arith.constant 0 : i32
    return %arg0, %c0_i32, %c0_i32_0, %arg1 : i32, i32, i32, i32
  }
  func.func @transform_4(%arg0: i32, %arg1: i32) -> (i32, i32) {
    %c0_i32 = arith.constant 0 : i32
    %c0_i32_0 = arith.constant 0 : i32
    %c0_i32_1 = arith.constant 0 : i32
    return %c0_i32, %c0_i32_0 : i32, i32
  }
  func.func @transform_5(%arg0: i32, %arg1: i32) -> (i32, i32) {
    %c0_i32 = arith.constant 0 : i32
    %c0_i32_0 = arith.constant 0 : i32
    %c0_i32_1 = arith.constant 0 : i32
    return %c0_i32, %c0_i32_0 : i32, i32
  }
  func.func @transform_6(%arg0: i32, %arg1: i32) -> (i32, i32) {
    %c0_i32 = arith.constant 0 : i32
    %c0_i32_0 = arith.constant 0 : i32
    %c0_i32_1 = arith.constant 0 : i32
    return %c0_i32, %c0_i32_0 : i32, i32
  }
  func.func @transform_7(%arg0: i32, %arg1: i32) -> (i32, i32) {
    %c0_i32 = arith.constant 0 : i32
    %c0_i32_0 = arith.constant 0 : i32
    return %c0_i32, %arg1 : i32, i32
  }
  func.func @transform_8(%arg0: i32, %arg1: i32) -> (i32, i32) {
    %c0_i32 = arith.constant 0 : i32
    %c0_i32_0 = arith.constant 0 : i32
    %c0_i32_1 = arith.constant 0 : i32
    return %c0_i32, %c0_i32_0 : i32, i32
  }
  func.func @transform_9(%arg0: i32, %arg1: i32) -> i32 {
    %c0_i32 = arith.constant 0 : i32
    %c0_i32_0 = arith.constant 0 : i32
    return %c0_i32 : i32
  }
  func.func @transform_10(%arg0: i32, %arg1: i32) -> i32 {
    %c0_i32 = arith.constant 0 : i32
    %c0_i32_0 = arith.constant 0 : i32
    return %c0_i32 : i32
  }
  func.func @transform_11(%arg0: i32, %arg1: i32) -> (i32, i32) {
    %c0_i32 = arith.constant 0 : i32
    %c0_i32_0 = arith.constant 0 : i32
    %c0_i32_1 = arith.constant 0 : i32
    return %c0_i32, %c0_i32_0 : i32, i32
  }
  func.func @transform_12(%arg0: i32, %arg1: i32) -> i32 {
    %c0_i32 = arith.constant 0 : i32
    %c0_i32_0 = arith.constant 0 : i32
    return %c0_i32 : i32
  }
  func.func @transform_13(%arg0: i32, %arg1: i32) -> i32 {
    %c0_i32 = arith.constant 0 : i32
    %c0_i32_0 = arith.constant 0 : i32
    return %c0_i32 : i32
  }
  func.func @transform_14(%arg0: i32, %arg1: i32) -> (i32, i32) {
    %c0_i32 = arith.constant 0 : i32
    %c0_i32_0 = arith.constant 0 : i32
    %c0_i32_1 = arith.constant 0 : i32
    return %c0_i32, %c0_i32_0 : i32, i32
  }
  func.func @transform_15(%arg0: i32, %arg1: i32) -> i32 {
    %c0_i32 = arith.constant 0 : i32
    %c0_i32_0 = arith.constant 0 : i32
    return %c0_i32 : i32
  }
  func.func @transform_16(%arg0: i32, %arg1: i32) -> (i32, i32, i32, i32) {
    %c0_i32 = arith.constant 0 : i32
    %c0_i32_0 = arith.constant 0 : i32
    %c0_i32_1 = arith.constant 0 : i32
    return %arg0, %c0_i32, %c0_i32_0, %arg1 : i32, i32, i32, i32
  }
}

</mosaic_0001>

<bundles_post_ra>
// kernel: tpu_custom_call.1
= control target key start
LH: loop header
LB: loop body
LE: loop exit
PB: predicated region body
PF: predicated region fallthrough
CT: control target
= control target key end

     0   :  { %s7066_s0 = inlined_call_operand.hbm [shape: f32[2,3,8,8], index: 0, kind: input, shape index: {}]   ;;  %s7067_s1 = inlined_call_operand.hbm [shape: f32[2,3,8,8], index: 1, kind: input, shape index: {}]   ;;  %s7068_s2 = inlined_call_operand.hbm [shape: f32[2,8,8,8], index: 2, kind: input, shape index: {}]   ;;  %s7069_s3 = inlined_call_operand.hbm [shape: f32[2,3,16,128], index: 3, kind: input, shape index: {}]   ;;  %s7070_s4 = inlined_call_operand.vmem [shape: f32[8,8], index: 4, kind: input, shape index: {}]   ;;  %s7071_s5 = inlined_call_operand.vmem [shape: f32[8,8], index: 5, kind: input, shape index: {}]   ;;  %s7072_s6 = inlined_call_operand.vmem [shape: f32[16,8], index: 6, kind: input, shape index: {}]   ;;  %s7073_s7 = inlined_call_operand.hbm [shape: bf16[8,128], index: 7, kind: input, shape index: {}]   ;;  %s7074_s8 = inlined_call_operand.vmem [shape: f32[8,17], index: 8, kind: input, shape index: {}]   ;;  %s7075_s9 = inlined_call_operand.hbm [shape: f32[8], index: 9, kind: input, shape index: {}]   ;;  %s7076_s10 = inlined_call_operand.hbm [shape: f32[8], index: 10, kind: input, shape index: {}]   ;;  %s7077_s11 = inlined_call_operand.vmem [shape: f32[8,8], index: 11, kind: input, shape index: {}]   ;;  %s7078_s12 = inlined_call_operand.hbm [shape: f32[8], index: 12, kind: input, shape index: {}]   ;;  %s7079_s13 = inlined_call_operand.hbm [shape: f32[8], index: 13, kind: input, shape index: {}]   ;;  %s7080_s14 = inlined_call_operand.vmem [shape: f32[3,8], index: 14, kind: input, shape index: {}]   ;;  %s7081_s15 = inlined_call_operand.vmem [shape: f32[3], index: 15, kind: input, shape index: {}]   ;;  %s7082_s16 = inlined_call_operand.hbm [shape: f32[2,3,16,128], index: 16, kind: output, shape index: {}]  }
   0x1   :  { %7141 = sst [smem:[#allocation115_spill]] %s7066_s0 }
   0x2   :  { %7142 = sst [smem:[#allocation116_spill]] %s7067_s1 }
   0x3   :  { %7143 = sst [smem:[#allocation117_spill]] %s7068_s2 }
   0x4   :  { %7144 = sst [smem:[#allocation118_spill]] %s7069_s3 }
   0x5   :  { %7145 = sst [smem:[#allocation119_spill]] %s7070_s4 }
   0x6   :  { %7146 = sst [smem:[#allocation120_spill]] %s7071_s5 }
   0x7   :  { %7147 = sst [smem:[#allocation121_spill]] %s7072_s6 }
   0x8   :  { %7148 = sst [smem:[#allocation122_spill]] %s7073_s7 }
   0x9   :  { %7149 = sst [smem:[#allocation123_spill]] %s7074_s8 }
   0xa   :  { %7150 = sst [smem:[#allocation124_spill]] %s7075_s9 }
   0xb   :  { %7151 = sst [smem:[#allocation125_spill]] %s7076_s10 }
   0xc   :  { %7152 = sst [smem:[#allocation126_spill]] %s7077_s11 }
   0xd   :  { %7153 = sst [smem:[#allocation127_spill]] %s7078_s12 }
   0xe   :  { %7154 = sst [smem:[#allocation128_spill]] %s7079_s13 }
   0xf   :  { %7155 = sst [smem:[#allocation129_spill]] %s7080_s14 }
  0x10   :  { %7156 = sst [smem:[#allocation130_spill]] %s7081_s15 }
  0x11   :  { %7157 = sst [smem:[#allocation131_spill]] %s7082_s16 }
  0x12   :  { %21 = vsyncpa [#allocation4], 0 }
  0x13   :  { %23 = vsyncpa [#allocation4 + $0x1], 0 }
  0x14   :  { %24 = vsyncpa [#allocation9], 0 }
  0x15   :  { %26 = vsyncpa [#allocation9 + $0x1], 0 }
  0x16   :  { %27 = vsyncpa [#allocation12], 0 }
  0x17   :  { %29 = vsyncpa [#allocation12 + $0x1], 0 }
  0x18   :  { %30 = vsyncpa [#allocation7], 0 }
  0x19   :  { %31 = vsyncpa [#allocation6], 0 }
  0x1a   :  { %32 = vsyncpa [#allocation17], 0 }
  0x1b   :  { %33 = vsyncpa [#allocation19], 0 }
  0x1c   :  { %34 = vsyncpa [#allocation22], 0 }
  0x1d   :  { %35 = vsyncpa [#allocation25], 0 }
  0x1e   :  { %36 = vsyncpa [#allocation5], 0 }
  0x1f   :  { %38 = vsyncpa [#allocation5 + $0x1], 0  ;;  %s4694_s21 = smov 0   ;;  %s4696_s22 = smov 0  }
  0x20   :  { %s4698_s23 = smov 0   ;;  %s4700_s24 = smov 0  }
  0x21   :  { %s4702_s25 = smov 0   ;;  %s4704_s26 = smov 0  }
  0x22 LB: > { %7158 = sst [smem:[#allocation40_spill]] %s4574_s21  ;;  %s4725_s27 = sadd.s32 4294967295, %s4594_s26   ;;  %s4594_s26 = sphi %s4704_s26, %s44_s26   ;;  %s4590_s25 = sphi %s4702_s25, %s7419_s25   ;;  %s4586_s24 = sphi %s4700_s24, %s7418_s24   ;;  %s4582_s23 = sphi %s4698_s23, %s7417_s23   ;;  %s4578_s22 = sphi %s4696_s22, %s7416_s22   ;;  %s4574_s21 = sphi %s4694_s21, %s7415_s21  }
  0x23   : > { %7159 = sst [smem:[#allocation41_spill]] %s4578_s22  ;;  %p3494_p0 = scmp.ge.s32.totalorder %s4594_s26, 1 }
  0x24   : > { %7160 = sst [smem:[#allocation42_spill]] %s4582_s23  ;;  %p77_p1 = scmp.eq.s32.totalorder %s4725_s27, 0 }
  0x25   : > { %7161 = sst [smem:[#allocation43_spill]] %s4586_s24  ;;  %p452_p2 = scmp.lt.s32.totalorder %s4594_s26, 3 }
  0x26   : > { %7162 = sst [smem:[#allocation44_spill]] %s4590_s25  ;;  %s4596_s17 = smov [#allocation13]  }
  0x27   : > { %7163 = sst [smem:[#allocation45_spill]] %s4594_s26  ;;  %p4733_p3 = pnand %p3494_p0, %p452_p2 }
  0x28   : > { %7164 = sst [smem:[#allocation46_spill]] %s4725_s27  ;;  %s477_s18 = sshll.u32 %s4596_s17, 4  ;;  %s478_s18 = int_to_ptr.vmem [resolvable:$true] %s477_s18 }
  0x29   : > { %s7165_s7 = sld [smem:[#allocation122_spill]]  ;;  %p3998_p5 = pneg %p4733_p3 }
  0x2a   : > { %s7167_s10 = sld [smem:[#allocation125_spill]]  ;;  %s4597_s19 = smov [#allocation16]  }
  0x2b   : > { %p4745_p6 = pnand %p3998_p5, %p77_p1  ;;  %s7169_s11 = sld [smem:[#allocation126_spill]] }
  0x2c   : > { %s4598_s20 = smov [#allocation18]   ;;  %s56_s24 = sadd.s32 1, %s4590_s25 }
  0x2d   : > { %s63_s6 = sadd.s32 1, %s4582_s23  ;;  %p58_p7 = scmp.ge.s32.totalorder %s56_s24, 2 }
  0x2e   : > { %p70_p8 = scmp.ne.s32.totalorder %s4582_s23, %s4578_s22  ;;  %p71_p9 = scmp.eq.s32.totalorder %s4594_s26, 0 }
  0x2f   : > { %s475_s30 = sshll.u32 %s7165_s7, 4  ;;  %p76_p10 = scmp.ne.s32.totalorder %s4578_s22, %s4574_s21  ;;  %s476_s30 = int_to_ptr.hbm [resolvable:$true] %s475_s30 }
  0x30   : > { %s507_s28 = sshll.u32 %s7167_s10, 4  ;;  %s3493_s10 = sadd.s32 4294967294, %s4594_s26   ;;  %s508_s28 = int_to_ptr.hbm [resolvable:$true] %s507_s28 }
  0x31   : > { %s517_s16 = sshll.u32 %s7169_s11, 4  ;;  %s7421_s24 = smov (%p58_p7, %s56_s24), 0  ;;  %s518_s16 = int_to_ptr.vmem [resolvable:$true] %s517_s16 }
  0x32   : > { %4001 = dma.hbm_to_vmem [thread:$0]  (!%p4745_p6), %s476_s30, 64, %s478_s18, [#allocation12]  }
  0x33   : > { %4010 = dma.hbm_to_smem (!%p4745_p6), %s508_s28, 16, %s4597_s19, [#allocation17]  }
  0x34   : > { %4013 = dma.vmem_to_smem (!%p4745_p6), %s518_s16, 128, %s4598_s20, [#allocation19]  }
  0x35   : > { %7170 = sst [smem:[#allocation47_spill]] %s7421_s24  ;;  %p72_p11 = por %p71_p9, %p70_p8 }
  0x36   : > { %p4770_p12 = por %p77_p1, %p76_p10  ;;  %s60_s16 = ssub.s32 %s4590_s25, %s7421_s24 }
  0x37   : > { %p439_p13 = scmp.eq.s32.totalorder %s4725_s27, 1  ;;  %p61_p0 = scmp.eq.s32.totalorder %s60_s16, 0 }
  0x38   : > { %p445_p2 = scmp.eq.s32.totalorder %s3493_s10, 1  ;;  %p4052_p4 = scmp.lt.s32.totalorder %s4594_s26, 2 }
  0x39   : > { %p4777_p5 = por %p439_p13, %p70_p8  ;;  %s4790_s17 = sand.u32 1, %s4582_s23  }
  0x3a   : > { %s4783_s18 = scalar_select %p61_p0, %s4582_s23, %s63_s6  }
  0x3b   : > { %s7172_s30 = scalar_select %p4777_p5, 1, 0 }
  0x3c   : > { %7174 = sst [smem:[#allocation49_spill]] %s4783_s18  ;;  %p4785_p7 = por %p445_p2, %p76_p10 }
  0x3d   : > { %7173 = sst [smem:[#allocation48_spill]] %s7172_s30  ;;  %s7091_s19 = smul.u32 24, %s4790_s17 }
  0x3e   : > { %s7175_s28 = scalar_select %p4785_p7, 1, 0 }
  0x3f   : > { %p4793_p9 = pnand %p4052_p4, %p72_p11  ;;  %s7093_s10 = smul.u32 24, %s4590_s25 }
  0x40   : > { %7176 = sst [smem:[#allocation50_spill]] %s7175_s28  ;;  %s7092_s16 = sand.u32 1, %s4594_s26  }
  0x41   : > { %s7178_s1 = sld [smem:[#allocation116_spill]]  ;;  %s594_s23 = scalar_lea.vmem [#allocation8], %s7091_s19 }
  0x42   : > { %s602_s28 = sshll.u32 %s594_s23, 4  ;;  %s4808_s21 = scalar_lea.sflag [#allocation9], %s7092_s16  ;;  %s603_s28 = int_to_ptr.vmem [resolvable:$true] %s602_s28 }
  0x43   : > { %s7096_s30 = smov 128   ;;  %s7098_s4 = smov 8  }
  0x44   : > { %s7179_s8 = sld [smem:[#allocation123_spill]]  ;;  %s4601_s23 = smov [#allocation14]  }
  0x45   : > { %s7180_s9 = sld [smem:[#allocation124_spill]]  ;;  %s4604_s5 = smov [#allocation21]  }
  0x46   : > { %s7181_s12 = sld [smem:[#allocation127_spill]]  ;;  %s7185_s11 = smul.u32 24, %s4590_s25 }
  0x47   : > { %s599_s24 = scalar_lea.hbm %s7178_s1, %s7093_s10  ;;  %s7182_s13 = sld [smem:[#allocation128_spill]] }
  0x48   : > { %s600_s18 = sshll.u32 %s599_s24, 4  ;;  %s7183_s14 = sld [smem:[#allocation129_spill]]  ;;  %s601_s18 = int_to_ptr.hbm [resolvable:$true] %s600_s18 }
  0x49   : > { %4032 = dma.hbm_to_vmem [thread:$0]  (!%p4793_p9), %s601_s18, 384, %s603_s28, %s4808_s21, %s7096_s30, %s7096_s30, %s7098_s4  }
  0x4a   : > { %s487_s6 = sshll.u32 %s7179_s8, 4  ;;  %s4602_s18 = smov [#allocation15]   ;;  %s488_s6 = int_to_ptr.vmem [resolvable:$true] %s487_s6 }
  0x4b   : > { %4004 = dma.vmem_to_smem (!%p4745_p6), %s488_s6, 128, %s4601_s23, [#allocation7]  }
  0x4c   : > { %s497_s10 = sshll.u32 %s7180_s9, 4  ;;  %s527_s27 = sshll.u32 %s7181_s12, 4  ;;  %s498_s10 = int_to_ptr.hbm [resolvable:$true] %s497_s10  ;;  %s528_s27 = int_to_ptr.hbm [resolvable:$true] %s527_s27 }
  0x4d   : > { %4007 = dma.hbm_to_smem (!%p4745_p6), %s498_s10, 16, %s4602_s18, [#allocation6]  }
  0x4e   : > { %s4603_s28 = smov [#allocation20]   ;;  %s537_s19 = sshll.u32 %s7182_s13, 4  ;;  %s538_s19 = int_to_ptr.hbm [resolvable:$true] %s537_s19 }
  0x4f   : > { %4016 = dma.hbm_to_smem (!%p4745_p6), %s528_s27, 16, %s4603_s28, [#allocation17]  }
  0x50   : > { %s547_s1 = sshll.u32 %s7183_s14, 4  ;;  %s4605_s10 = smov [#allocation23]   ;;  %s548_s1 = int_to_ptr.vmem [resolvable:$true] %s547_s1 }
  0x51   : > { %4019 = dma.hbm_to_smem (!%p4745_p6), %s538_s19, 16, %s4604_s5, [#allocation22]  }
  0x52   : > { %4022 = dma.vmem_to_smem (!%p4745_p6), %s548_s1, 64, %s4605_s10, [#allocation19]  }
  0x53   : > { %s7184_s15 = sld [smem:[#allocation130_spill]]  ;;  %s4606_s28 = smov [#allocation24]  }
  0x54   : > { %s7186_s6 = sld [smem:[#allocation115_spill]]  ;;  %s7187_s5 = smul.u32 24, %s4790_s17 }
  0x55   : > { %s569_s10 = scalar_lea.sflag [#allocation4], %s4790_s17  ;;  %s7188_s27 = smov 8  }
  0x56   : > { %s572_s4 = scalar_lea.vmem [#allocation3], %s7187_s5  ;;  %s7189_s29 = smov 128  }
  0x57   : > { %s580_s1 = sshll.u32 %s572_s4, 4  ;;  %s3507_s23 = sshll.u32 %s4790_s17, 6  ;;  %s581_s1 = int_to_ptr.vmem [resolvable:$true] %s580_s1 }
  0x58   : > { %s7190_s2 = sld [smem:[#allocation117_spill]]  ;;  %s616_s16 = scalar_lea.vmem [#allocation10], %s3507_s23 }
  0x59   : > { %s557_s18 = sshll.u32 %s7184_s15, 4  ;;  %s3879_s4 = smul.u32 48, %s4790_s17  ;;  %s558_s18 = int_to_ptr.vmem [resolvable:$true] %s557_s18 }
  0x5a   : > { %4025 = dma.vmem_to_smem (!%p4745_p6), %s558_s18, 16, %s4606_s28, [#allocation25]  }
  0x5b   : > { %s577_s30 = scalar_lea.hbm %s7186_s6, %s7185_s11  ;;  %s3866_s18 = sshll.u32 %s4590_s25, 6 }
  0x5c   : > { %s578_s19 = sshll.u32 %s577_s30, 4  ;;  %s624_s6 = sshll.u32 %s616_s16, 4  ;;  %s579_s19 = int_to_ptr.hbm [resolvable:$true] %s578_s19  ;;  %s625_s6 = int_to_ptr.vmem [resolvable:$true] %s624_s6 }
  0x5d   : > { %4029 = dma.hbm_to_vmem [thread:$0]  (!%p4793_p9), %s579_s19, 384, %s581_s1, %s569_s10, %s7189_s29, %s7189_s29, %s7188_s27  }
  0x5e   : > { %s621_s30 = scalar_lea.hbm %s7190_s2, %s3866_s18  ;;  %s3880_s19 = smul.u32 48, %s4590_s25 }
  0x5f   : > { %s622_s24 = sshll.u32 %s621_s30, 4  ;;  %s7191_s3 = sld [smem:[#allocation118_spill]]  ;;  %s623_s24 = int_to_ptr.hbm [resolvable:$true] %s622_s24 }
  0x60   : > { %4035 = dma.hbm_to_vmem [thread:$0]  (!%p4793_p9), %s623_s24, 1024, %s625_s6, %s4808_s21, %s7189_s29, %s7189_s29, %s7188_s27  }
  0x61   : > { %s638_s28 = scalar_lea.vmem [#allocation11], %s3879_s4  ;;  %s7192_s23 = sand.u32 1, %s4594_s26  }
  0x62   : > { %s647_s11 = sshll.u32 %s638_s28, 4  ;;  %s635_s30 = scalar_lea.sflag [#allocation12], %s7192_s23  ;;  %s648_s11 = int_to_ptr.vmem [resolvable:$true] %s647_s11 }
  0x63   : > { %659 = sbr.rel (%p4733_p3) target bundleno = 1642 (0x66a), region = 84 }
  0x65   : > { %s644_s10 = scalar_lea.hbm %s7191_s3, %s3880_s19 }
  0x66   : > { %s645_s18 = sshll.u32 %s644_s10, 4  ;;  %s646_s18 = int_to_ptr.hbm [resolvable:$true] %s645_s18 }
  0x67   : > { %4038 = dma.hbm_to_vmem [thread:$0]  (!%p4793_p9), %s646_s18, 768, %s648_s11, %s635_s30, %s7189_s29, %s7189_s29, %s7188_s27  }
  0x68   : > { %s4885_s21 = sand.u32 1, %s4578_s22  }
  0x69   : > { %7193 = sst [smem:[#allocation51_spill]] %s4885_s21  ;;  %s3881_s17 = smul.u32 24, %s4885_s21 }
  0x6a   : > { %s662_s24 = scalar_lea.sflag [#allocation4], %s4885_s21 }
  0x6b   : > { %s4889_s16 = scalar_lea.vmem [#allocation3], %s3881_s17 }
  0x6c   : > { %4521 = dma.done.wait (%p4770_p12), %s662_s24, 384  }
  0x6d   : > { %4523 = vsyncadd (%p4770_p12), %s662_s24, 4294966912  ;;  %s7194_s20 = sld [smem:[#allocation46_spill]]  ;;  %s4896_s29 = scalar_lea.vmem [#allocation8], %s3881_s17 }
  0x73   : > { %s671_s27 = sand.u32 1, %s7194_s20  }
  0x74   : > { %s672_s0 = scalar_lea.sflag [#allocation9], %s671_s27 }
  0x75   : > { %4525 = dma.done.wait (%p4770_p12), %s672_s0, 1408  }
  0x76   : > { %4527 = vsyncadd (%p4770_p12), %s672_s0, 4294965888  ;;  %s3512_s6 = sshll.u32 %s4885_s21, 6  ;;  %s7100_s4 = smul.u32 48, %s4885_s21 }
  0x77   : > { %s4904_s19 = scalar_lea.vmem [#allocation10], %s3512_s6  ;;  %s692_s5 = scalar_lea.sflag [#allocation12], %s671_s27 }
  0x78   : > { %7195 = sst [smem:[#allocation52_spill]] %s4904_s19  ;;  %s4908_s1 = scalar_lea.vmem [#allocation11], %s7100_s4 }
  0x79   : > { %7196 = sst [smem:[#allocation53_spill]] %s4908_s1 }
  0x7a   : > { %4529 = dma.done.wait (%p4770_p12), %s692_s5, 768  }
  0x7b   : > { %4531 = vsyncadd (%p4770_p12), %s692_s5, 4294966528 }
  0x7c   : > { %4533 = dma.done.wait (%p77_p1), [#allocation12], 64  }
  0x7d   : > { %4535 = vsyncadd (%p77_p1), [#allocation12], 4294967232 }
  0x7e   : > { %4537 = dma.done.wait (%p77_p1), [#allocation7], 128  }
  0x7f   : > { %4539 = vsyncadd (%p77_p1), [#allocation7], 4294967168 }
  0x80   : > { %4541 = dma.done.wait (%p77_p1), [#allocation6], 16  }
  0x81   : > { %4543 = vsyncadd (%p77_p1), [#allocation6], 4294967280 }
  0x82   : > { %4545 = dma.done.wait (%p77_p1), [#allocation17], 16  }
  0x83   : > { %4547 = vsyncadd (%p77_p1), [#allocation17], 4294967280 }
  0x84   : > { %4549 = dma.done.wait (%p77_p1), [#allocation19], 128  }
  0x85   : > { %4551 = vsyncadd (%p77_p1), [#allocation19], 4294967168 }
  0x86   : > { %4553 = dma.done.wait (%p77_p1), [#allocation17], 16  }
  0x87   : > { %4555 = vsyncadd (%p77_p1), [#allocation17], 4294967280 }
  0x88   : > { %4557 = dma.done.wait (%p77_p1), [#allocation22], 16  }
  0x89   : > { %4559 = vsyncadd (%p77_p1), [#allocation22], 4294967280 }
  0x8a   : > { %4561 = dma.done.wait (%p77_p1), [#allocation19], 64  }
  0x8b   : > { %4563 = vsyncadd (%p77_p1), [#allocation19], 4294967232 }
  0x8c   : > { %4565 = dma.done.wait (%p77_p1), [#allocation25], 16  }
  0x8d   : > { %4567 = vsyncadd (%p77_p1), [#allocation25], 4294967280 }
  0x8e   : > { %746 = sfence }
  0x8f   : > { %s7197_s28 = sld [smem:[#allocation120_spill]]  ;;  %v815_v1 = vld [vmem:[%s4889_s16] sm:$0xff]  ;;  %vm835_vm0 = vcmask 64512   ;;  %v818_v2 = vld [vmem:[%s4896_s29] sm:$0xff]  ;;  %v816_v5 = vld [vmem:[%s4889_s16 + $0x8] sm:$0xff] }
  0x90   : > { %v829_v3 = vmul.f32 %v818_v2, %v815_v1  ;;  %v830_v4 = vmul.f32 %v815_v1, %v815_v1  ;;  %v819_v6 = vld [vmem:[%s4896_s29 + $0x8] sm:$0xff]  ;;  %v832_v8 = vmul.f32 %v816_v5, %v816_v5  ;;  %v817_v9 = vld [vmem:[%s4889_s16 + $0x10] sm:$0xff]  ;;  %v820_v10 = vld [vmem:[%s4896_s29 + $0x10] sm:$0xff]  ;;  %s7198_s23 = sld [smem:[#allocation119_spill]] }
  0x91   : > { %v831_v7 = vmul.f32 %v819_v6, %v816_v5  ;;  %v833_v11 = vmul.f32 %v820_v10, %v817_v9  ;;  %v834_v12 = vmul.f32 %v817_v9, %v817_v9  ;;  %s4986_s30 = sld [smem:[#allocation14 + $0x103]] }
  0x92   : > { %s4988_s17 = sld [smem:[#allocation14 + $0x83]] }
  0x93   : > { %s4990_s24 = sld [smem:[#allocation14 + $0x100]] }
  0x94   : > { %s4992_s16 = sld [smem:[#allocation14 + $0x101]] }
  0x95   : > { %v812_v0 = vld [vmem:[%s7197_s28] sm:$0xff]  ;;  %s4994_s20 = sld [smem:[#allocation14 + $0x80]] }
  0x96   : > { %887 = vmatpush.msra.mxu0 %v812_v0  ;;  %v811_v15 = vld [vmem:[%s7198_s23] sm:$0xff]  ;;  %s4996_s27 = sld [smem:[#allocation14 + $0x81]] }
  0x97   : > { %3522 = vmatmul.msk.f32.vlgmr.msra.gmra.mxu0 %vm835_vm0, %v815_v1  ;;  %s4998_s0 = sld [smem:[#allocation14]]  ;;  %v1335_v42 = vstv %s4986_s30 }
  0x98   : > { %s5000_s29 = sld [smem:[#allocation14 + $0x1]]  ;;  %v1268_v43 = vstv %s4988_s17 }
  0x99   : > { %s5002_s6 = sld [smem:[#allocation14 + $0x3]]  ;;  %v1324_v46 = vstv %s4990_s24 }
  0x9a   : > { %s5004_s5 = sld [smem:[#allocation14 + $0x200]]  ;;  %v1327_v55 = vstv %s4992_s16 }
  0x9b   : > { %s5006_s7 = sld [smem:[#allocation14 + $0x104]]  ;;  %v1257_v47 = vstv %s4994_s20 }
  0x9c   : > { %s5008_s10 = sld [smem:[#allocation14 + $0x84]]  ;;  %v1260_v59 = vstv %s4996_s27 }
  0x9d   : > { %s5010_s28 = sld [smem:[#allocation14 + $0x4]]  ;;  %v1190_v48 = vstv %s4998_s0 }
  0x9e   : > { %s5012_s11 = sld [smem:[#allocation14 + $0x201]]  ;;  %v1193_v62 = vstv %s5000_s29 }
  0x9f   : > { %3523 = vmatmul.msk.f32.gmra.mxu0 %vm835_vm0, %v818_v2  ;;  %s5014_s18 = sld [smem:[#allocation14 + $0x203]]  ;;  %v1201_v44 = vstv %s5002_s6 }
  0xa0   : > { %s5016_s23 = sld [smem:[#allocation14 + $0x204]]  ;;  %v1458_v56 = vstv %s5004_s5 }
  0xa1   : > { %s5018_s4 = sld [smem:[#allocation14 + $0x280]]  ;;  %v1339_v61 = vstv %s5006_s7 }
  0xa2   : > { %s5020_s2 = sld [smem:[#allocation14 + $0x281]]  ;;  %v1272_v2 = vstv %s5008_s10 }
  0xa3   : > { %s5022_s3 = sld [smem:[#allocation14 + $0x105]] }
  0xa4   : > { %s5026_s8 = sld [smem:[#allocation14 + $0x106]] }
  0xa5   : > { %s5028_s9 = sld [smem:[#allocation14 + $0x85]]  ;;  %v1469_v57 = vstv %s5014_s18 }
  0xa6   : > { %s5030_s12 = sld [smem:[#allocation14 + $0x86]] }
  0xa7   : > { %3524 = vmatmul.msk.f32.gmra.mxu0 %vm835_vm0, %v829_v3  ;;  %s5032_s13 = sld [smem:[#allocation14 + $0x5]]  ;;  %v1525_v63 = vstv %s5018_s4 }
  0xa8   : > { %s5034_s14 = sld [smem:[#allocation14 + $0x6]] }
  0xa9   : > { %7199 = sst [smem:[#allocation54_spill]] %s5022_s3 }
  0xaa   : > { %s5036_s15 = sld [smem:[#allocation14 + $0x205]] }
  0xab   : > { %7201 = sst [smem:[#allocation56_spill]] %s5028_s9 }
  0xac   : > { %s5038_s25 = sld [smem:[#allocation14 + $0x107]] }
  0xad   : > { %7202 = sst [smem:[#allocation57_spill]] %s5032_s13 }
  0xae   : > { %s5040_s22 = sld [smem:[#allocation14 + $0x87]] }
  0xaf   : > { %3525 = vmatmul.msk.f32.gmra.mxu0 %vm835_vm0, %v830_v4  ;;  %s5044_s26 = sld [smem:[#allocation14 + $0x7]]  ;;  %v1461_v4 = vstv %s5012_s11 }
  0xb0   : > { %7203 = sst [smem:[#allocation58_spill]] %s5036_s15 }
  0xb1   : > { %s5048_s21 = sld [smem:[#allocation14 + $0x206]] }
  0xb2   : > { %7204 = sst [smem:[#allocation59_spill]] %s5038_s25 }
  0xb3   : > { %s5050_s1 = sld [smem:[#allocation14 + $0x207]] }
  0xb4   : > { %7205 = sst [smem:[#allocation60_spill]] %s5040_s22 }
  0xb5   : > { %7207 = sst [smem:[#allocation62_spill]] %s5044_s26 }
  0xb6   : > { %s5052_s19 = sld [smem:[#allocation14 + $0x283]] }
  0xb7   : > { %3526 = vmatmul.msk.f32.gmra.mxu0 %vm835_vm0, %v816_v5  ;;  %7208 = sst [smem:[#allocation63_spill]] %s5048_s21  ;;  %v1205_v5 = vstv %s5010_s28 }
  0xb8   : > { %s5054_s13 = sld [smem:[#allocation14 + $0x284]] }
  0xb9   : > { %7209 = sst [smem:[#allocation64_spill]] %s5050_s1 }
  0xba   : > { %s5056_s25 = sld [smem:[#allocation14 + $0x285]] }
  0xbb   : > { %s5058_s22 = sld [smem:[#allocation14 + $0x108]] }
  0xbc   : > { %s5060_s15 = sld [smem:[#allocation14 + $0x88]]  ;;  %v1536_v0 = vstv %s5052_s19 }
  0xbd   : > { %s5062_s26 = sld [smem:[#allocation14 + $0x102]] }
  0xbe   : > { %s5064_s9 = sld [smem:[#allocation14 + $0x82]] }
  0xbf   : > { %3527 = vmatmul.msk.f32.gmra.mxu0 %vm835_vm0, %v819_v6  ;;  %s5068_s21 = sld [smem:[#allocation14 + $0x2]] }
  0xc0   : > { %7210 = sst [smem:[#allocation65_spill]] %s5056_s25 }
  0xc1   : > { %7211 = sst [smem:[#allocation66_spill]] %s5058_s22 }
  0xc2   : > { %7212 = sst [smem:[#allocation67_spill]] %s5060_s15 }
  0xc3   : > { %7213 = sst [smem:[#allocation68_spill]] %s5062_s26 }
  0xc4   : > { %7214 = sst [smem:[#allocation69_spill]] %s5064_s9 }
  0xc5   : > { %7216 = sst [smem:[#allocation71_spill]] %s5068_s21 }
  0xc6   : > { %s5070_s1 = sld [smem:[#allocation14 + $0x8]] }
  0xc7   : > { %3528 = vmatmul.msk.f32.gmra.mxu0 %vm835_vm0, %v831_v7  ;;  %s5072_s3 = sld [smem:[#allocation14 + $0x202]]  ;;  %v1473_v7 = vstv %s5016_s23 }
  0xc8   : > { %s5074_s25 = sld [smem:[#allocation14 + $0x208]] }
  0xc9   : > { %s5078_s15 = sld [smem:[#allocation14 + $0x282]] }
  0xca   : > { %s5080_s26 = sld [smem:[#allocation14 + $0x286]] }
  0xcb   : > { %s5082_s9 = sld [smem:[#allocation14 + $0x287]] }
  0xcc   : > { %7217 = sst [smem:[#allocation72_spill]] %s5070_s1 }
  0xcd   : > { %7218 = sst [smem:[#allocation73_spill]] %s5072_s3 }
  0xce   : > { %7219 = sst [smem:[#allocation74_spill]] %s5074_s25 }
  0xcf   : > { %3529 = vmatmul.msk.f32.gmra.mxu0 %vm835_vm0, %v832_v8  ;;  %7220 = sst [smem:[#allocation75_spill]] %s5078_s15  ;;  %v1540_v8 = vstv %s5054_s13 }
  0xd0   : > { %7221 = sst [smem:[#allocation76_spill]] %s5080_s26 }
  0xd1   : > { %7222 = sst [smem:[#allocation77_spill]] %s5082_s9 }
  0xd2   : > { %s5086_s21 = sld [smem:[#allocation14 + $0x180]] }
  0xd3   : > { %s5090_s25 = sld [smem:[#allocation14 + $0x181]] }
  0xd4   : > { %s5094_s15 = sld [smem:[#allocation14 + $0x183]] }
  0xd5   : > { %s5096_s26 = sld [smem:[#allocation14 + $0x184]] }
  0xd6   : > { %s5098_s9 = sld [smem:[#allocation14 + $0x185]] }
  0xd7   : > { %3530 = vmatmul.msk.f32.gmra.mxu0 %vm835_vm0, %v817_v9  ;;  %s5107_s3 = sld [smem:[#allocation14 + $0x109]] }
  0xd8   : > { %s5112_s1 = sld [smem:[#allocation14 + $0x89]] }
  0xd9   : > { %s5114_s22 = sld [smem:[#allocation14 + $0x10a]] }
  0xda   : > { %s5126_s30 = sld [smem:[#allocation14 + $0x8a]] }
  0xdb   : > { %s5135_s17 = sld [smem:[#allocation14 + $0x10b]] }
  0xdc   : > { %s5143_s24 = sld [smem:[#allocation14 + $0x8b]] }
  0xdd   : > { %s5149_s20 = sld [smem:[#allocation14 + $0x10c]] }
  0xde   : > { %s5157_s0 = sld [smem:[#allocation14 + $0x8c]] }
  0xdf   : > { %3531 = vmatmul.msk.f32.gmra.mxu0 %vm835_vm0, %v820_v10  ;;  %s5163_s6 = sld [smem:[#allocation14 + $0x10d]] }
  0xe0   : > { %s7228_s5 = sld [smem:[#allocation54_spill]] }
  0xe1   : > { %s5174_s4 = sld [smem:[#allocation14 + $0x8d]] }
  0xe2   : > { %s7230_s19 = sld [smem:[#allocation56_spill]] }
  0xe3   : > { %s7231_s7 = sld [smem:[#allocation63_spill]] }
  0xe4   : > { %s5184_s10 = sld [smem:[#allocation14 + $0x10e]] }
  0xe5   : > { %s7233_s13 = sld [smem:[#allocation57_spill]] }
  0xe6   : > { %s5194_s28 = sld [smem:[#allocation14 + $0x8e]] }
  0xe7   : > { %3532 = vmatmul.msk.f32.gmra.mxu0 %vm835_vm0, %v833_v11  ;;  %7229 = sst [smem:[#allocation54_spill]] %s5174_s4  ;;  %v1528_v11 = vstv %s5020_s2 }
  0xe8   : > { %s7236_s2 = sld [smem:[#allocation58_spill]] }
  0xe9   : > { %s5217_s18 = sld [smem:[#allocation14 + $0x8f]] }
  0xea   : > { %7232 = sst [smem:[#allocation56_spill]] %s5184_s10 }
  0xeb   : > { %s7241_s23 = sld [smem:[#allocation60_spill]] }
  0xec   : > { %7235 = sst [smem:[#allocation63_spill]] %s5194_s28 }
  0xed   : > { %s5244_s4 = sld [smem:[#allocation14 + $0x301]] }
  0xee   : > { %s7257_s16 = sld [smem:[#allocation75_spill]] }
  0xef   : > { %3533 = vmatmul.msk.f32.gmra.mxu0 %vm835_vm0, %v834_v12  ;;  %7240 = sst [smem:[#allocation58_spill]] %s5217_s18 }
  0xf0   : > { %s5234_s18 = sld [smem:[#allocation14 + $0x300]] }
  0xf1   : > { %s7258_s28 = sld [smem:[#allocation76_spill]] }
  0xf2   : > { %s5292_s27 = sld [smem:[#allocation14 + $0x186]] }
  0xf3   : > { %s5294_s10 = sld [smem:[#allocation14 + $0x90]] }
  0xf4   : > { %s5307_s29 = sld [smem:[#allocation14 + $0xb]] }
  0xf5   : > { %s7259_s11 = sld [smem:[#allocation77_spill]] }
 0x114   : > { %v889_v13 = vpop.f32.mrf.mxu0 }
 0x115   : > { %943 = vmatpush.msra.mxu1 %v889_v13  ;;  %v1347_v13 = vstv %s5026_s8  ;;  %s7252_s8 = sld [smem:[#allocation69_spill]] }
 0x116   : > { %3534 = vmatmul.msk.f32.vlgmr.msra.gmra.mxu1 %vm835_vm0, %v811_v15 }
 0x11c   : > { %v892_v14 = vpop.f32.mrf.mxu0 }
 0x11d   : > { %963 = vmatpush.msra.mxu2 %v892_v14 }
 0x11e   : > { %3535 = vmatmul.msk.f32.vlgmr.msra.gmra.mxu2 %vm835_vm0, %v811_v15 }
 0x124   : > { %v895_v16 = vpop.f32.mrf.mxu0 }
 0x125   : > { %983 = vmatpush.msra.mxu3 %v895_v16  ;;  %v1213_v16 = vstv %s5034_s14  ;;  %s7239_s14 = sld [smem:[#allocation59_spill]] }
 0x126   : > { %3536 = vmatmul.msk.f32.vlgmr.msra.gmra.mxu3 %vm835_vm0, %v811_v15 }
 0x12c   : > { %v898_v17 = vpop.f32.mrf.mxu0 }
 0x12d   : > { %1003 = vmatpush.msrb.mxu1 %v898_v17 }
 0x12e   : > { %3537 = vmatmul.msk.f32.vlgmr.msrb.gmra.mxu1 %vm835_vm0, %v811_v15 }
 0x134   : > { %v901_v18 = vpop.f32.mrf.mxu0 }
 0x135   : > { %1029 = vmatpush.msrb.mxu2 %v901_v18  ;;  %v1343_v18 = vstv %s7228_s5  ;;  %s5430_s5 = sld [smem:[#allocation14 + $0x20d]] }
 0x136   : > { %3538 = vmatmul.msk.f32.vlgmr.msrb.gmra.mxu2 %vm835_vm0, %v811_v15 }
 0x13c   : > { %v904_v19 = vpop.f32.mrf.mxu0 }
 0x13d   : > { %1049 = vmatpush.msrb.mxu3 %v904_v19 }
 0x13e   : > { %3539 = vmatmul.msk.f32.vlgmr.msrb.gmra.mxu3 %vm835_vm0, %v811_v15 }
 0x144   : > { %v907_v20 = vpop.f32.mrf.mxu0 }
 0x145   : > { %1069 = vmatpush.msra.mxu1 %v907_v20 }
 0x146   : > { %3540 = vmatmul.msk.f32.vlgmr.msra.gmra.mxu1 %vm835_vm0, %v811_v15 }
 0x14c   : > { %v910_v21 = vpop.f32.mrf.mxu0 }
 0x14d   : > { %1089 = vmatpush.msra.mxu2 %v910_v21 }
 0x14e   : > { %3541 = vmatmul.msk.f32.vlgmr.msra.gmra.mxu2 %vm835_vm0, %v811_v15 }
 0x154   : > { %v913_v22 = vpop.f32.mrf.mxu0 }
 0x155   : > { %1115 = vmatpush.msra.mxu3 %v913_v22  ;;  %v1276_v22 = vstv %s7230_s19  ;;  %s7269_s19 = sld [smem:[#allocation63_spill]] }
 0x156   : > { %3542 = vmatmul.msk.f32.vlgmr.msra.gmra.mxu3 %vm835_vm0, %v811_v15 }
 0x15c   : > { %v916_v23 = vpop.f32.mrf.mxu0 }
 0x15d   : > { %1135 = vmatpush.msrb.mxu1 %v916_v23  ;;  %v1481_v23 = vstv %s7231_s7  ;;  %s7242_s7 = sld [smem:[#allocation62_spill]] }
 0x15e   : > { %3543 = vmatmul.msk.f32.vlgmr.msrb.gmra.mxu1 %vm835_vm0, %v811_v15 }
 0x164   : > { %v919_v24 = vpop.f32.mrf.mxu0 }
 0x165   : > { %1155 = vmatpush.msrb.mxu2 %v919_v24  ;;  %v1391_v24 = vstv %s5086_s21  ;;  %s5284_s21 = sld [smem:[#allocation14 + $0xa]] }
 0x166   : > { %3544 = vmatmul.msk.f32.vlgmr.msrb.gmra.mxu2 %vm835_vm0, %v811_v15 }
 0x16c   : > { %v922_v25 = vpop.f32.mrf.mxu0 }
 0x16d   : > { %1175 = vmatpush.msrb.mxu3 %v922_v25  ;;  %v1402_v25 = vstv %s5094_s15  ;;  %s7244_s15 = sld [smem:[#allocation64_spill]] }
 0x16e   : > { %3545 = vmatmul.msk.f32.vlgmr.msrb.gmra.mxu3 %vm835_vm0, %v811_v15  ;;  %v1280_v15 = vstv %s5030_s12  ;;  %s5205_s12 = sld [smem:[#allocation14 + $0x10f]] }
 0x174   : > { %7238 = sst [smem:[#allocation57_spill]] %s5205_s12 }
 0x175   : > { %s7248_s12 = sld [smem:[#allocation68_spill]] }
 0x193   : > { %v5024_v26 = vpop.f32.mrf.mxu1 }
 0x194   : > { %7200 = vst [vmem:[#allocation55_spill] sm:$0xff] %v5024_v26  ;;  %v1010_v28 = vmul.f32 %v5024_v26, %v5024_v26 }
 0x1a1   : > { %v5042_v27 = vpop.f32.mrf.mxu2 }
 0x1a2   : > { %7206 = vst [vmem:[#allocation61_spill] sm:$0xff] %v5042_v27  ;;  %v1008_v34 = vmul.f32 %v5042_v27, %v5024_v26 }
 0x1a9   : > { %v985_v33 = vpop.f32.mrf.mxu3 }
 0x1aa   : > { %v5088_v36 = vsub.f32 %v985_v33, %v1008_v34 }
 0x1ab   : > { %v1005_v29 = vpop.f32.mrf.mxu1 }
 0x1ac   : > { %v1011_v30 = vsub.f32 %v1005_v29, %v1010_v28  ;;  %7223 = vst [vmem:[#allocation78_spill] sm:$0xff] %v5088_v36  ;;  %v5121_v50 = vmul.f32 %v1335_v42, %v5088_v36  ;;  %v5124_v51 = vmul.f32 %v1268_v43, %v5088_v36  ;;  %v5129_v52 = vmul.f32 %v1201_v44, %v5088_v36 }
 0x1ad   : > { %v5167_v6 = vmul.f32 %v1469_v57, %v5088_v36  ;;  %v5181_v12 = vmul.f32 %v1536_v0, %v5088_v36  ;;  %v1406_v42 = vstv %s5096_s26  ;;  %s5247_s26 = sld [smem:[#allocation14 + $0x110]] }
 0x1ae   : > { %v1012_v31 = vadd.f32 1e-05, %v1011_v30  ;;  %v1209_v30 = vstv %s7233_s13  ;;  %s5457_s13 = sld [smem:[#allocation14 + $0x20f]] }
 0x1b0   : > { %4124 = vrcp.f32 %v1012_v31 }
 0x1b6   : > { %v5092_v37 = vpop.eup %4124 }
 0x1b7   : > { %7224 = vst [vmem:[#allocation79_spill] sm:$0xff] %v5092_v37  ;;  %v5104_v41 = vmul.f32 %v5092_v37, %v5088_v36  ;;  %v5212_v28 = vmul.f32 %v5092_v37, %v1347_v13  ;;  %v5215_v29 = vmul.f32 %v5092_v37, %v1280_v15  ;;  %v5221_v31 = vmul.f32 %v5092_v37, %v1213_v16 }
 0x1b8   : > { %v5237_v43 = vmul.f32 %v5092_v37, %v1481_v23 }
 0x1b9   : > { %v5066_v32 = vpop.f32.mrf.mxu2  ;;  %7226 = vst [vmem:[#allocation81_spill] sm:$0xff] %v5104_v41  ;;  %v5132_v54 = vmul.f32 %v1324_v46, %v5104_v41  ;;  %v5140_v58 = vmul.f32 %v1257_v47, %v5104_v41  ;;  %v5146_v60 = vmul.f32 %v1190_v48, %v5104_v41  ;;  %v5160_v3 = vmul.f32 %v1458_v56, %v5104_v41 }
 0x1ba   : > { %7215 = vst [vmem:[#allocation70_spill] sm:$0xff] %v5066_v32  ;;  %v1096_v35 = vmul.f32 %v5066_v32, %v5066_v32  ;;  %v5177_v10 = vmul.f32 %v1525_v63, %v5104_v41  ;;  %v1392_v44 = vmul.f32 %v1391_v24, %v5104_v41  ;;  %v5242_v46 = vmul.f32 %v1402_v25, %v5088_v36 }
 0x1bb   : > { %v1351_v47 = vstv %s7239_s14  ;;  %v1284_v48 = vstv %s7241_s23  ;;  %s5262_s14 = sld [smem:[#allocation14 + $0x303]]  ;;  %v1312_v36 = vstv %s7269_s19 }
 0x1bc   : > { %7251 = vst [vmem:[#allocation87_spill] sm:$0xff] %v5242_v46  ;;  %s5318_s23 = sld [smem:[#allocation14 + $0xc]]  ;;  %v7305_v46 = vstv %s7257_s16 }
 0x1bd   : > { %s5589_s16 = sld [smem:[#allocation14 + $0x28e]] }
 0x1be   : > { %s5688_s19 = sld [smem:[#allocation14 + $0x18d]] }
 0x1c1   : > { %v5100_v40 = vpop.f32.mrf.mxu3 }
 0x1c2   : > { %7225 = vst [vmem:[#allocation80_spill] sm:$0xff] %v5100_v40  ;;  %v1094_v49 = vmul.f32 %v5100_v40, %v5066_v32  ;;  %v1304_v40 = vstv %s5157_s0  ;;  %v1237_v26 = vstv %s5318_s23  ;;  %s7271_s0 = sld [smem:[#allocation57_spill]] }
 0x1c3   : > { %v1071_v53 = vpop.f32.mrf.mxu1  ;;  %s7289_s23 = sld [smem:[#allocation66_spill]] }
 0x1c4   : > { %v5154_v1 = vsub.f32 %v1071_v53, %v1094_v49  ;;  %v1217_v49 = vstv %s7242_s7  ;;  %v1485_v53 = vstv %s7244_s15  ;;  %s5270_s7 = sld [smem:[#allocation14 + $0x9]] }
 0x1c5   : > { %s5333_s15 = sld [smem:[#allocation14 + $0xd]] }
 0x1c6   : > { %7227 = vst [vmem:[#allocation82_spill] sm:$0xff] %v5154_v1  ;;  %v5172_v9 = vmul.f32 %v1339_v61, %v5154_v1  ;;  %v5187_v14 = vmul.f32 %v1272_v2, %v5154_v1  ;;  %v5197_v19 = vmul.f32 %v1205_v5, %v5154_v1  ;;  %v5200_v20 = vmul.f32 %v1473_v7, %v5154_v1 }
 0x1c7   : > { %v5203_v21 = vmul.f32 %v1540_v8, %v5154_v1  ;;  %v5260_v63 = vmul.f32 %v1406_v42, %v5154_v1  ;;  %v1548_v7 = vstv %s7258_s28  ;;  %s5327_s28 = sld [smem:[#allocation14 + $0x209]] }
 0x1c9   : > { %7254 = vst [vmem:[#allocation88_spill] sm:$0xff] %v5260_v63 }
 0x1cd   : > { %v1493_v27 = vstv %s5327_s28  ;;  %s7299_s28 = sld [smem:[#allocation74_spill]] }
 0x1d1   : > { %v1091_v38 = vpop.f32.mrf.mxu2 }
 0x1d2   : > { %v1097_v39 = vsub.f32 %v1091_v38, %v1096_v35  ;;  %v1300_v38 = vstv %s5143_s24  ;;  %s7267_s24 = sld [smem:[#allocation56_spill]] }
 0x1d4   : > { %v1098_v45 = vadd.f32 1e-05, %v1097_v39  ;;  %v1229_v39 = vstv %s5284_s21  ;;  %s5498_s21 = sld [smem:[#allocation14 + $0x288]] }
 0x1d6   : > { %4126 = vrcp.f32 %v1098_v45  ;;  %v1394_v45 = vstv %s5090_s25  ;;  %s7260_s25 = sld [smem:[#allocation52_spill]] }
 0x1d9   : > { %v5227_v34 = vpop.f32.mrf.mxu3 }
 0x1da   : > { %7245 = vst [vmem:[#allocation85_spill] sm:$0xff] %v5227_v34  ;;  %v5256_v57 = vmul.f32 %v5227_v34, %v5227_v34 }
 0x1db   : > { %v5229_v35 = vpop.f32.mrf.mxu1 }
 0x1dc   : > { %v5191_v17 = vpop.eup %4126  ;;  %7246 = vst [vmem:[#allocation86_spill] sm:$0xff] %v5229_v35  ;;  %v1180_v56 = vmul.f32 %v5229_v35, %v5227_v34  ;;  %v7265_v35 = vstv %s7236_s2  ;;  %v1371_v34 = vstv %s5149_s20  ;;  %s5446_s20 = sld [smem:[#allocation14 + $0x20e]] }
 0x1dd   : > { %7234 = vst [vmem:[#allocation83_spill] sm:$0xff] %v5191_v17  ;;  %v5225_v33 = vmul.f32 %v5191_v17, %v5154_v1  ;;  %v5273_v8 = vmul.f32 %v5191_v17, %v1351_v47  ;;  %v5279_v15 = vmul.f32 %v5191_v17, %v1284_v48  ;;  %v5301_v42 = vmul.f32 %v5191_v17, %v1485_v53  ;;  %s5483_s2 = sld [smem:[#allocation14 + $0x210]] }
 0x1df   : > { %7243 = vst [vmem:[#allocation84_spill] sm:$0xff] %v5225_v33  ;;  %v1328_v0 = vmul.f32 %v1327_v55, %v5225_v33  ;;  %v1261_v13 = vmul.f32 %v1260_v59, %v5225_v33  ;;  %v1194_v16 = vmul.f32 %v1193_v62, %v5225_v33  ;;  %v1462_v24 = vmul.f32 %v1461_v4, %v5225_v33  ;;  %v5381_v62 = vld [vmem:[%s7260_s25 + $0x10] sm:$0xff] }
 0x1e0   : > { %v1529_v25 = vmul.f32 %v1528_v11, %v5225_v33  ;;  %v5297_v59 = vmul.f32 %v5191_v17, %v1217_v49  ;;  %v1395_v47 = vmul.f32 %v1394_v45, %v5225_v33  ;;  %v1595_v45 = vstv %s5244_s4  ;;  %s5350_s4 = sld [smem:[#allocation14 + $0x20a]] }
 0x1e1   : > { %v5305_v4 = vadd.f32 %v1328_v0, %v5132_v54  ;;  %v5313_v49 = vadd.f32 %v1261_v13, %v5140_v58  ;;  %v5316_v53 = vadd.f32 %v1194_v16, %v5146_v60  ;;  %v1592_v54 = vstv %s5234_s18  ;;  %s5362_s18 = sld [smem:[#allocation14 + $0xe]] }
 0x1e2   : > { %v5325_v11 = vadd.f32 %v1462_v24, %v5160_v3  ;;  %v5330_v58 = vadd.f32 %v1529_v25, %v5177_v10  ;;  %v5336_v13 = vmul.f32 %v5092_v37, %v1548_v7  ;;  %v5339_v3 = vadd.f32 %v1395_v47, %v1392_v44  ;;  %v5343_v24 = vld [vmem:[%s7260_s25] sm:$0xff] }
 0x1e3   : > { %v1359_v10 = vstv %s5107_s3  ;;  %v1292_v25 = vstv %s5112_s1  ;;  %v5353_v7 = vmul.f32 %v1592_v54, %v5104_v41  ;;  %v5356_v60 = vmul.f32 %v1595_v45, %v5225_v33  ;;  %s5374_s3 = sld [smem:[#allocation14 + $0xf]] }
 0x1e4   : > { %v1363_v44 = vstv %s5114_s22  ;;  %v1296_v47 = vstv %s5126_s30  ;;  %v1225_v16 = vstv %s5270_s7  ;;  %v5384_v23 = vmul.f32 %v1359_v10, %v5343_v24  ;;  %s5395_s22 = sld [smem:[#allocation14 + $0x10]] }
 0x1e5   : > { %7261 = vst [vmem:[#allocation89_spill] sm:$0xff] %v5353_v7  ;;  %v5388_v55 = vmul.f32 %v1292_v25, %v5343_v24  ;;  %v5404_v25 = vmul.f32 %v1225_v16, %v5343_v24  ;;  %s7264_s1 = sld [smem:[#allocation54_spill]]  ;;  %v5422_v16 = vld [vmem:[%s7260_s25 + $0x18] sm:$0xff]  ;;  %v5439_v33 = vmul.f32 %v1300_v38, %v5381_v62  ;;  %v1241_v41 = vstv %s5333_s15 }
 0x1e6   : > { %7262 = vst [vmem:[#allocation90_spill] sm:$0xff] %v5356_v60  ;;  %s5409_s30 = sld [smem:[#allocation14 + $0x20b]]  ;;  %v1497_v1 = vstv %s5350_s4  ;;  %v5452_v60 = vmul.f32 %v1304_v40, %v5422_v16  ;;  %v5455_v38 = vmul.f32 %v1493_v27, %v5343_v24  ;;  %v5470_v40 = vmul.f32 %v1237_v26, %v5422_v16  ;;  %v5473_v27 = vld [vmem:[%s7260_s25 + $0x30] sm:$0xff]  ;;  %v5490_v26 = vld [vmem:[%s7260_s25 + $0x38] sm:$0xff] }
 0x1e7   : > { %7268 = vst [vmem:[#allocation93_spill] sm:$0xff] %v5439_v33  ;;  %v1245_v37 = vstv %s5362_s18  ;;  %v1509_v33 = vstv %s5430_s5  ;;  %s7291_s7 = sld [smem:[#allocation67_spill]] }
 0x1e8   : > { %7274 = vst [vmem:[#allocation96_spill] sm:$0xff] %v5452_v60  ;;  %s5524_s15 = sld [smem:[#allocation14 + $0x28a]] }
 0x1e9   : > { %v1157_v48 = vpop.f32.mrf.mxu2  ;;  %7277 = vst [vmem:[#allocation99_spill] sm:$0xff] %v5470_v40  ;;  %s7308_s4 = sld [smem:[#allocation65_spill]] }
 0x1ea   : > { %v5322_v0 = vsub.f32 %v1157_v48, %v1180_v56  ;;  %v1552_v56 = vstv %s7259_s11  ;;  %v5346_v48 = vld [vmem:[%s7260_s25 + $0x8] sm:$0xff]  ;;  %7280 = vst [vmem:[#allocation102_spill] sm:$0xff] %v5490_v26  ;;  %s5547_s11 = sld [smem:[#allocation14 + $0x28b]] }
 0x1eb   : > { %v5377_v54 = vmul.f32 %v5191_v17, %v1552_v56  ;;  %v5398_v45 = vmul.f32 %v1363_v44, %v5346_v48  ;;  %v5401_v10 = vmul.f32 %v1296_v47, %v5346_v48  ;;  %v5407_v2 = vmul.f32 %v1229_v39, %v5346_v48  ;;  %s5595_s18 = sld [smem:[#allocation14 + $0x28f]] }
 0x1ec   : > { %v5367_v5 = vmul.f32 %v1343_v18, %v5322_v0  ;;  %v5372_v61 = vmul.f32 %v1276_v22, %v5322_v0  ;;  %v1367_v18 = vstv %s5135_s17  ;;  %v5393_v22 = vmul.f32 %v1209_v30, %v5322_v0  ;;  %s5419_s17 = sld [smem:[#allocation14 + $0x20c]] }
 0x1ed   : > { %7263 = vst [vmem:[#allocation91_spill] sm:$0xff] %v5407_v2  ;;  %v1233_v44 = vstv %s5307_s29  ;;  %v5417_v47 = vmul.f32 %v7265_v35, %v5322_v0  ;;  %v5425_v39 = vmul.f32 %v1367_v18, %v5381_v62  ;;  %v1375_v35 = vstv %s5163_s6  ;;  %s7273_s6 = sld [smem:[#allocation58_spill]] }
 0x1ee   : > { %v1308_v32 = vstv %s7264_s1  ;;  %v5442_v18 = vmul.f32 %v1233_v44, %v5381_v62  ;;  %v5460_v44 = vld [vmem:[%s7260_s25 + $0x28] sm:$0xff]  ;;  %v1501_v60 = vstv %s5409_s30  ;;  %s7297_s29 = sld [smem:[#allocation72_spill]] }
 0x1ef   : > { %7266 = vst [vmem:[#allocation92_spill] sm:$0xff] %v5425_v39  ;;  %v5501_v63 = vmul.f32 %v1312_v36, %v5460_v44  ;;  %v7307_v39 = vstv %s7299_s28  ;;  %s5636_s1 = sld [smem:[#allocation14 + $0x187]] }
 0x1f0   : > { %7270 = vst [vmem:[#allocation94_spill] sm:$0xff] %v5442_v18  ;;  %v1253_v18 = vstv %s5395_s22  ;;  %s5630_s22 = sld [smem:[#allocation14 + $0x290]] }
 0x1f1   : > { %v1177_v56 = vpop.f32.mrf.mxu3  ;;  %7282 = vst [vmem:[#allocation104_spill] sm:$0xff] %v5501_v63  ;;  %v1517_v63 = vstv %s5457_s13  ;;  %s5642_s30 = sld [smem:[#allocation14 + $0x188]] }
 0x1f2   : > { %v1183_v30 = vsub.f32 %v1177_v56, %v5256_v57  ;;  %v5433_v56 = vld [vmem:[%s7260_s25 + $0x20] sm:$0xff]  ;;  %s5508_s25 = sld [smem:[#allocation14 + $0x289]] }
 0x1f3   : > { %v5467_v7 = vmul.f32 %v1308_v32, %v5433_v56  ;;  %v5477_v17 = vmul.f32 %v1241_v41, %v5433_v56  ;;  %v1383_v32 = vstv %s7271_s0  ;;  %v1320_v41 = vstv %s5294_s10  ;;  %s7285_s10 = sld [smem:[#allocation71_spill]] }
 0x1f4   : > { %v1184_v57 = vadd.f32 1e-05, %v1183_v30  ;;  %v5449_v30 = vmul.f32 %v1371_v34, %v5422_v16  ;;  %v1379_v34 = vstv %s7267_s24  ;;  %s5662_s5 = sld [smem:[#allocation14 + $0x18a]] }
 0x1f5   : > { %7276 = vst [vmem:[#allocation98_spill] sm:$0xff] %v5467_v7  ;;  %v1316_v7 = vstv %s7273_s6  ;;  %v5493_v40 = vmul.f32 %v1379_v34, %v5460_v44  ;;  %s5669_s24 = sld [smem:[#allocation14 + $0x18b]] }
 0x1f6   : > { %4128 = vrcp.f32 %v1184_v57  ;;  %7272 = vst [vmem:[#allocation95_spill] sm:$0xff] %v5449_v30  ;;  %v5463_v57 = vmul.f32 %v1375_v35, %v5433_v56  ;;  %v5481_v35 = vmul.f32 %v1497_v1, %v5346_v48  ;;  %v1387_v30 = vstv %s5247_s26  ;;  %s7287_s26 = sld [smem:[#allocation73_spill]] }
 0x1f7   : > { %7278 = vst [vmem:[#allocation100_spill] sm:$0xff] %v5477_v17  ;;  %v1505_v17 = vstv %s5419_s17  ;;  %v5504_v1 = vmul.f32 %v1245_v37, %v5460_v44  ;;  %v5516_v36 = vmul.f32 %v1316_v7, %v5473_v27  ;;  %v5531_v7 = vmul.f32 %v1387_v30, %v5490_v26  ;;  %s5647_s17 = sld [smem:[#allocation14 + $0x189]] }
 0x1f8   : > { %7275 = vst [vmem:[#allocation97_spill] sm:$0xff] %v5463_v57  ;;  %v1249_v57 = vstv %s5374_s3  ;;  %v7298_v30 = vstv %s7248_s12  ;;  %s5571_s12 = sld [smem:[#allocation14 + $0x28c]] }
 0x1f9   : > { %7279 = vst [vmem:[#allocation101_spill] sm:$0xff] %v5481_v35  ;;  %v5519_v37 = vmul.f32 %v1249_v57, %v5473_v27  ;;  %v5537_v57 = vmul.f32 %v1505_v17, %v5422_v16  ;;  %v7301_v17 = vstv %s7285_s10  ;;  %s5601_s3 = sld [smem:[#allocation14 + $0x182]] }
 0x1fa   : > { %7281 = vst [vmem:[#allocation103_spill] sm:$0xff] %v5493_v40  ;;  %v5513_v40 = vmul.f32 %v1383_v32, %v5473_v27  ;;  %s5704_s0 = sld [smem:[#allocation14 + $0x302]] }
 0x1fb   : > { %7283 = vst [vmem:[#allocation105_spill] sm:$0xff] %v5504_v1  ;;  %v5522_v1 = vmul.f32 %v1501_v60, %v5381_v62  ;;  %v5540_v60 = vmul.f32 %v1253_v18, %v5490_v26  ;;  %s5709_s6 = sld [smem:[#allocation14 + $0x190]] }
 0x1fc   : > { %v5510_v34 = vpop.eup %4128  ;;  %7284 = vst [vmem:[#allocation106_spill] sm:$0xff] %v5513_v40  ;;  %v1513_v40 = vstv %s5446_s20  ;;  %v7302_v18 = vstv %s7287_s26  ;;  %s5694_s20 = sld [smem:[#allocation14 + $0x18e]] }
 0x1fd   : > { %7286 = vst [vmem:[#allocation107_spill] sm:$0xff] %v5516_v36  ;;  %v5528_v32 = vmul.f32 %v5510_v34, %v5322_v0  ;;  %v5534_v36 = vmul.f32 %v1320_v41, %v5490_v26  ;;  %v7300_v41 = vstv %s7252_s8  ;;  %s5577_s8 = sld [smem:[#allocation14 + $0x28d]]  ;;  %v5586_v2 = vmul.f32 %v1513_v40, %v5460_v44 }
 0x1fe   : > { %7288 = vst [vmem:[#allocation108_spill] sm:$0xff] %v5519_v37  ;;  %v5543_v37 = vmul.f32 %v1509_v33, %v5433_v56  ;;  %v7303_v33 = vstv %s7289_s23  ;;  %v1556_v40 = vstv %s5498_s21  ;;  %s5714_s13 = sld [smem:[#allocation14 + $0x304]] }
 0x1ff   : > { %7290 = vst [vmem:[#allocation109_spill] sm:$0xff] %v5522_v1  ;;  %v1356_v26 = vmul.f32 %v5510_v34, %v7303_v33  ;;  %v1533_v35 = vmul.f32 %v7305_v46, %v5528_v32  ;;  %v1490_v46 = vmul.f32 %v5510_v34, %v7307_v39  ;;  %s5721_s21 = sld [smem:[#allocation14 + $0x305]] }
 0x200   : > { %7292 = vst [vmem:[#allocation110_spill] sm:$0xff] %v5531_v7  ;;  %v1332_v7 = vmul.f32 %v7298_v30, %v5528_v32  ;;  %s5747_s10 = sld [smem:[#allocation14 + $0x308]] }
 0x201   : > { %7293 = vst [vmem:[#allocation111_spill] sm:$0xff] %v5534_v36  ;;  %v1265_v36 = vmul.f32 %v7300_v41, %v5528_v32  ;;  %s5750_s26 = sld [smem:[#allocation14 + $0x309]] }
 0x202   : > { %7294 = vst [vmem:[#allocation112_spill] sm:$0xff] %v5537_v57  ;;  %v1198_v57 = vmul.f32 %v7301_v17, %v5528_v32  ;;  %v1333_v30 = vadd.f32 %v1332_v7, %v5305_v4  ;;  %v1534_v4 = vadd.f32 %v1533_v35, %v5330_v58  ;;  %v1560_v7 = vstv %s5508_s25  ;;  %s5733_s25 = sld [smem:[#allocation14 + $0x306]] }
 0x203   : > { %7295 = vst [vmem:[#allocation113_spill] sm:$0xff] %v5540_v60  ;;  %v1466_v60 = vmul.f32 %v7302_v18, %v5528_v32  ;;  %v1266_v41 = vadd.f32 %v1265_v36, %v5313_v49  ;;  %s5757_s23 = sld [smem:[#allocation14 + $0x30a]] }
 0x204   : > { %7296 = vst [vmem:[#allocation114_spill] sm:$0xff] %v5543_v37  ;;  %v7304_v37 = vstv %s7291_s7  ;;  %v1199_v17 = vadd.f32 %v1198_v57, %v5316_v53  ;;  %v1337_v49 = vadd.f32 %v5121_v50, %v1333_v30  ;;  %v1538_v39 = vadd.f32 %v5181_v12, %v1534_v4  ;;  %s5763_s7 = sld [smem:[#allocation14 + $0x380]] }
 0x205   : > { %v1289_v1 = vmul.f32 %v5510_v34, %v7304_v37  ;;  %v1467_v18 = vadd.f32 %v1466_v60, %v5325_v11  ;;  %v7306_v37 = vstv %s7297_s29  ;;  %v1270_v11 = vadd.f32 %v5124_v51, %v1266_v41  ;;  %s5778_s29 = sld [smem:[#allocation14 + $0x382]] }
 0x206   : > { %v1222_v33 = vmul.f32 %v5510_v34, %v7306_v37  ;;  %v1203_v53 = vadd.f32 %v5129_v52, %v1199_v17  ;;  %v1564_v57 = vstv %s5524_s15  ;;  %v1341_v58 = vadd.f32 %v5172_v9, %v1337_v49  ;;  %s5775_s15 = sld [smem:[#allocation14 + $0x30b]] }
 0x207   : > { %v1471_v36 = vadd.f32 %v5167_v6, %v1467_v18  ;;  %v1274_v50 = vadd.f32 %v5187_v14, %v1270_v11  ;;  %v5608_v52 = vmul.f32 %v1517_v63, %v5473_v27  ;;  %v1542_v6 = vadd.f32 %v5203_v21, %v1538_v39  ;;  %s5790_s28 = sld [smem:[#allocation14 + $0x30c]] }
 0x208   : > { %v1207_v51 = vadd.f32 %v5197_v19, %v1203_v53  ;;  %v7309_v12 = vstv %s7308_s4  ;;  %v1568_v30 = vstv %s5547_s11  ;;  %v1345_v41 = vadd.f32 %v5367_v5, %v1341_v58  ;;  %s5782_s11 = sld [smem:[#allocation14 + $0x383]] }
 0x209   : > { %v1475_v35 = vadd.f32 %v5200_v20, %v1471_v36  ;;  %v1545_v60 = vmul.f32 %v7309_v12, %v5322_v0  ;;  %v1278_v9 = vadd.f32 %v5372_v61, %v1274_v50  ;;  %v1557_v63 = vmul.f32 %v5510_v34, %v1556_v40  ;;  %v7311_v12 = vld [vmem:[#allocation101_spill] sm:$0xff]  ;;  %s5808_s4 = sld [smem:[#allocation14 + $0x30e]] }
 0x20a   : > { %v1211_v14 = vadd.f32 %v5393_v22, %v1207_v51  ;;  %v1561_v17 = vmul.f32 %v1560_v7, %v5343_v24  ;;  %v1565_v21 = vmul.f32 %v1564_v57, %v5346_v48  ;;  %v1349_v18 = vadd.f32 %v5212_v28, %v1345_v41 }
 0x20b   : > { %v1479_v19 = vadd.f32 %v5417_v47, %v1475_v35  ;;  %v1546_v20 = vadd.f32 %v1545_v60, %v1542_v6  ;;  %v1282_v37 = vadd.f32 %v5215_v29, %v1278_v9  ;;  %v1569_v47 = vmul.f32 %v1568_v30, %v5381_v62  ;;  %v7310_v6 = vld [vmem:[#allocation91_spill] sm:$0xff] }
 0x20c   : > { %v1215_v61 = vadd.f32 %v5221_v31, %v1211_v14  ;;  %v1572_v4 = vstv %s5571_s12  ;;  %v1576_v49 = vstv %s5577_s8  ;;  %v1353_v11 = vadd.f32 %v5273_v8, %v1349_v18  ;;  %v7312_v30 = vld [vmem:[#allocation87_spill] sm:$0xff]  ;;  %s5794_s12 = sld [smem:[#allocation14 + $0x384]] }
 0x20d   : > { %v1483_v5 = vadd.f32 %v5237_v43, %v1479_v19  ;;  %v1550_v22 = vadd.f32 %v5336_v13, %v1546_v20  ;;  %v1286_v28 = vadd.f32 %v5279_v15, %v1282_v37  ;;  %v1580_v43 = vstv %s5589_s16  ;;  %v7316_v20 = vld [vmem:[#allocation94_spill] sm:$0xff]  ;;  %s5799_s8 = sld [smem:[#allocation14 + $0x30d]] }
 0x20e   : > { %v1219_v53 = vadd.f32 %v5297_v59, %v1215_v61  ;;  %v1584_v13 = vstv %s5595_s18  ;;  %v1398_v36 = vstv %s5601_s3  ;;  %v1357_v39 = vadd.f32 %v1356_v26, %v1353_v11  ;;  %v7320_v11 = vld [vmem:[#allocation96_spill] sm:$0xff]  ;;  %s5803_s16 = sld [smem:[#allocation14 + $0x385]] }
 0x20f   : > { %v1487_v29 = vadd.f32 %v5301_v42, %v1483_v5  ;;  %v1554_v31 = vadd.f32 %v5377_v54, %v1550_v22  ;;  %v1290_v40 = vadd.f32 %v1289_v1, %v1286_v28  ;;  %v1573_v15 = vmul.f32 %v1572_v4, %v5422_v16  ;;  %v7319_v4 = vld [vmem:[#allocation95_spill] sm:$0xff]  ;;  %s5816_s18 = sld [smem:[#allocation14 + $0x386]] }
 0x210   : > { %v1223_v7 = vadd.f32 %v1222_v33, %v1219_v53  ;;  %v1577_v59 = vmul.f32 %v1576_v49, %v5433_v56  ;;  %v1399_v42 = vmul.f32 %v1398_v36, %v5528_v32  ;;  %v1361_v54 = vadd.f32 %v5384_v23, %v1357_v39  ;;  %v7321_v53 = vld [vmem:[#allocation99_spill] sm:$0xff]  ;;  %s5820_s3 = sld [smem:[#allocation14 + $0x30f]] }
 0x211   : > { %v1491_v57 = vadd.f32 %v1490_v46, %v1487_v29  ;;  %v1558_v8 = vadd.f32 %v1557_v63, %v1554_v31  ;;  %v1294_v58 = vadd.f32 %v5388_v55, %v1290_v40  ;;  %v1581_v46 = vmul.f32 %v1580_v43, %v5460_v44  ;;  %v7322_v31 = vld [vmem:[#allocation112_spill] sm:$0xff]  ;;  %v7324_v40 = vld [vmem:[#allocation79_spill] sm:$0xff] }
 0x212   : > { %v1227_v26 = vadd.f32 %v5404_v25, %v1223_v7  ;;  %v5655_v50 = vmul.f32 %v1584_v13, %v5473_v27  ;;  %v1400_v51 = vadd.f32 %v1399_v42, %v5339_v3  ;;  %v1365_v35 = vadd.f32 %v5398_v45, %v1361_v54  ;;  %v7314_v3 = vld [vmem:[#allocation92_spill] sm:$0xff]  ;;  %v7326_v42 = vld [vmem:[#allocation98_spill] sm:$0xff] }
 0x213   : > { %v1495_v1 = vadd.f32 %v5455_v38, %v1491_v57  ;;  %v1562_v33 = vadd.f32 %v1561_v17, %v1558_v8  ;;  %v1298_v23 = vadd.f32 %v5401_v10, %v1294_v58  ;;  %v1588_v60 = vstv %s5630_s22  ;;  %v7315_v10 = vld [vmem:[#allocation93_spill] sm:$0xff]  ;;  %v7327_v58 = vld [vmem:[#allocation100_spill] sm:$0xff]  ;;  %s5828_s22 = sld [smem:[#allocation14 + $0x387]] }
 0x214   : > { %v1231_v55 = vadd.f32 %v7310_v6, %v1227_v26  ;;  %v1404_v41 = vadd.f32 %v7312_v30, %v1400_v51  ;;  %v7313_v9 = vstv %s5098_s9  ;;  %v1369_v45 = vadd.f32 %v7314_v3, %v1365_v35  ;;  %v7317_v17 = vld [vmem:[#allocation109_spill] sm:$0xff]  ;;  %s5682_s9 = sld [smem:[#allocation14 + $0x18c]]  ;;  %v7329_v35 = vld [vmem:[#allocation83_spill] sm:$0xff] }
 0x215   : > { %v1499_v25 = vadd.f32 %v7311_v12, %v1495_v1  ;;  %v1566_v38 = vadd.f32 %v1565_v21, %v1562_v33  ;;  %v1411_v14 = vmul.f32 %v7313_v9, %v5322_v0  ;;  %v1302_v19 = vadd.f32 %v7315_v10, %v1298_v23  ;;  %v7318_v21 = vld [vmem:[#allocation88_spill] sm:$0xff]  ;;  %v7325_v57 = vld [vmem:[#allocation97_spill] sm:$0xff]  ;;  %v7328_v1 = vld [vmem:[#allocation114_spill] sm:$0xff] }
 0x216   : > { %v1235_v63 = vadd.f32 %v7316_v20, %v1231_v55  ;;  %v1408_v61 = vadd.f32 %v7318_v21, %v1404_v41  ;;  %v1418_v5 = vstv %s5636_s1  ;;  %v1422_v22 = vstv %s5642_s30  ;;  %v7330_v55 = vld [vmem:[#allocation103_spill] sm:$0xff]  ;;  %v7332_v30 = vld [vmem:[#allocation105_spill] sm:$0xff]  ;;  %v7333_v10 = vld [vmem:[#allocation106_spill] sm:$0xff]  ;;  %s5833_s1 = sld [smem:[#allocation14 + $0x388]] }
 0x217   : > { %v1503_v18 = vadd.f32 %v7317_v17, %v1499_v25  ;;  %v1570_v37 = vadd.f32 %v1569_v47, %v1566_v38  ;;  %v1373_v49 = vadd.f32 %v7319_v4, %v1369_v45  ;;  %v1306_v28 = vadd.f32 %v7320_v11, %v1302_v19  ;;  %v7331_v25 = vld [vmem:[#allocation104_spill] sm:$0xff]  ;;  %v7334_v20 = vld [vmem:[#allocation107_spill] sm:$0xff]  ;;  %v7336_v21 = vld [vmem:[#allocation102_spill] sm:$0xff]  ;;  %s5837_s30 = sld [smem:[#allocation14 + $0x389]] }
 0x218   : > { %v1239_v29 = vadd.f32 %v7321_v53, %v1235_v63  ;;  %v1412_v36 = vadd.f32 %v1411_v14, %v1408_v61  ;;  %v7323_v39 = vstv %s5292_s27  ;;  %v1426_v47 = vstv %s5647_s17  ;;  %s5698_s27 = sld [smem:[#allocation14 + $0x18f]]  ;;  %v7335_v17 = vld [vmem:[#allocation108_spill] sm:$0xff] }
 0x219   : > { %v1507_v43 = vadd.f32 %v7322_v31, %v1503_v18  ;;  %v1574_v13 = vadd.f32 %v1573_v15, %v1570_v37  ;;  %v1415_v7 = vmul.f32 %v7324_v40, %v7323_v39  ;;  %v1377_v8 = vadd.f32 %v7325_v57, %v1373_v49  ;;  %v7338_v49 = vld [vmem:[#allocation110_spill] sm:$0xff]  ;;  %s5840_s17 = sld [smem:[#allocation14 + $0x310]] }
 0x21a   : > { %v1310_v54 = vadd.f32 %v7326_v42, %v1306_v28  ;;  %v1243_v26 = vadd.f32 %v7327_v58, %v1239_v29  ;;  %v1419_v23 = vmul.f32 %v7329_v35, %v1418_v5  ;;  %v1423_v6 = vmul.f32 %v5510_v34, %v1422_v22  ;;  %v7339_v28 = vld [vmem:[#allocation111_spill] sm:$0xff]  ;;  %v7340_v29 = vld [vmem:[#allocation113_spill] sm:$0xff]  ;;  %v7341_v58 = vld [vmem:[#allocation78_spill] sm:$0xff] }
 0x21b   : > { %v1511_v33 = vadd.f32 %v7328_v1, %v1507_v43  ;;  %v1578_v15 = vadd.f32 %v1577_v59, %v1574_v13  ;;  %v1416_v51 = vadd.f32 %v1415_v7, %v1412_v36  ;;  %v1381_v12 = vadd.f32 %v7330_v55, %v1377_v8 }
 0x21c   : > { %v1314_v38 = vadd.f32 %v7331_v25, %v1310_v54  ;;  %v1247_v41 = vadd.f32 %v7332_v30, %v1243_v26  ;;  %v1430_v9 = vstv %s5662_s5  ;;  %v1427_v3 = vmul.f32 %v1426_v47, %v5343_v24  ;;  %s5846_s5 = sld [smem:[#allocation14 + $0x38a]] }
 0x21d   : > { %v1515_v14 = vadd.f32 %v5586_v2, %v1511_v33  ;;  %v1420_v59 = vadd.f32 %v1419_v23, %v1416_v51  ;;  %v1434_v45 = vstv %s5669_s24  ;;  %v1385_v19 = vadd.f32 %v7333_v10, %v1381_v12  ;;  %v7344_v51 = vld [vmem:[#allocation90_spill] sm:$0xff]  ;;  %s5855_s24 = sld [smem:[#allocation14 + $0x38b]] }
 0x21e   : > { %v1318_v63 = vadd.f32 %v7334_v20, %v1314_v38  ;;  %v1251_v18 = vadd.f32 %v7335_v17, %v1247_v41  ;;  %v1582_v37 = vadd.f32 %v1581_v46, %v1578_v15  ;;  %v7337_v61 = vstv %s5483_s2  ;;  %s5738_s2 = sld [smem:[#allocation14 + $0x307]]  ;;  %v7343_v15 = vld [vmem:[#allocation89_spill] sm:$0xff] }
 0x21f   : > { %v1522_v2 = vmul.f32 %v7337_v61, %v7336_v21  ;;  %v1589_v5 = vmul.f32 %v1588_v60, %v7336_v21  ;;  %v1424_v22 = vadd.f32 %v1423_v6, %v1420_v59  ;;  %v1431_v4 = vmul.f32 %v1430_v9, %v5346_v48 }
 0x220   : > { %v5724_v11 = vadd.f32 %v7338_v49, %v1385_v19  ;;  %v5727_v53 = vadd.f32 %v7339_v28, %v1318_v63  ;;  %v5730_v46 = vadd.f32 %v7340_v29, %v1251_v18  ;;  %v1438_v31 = vstv %s5682_s9  ;;  %v7345_v19 = vld [vmem:[#allocation82_spill] sm:$0xff]  ;;  %s5862_s9 = sld [smem:[#allocation14 + $0x38c]] }
 0x221   : > { %v1519_v43 = vadd.f32 %v5608_v52, %v1515_v14  ;;  %v1428_v60 = vadd.f32 %v1427_v3, %v1424_v22  ;;  %v1435_v13 = vmul.f32 %v1434_v45, %v5381_v62  ;;  %v1442_v36 = vstv %s5688_s19  ;;  %s5870_s19 = sld [smem:[#allocation14 + $0x38d]] }
 0x222   : > { %v1769_v39 = vsel %vm835_vm0, %v5724_v11, 0.0  ;;  %v1746_v7 = vsel %vm835_vm0, %v5727_v53, 0.0  ;;  %v1725_v47 = vsel %vm835_vm0, %v5730_v46, 0.0  ;;  %v1586_v52 = vadd.f32 %v5655_v50, %v1582_v37 }
 0x223   : > { %1770 = vadd.xlane.f32.xlu2 %v1769_v39  ;;  %1747 = vadd.xlane.f32.xlu1 %v1746_v7  ;;  %v1432_v57 = vadd.f32 %v1431_v4, %v1428_v60  ;;  %v1439_v8 = vmul.f32 %v1438_v31, %v5422_v16  ;;  %v1446_v42 = vstv %s5694_s20  ;;  %v1599_v54 = vstv %s5704_s0  ;;  %s3678_s20 = sld [smem:[#allocation14 + $0x38e]] }
 0x224   : > { %1726 = vadd.xlane.f32.xlu0 %v1725_v47  ;;  %v7342_v26 = vstv %s5262_s14  ;;  %v1443_v33 = vmul.f32 %v1442_v36, %v5433_v56  ;;  %v1597_v23 = vadd.f32 %v7344_v51, %v7343_v15  ;;  %v1600_v6 = vmul.f32 %v1599_v54, %v5528_v32  ;;  %s5771_s14 = sld [smem:[#allocation14 + $0x381]] }
 0x225   : > { %v1604_v1 = vmul.f32 %v7342_v26, %v7341_v58  ;;  %v1436_v50 = vadd.f32 %v1435_v13, %v1432_v57  ;;  %v5765_v55 = vadd.f32 %v1522_v2, %v1519_v43  ;;  %v5767_v12 = vadd.f32 %v1589_v5, %v1586_v52  ;;  %v7346_v57 = vld [vmem:[#allocation81_spill] sm:$0xff]  ;;  %v7347_v26 = vld [vmem:[#allocation84_spill] sm:$0xff]  ;;  %s3680_s0 = sld [smem:[#allocation14 + $0x390]] }
 0x226   : > { %v1450_v25 = vstv %s5698_s27  ;;  %v1607_v38 = vstv %s5714_s13  ;;  %v1447_v41 = vmul.f32 %v1446_v42, %v5460_v44  ;;  %v1454_v9 = vstv %s5709_s6  ;;  %s3679_s27 = sld [smem:[#allocation14 + $0x38f]] }
 0x227   : > { %v1440_v30 = vadd.f32 %v1439_v8, %v1436_v50  ;;  %v1601_v14 = vadd.f32 %v1600_v6, %v1597_v23  ;;  %v1611_v59 = vstv %s5721_s21  ;;  %v1451_v45 = vmul.f32 %v1450_v25, %v5473_v27 }
 0x228   : > { %v1608_v20 = vmul.f32 %v1607_v38, %v7345_v19  ;;  %v1815_v63 = vsel %vm835_vm0, %v5765_v55, 0.0  ;;  %v1838_v17 = vsel %vm835_vm0, %v5767_v12, 0.0  ;;  %v1455_v18 = vmul.f32 %v1454_v9, %v7336_v21 }
 0x229   : > { %v1444_v3 = vadd.f32 %v1443_v33, %v1440_v30  ;;  %v1605_v10 = vadd.f32 %v1604_v1, %v1601_v14  ;;  %v1615_v37 = vstv %s5733_s25  ;;  %v1612_v5 = vmul.f32 %v1611_v59, %v5322_v0 }
 0x22a   : > { %v1619_v22 = vstv %s5738_s2  ;;  %v1780_v4 = vmul.f32 %v5724_v11, %v5724_v11  ;;  %v1623_v49 = vstv %s5747_s10  ;;  %v1616_v31 = vmul.f32 %v7324_v40, %v1615_v37 }
 0x22b   : > { %1816 = vadd.xlane.f32.xlu2 %v1815_v63  ;;  %1839 = vadd.xlane.f32.xlu1 %v1838_v17  ;;  %v1448_v61 = vadd.f32 %v1447_v41, %v1444_v3  ;;  %v1609_v2 = vadd.f32 %v1608_v20, %v1605_v10  ;;  %v1627_v43 = vstv %s5750_s26  ;;  %v1757_v60 = vmul.f32 %v5727_v53, %v5727_v53 }
 0x22c   : > { %v1620_v13 = vmul.f32 %v7329_v35, %v1619_v22  ;;  %v1659_v36 = vstv %s5763_s7  ;;  %v1662_v39 = vstv %s5771_s14  ;;  %v1624_v52 = vmul.f32 %v5510_v34, %v1623_v49 }
 0x22d   : > { %v1452_v28 = vadd.f32 %v1451_v45, %v1448_v61  ;;  %v1613_v29 = vadd.f32 %v1612_v5, %v1609_v2  ;;  %v1660_v8 = vmul.f32 %v1659_v36, %v7346_v57  ;;  %v1628_v42 = vmul.f32 %v1627_v43, %v5343_v24 }
 0x22e   : > { %v1631_v54 = vstv %s5757_s23  ;;  %v1663_v1 = vmul.f32 %v1662_v39, %v7347_v26  ;;  %v1666_v50 = vstv %s5778_s29  ;;  %v1670_v23 = vstv %s5782_s11 }
 0x22f   : > { %v5812_v7 = vadd.f32 %v1455_v18, %v1452_v28  ;;  %v1617_v47 = vadd.f32 %v1616_v31, %v1613_v29  ;;  %v1667_v51 = vmul.f32 %v1666_v50, %v5528_v32  ;;  %v1781_v6 = vsel %vm835_vm0, %v1780_v4, 0.0 }
 0x230   : > { %v1758_v25 = vsel %vm835_vm0, %v1757_v60, 0.0  ;;  %v1635_v38 = vstv %s5775_s15  ;;  %v1664_v30 = vadd.f32 %v1663_v1, %v1660_v8  ;;  %v1632_v9 = vmul.f32 %v1631_v54, %v5346_v48 }
 0x231   : > { %v1792_v33 = vsel %vm835_vm0, %v5812_v7, 0.0  ;;  %v1621_v15 = vadd.f32 %v1620_v13, %v1617_v47  ;;  %v1674_v32 = vstv %s5794_s12  ;;  %v1639_v14 = vstv %s5790_s28 }
 0x232   : > { %1793 = vadd.xlane.f32.xlu0 %v1792_v33  ;;  %v1668_v59 = vadd.f32 %v1667_v51, %v1664_v30  ;;  %v1671_v3 = vmul.f32 %v1670_v23, %v7341_v58  ;;  %v1636_v10 = vmul.f32 %v1635_v38, %v5381_v62  ;;  %v1643_v20 = vstv %s5799_s8 }
 0x233   : > { %1782 = vadd.xlane.f32.xlu2 %v1781_v6  ;;  %1759 = vadd.xlane.f32.xlu1 %v1758_v25  ;;  %v1625_v41 = vadd.f32 %v1624_v52, %v1621_v15  ;;  %v1678_v63 = vstv %s5803_s16  ;;  %v1849_v17 = vmul.f32 %v5767_v12, %v5767_v12  ;;  %v1803_v18 = vmul.f32 %v5812_v7, %v5812_v7 }
 0x234   : > { %v1672_v37 = vadd.f32 %v1671_v3, %v1668_v59  ;;  %v1675_v61 = vmul.f32 %v1674_v32, %v7345_v19  ;;  %v1640_v58 = vmul.f32 %v1639_v14, %v5422_v16  ;;  %v1682_v5 = vstv %s5816_s18 }
 0x235   : > { %v1629_v45 = vadd.f32 %v1628_v42, %v1625_v41  ;;  %v1647_v22 = vstv %s5808_s4  ;;  %v1679_v49 = vmul.f32 %v1678_v63, %v5322_v0  ;;  %v1644_v29 = vmul.f32 %v1643_v20, %v5433_v56 }
 0x236   : > { %v1676_v4 = vadd.f32 %v1675_v61, %v1672_v37  ;;  %v1651_v31 = vstv %s5820_s3  ;;  %v1686_v43 = vstv %s5828_s22  ;;  %v1850_v19 = vsel %vm835_vm0, %v1849_v17, 0.0 }
 0x237   : > { %v1633_v2 = vadd.f32 %v1632_v9, %v1629_v45  ;;  %v1804_v60 = vsel %vm835_vm0, %v1803_v18, 0.0  ;;  %v1683_v36 = vmul.f32 %v7324_v40, %v1682_v5  ;;  %v1648_v47 = vmul.f32 %v1647_v22, %v5460_v44 }
 0x238   : > { %v1680_v13 = vadd.f32 %v1679_v49, %v1676_v4  ;;  %v1690_v0 = vstv %s5833_s1  ;;  %v1694_v52 = vstv %s5837_s30  ;;  %v1655_v57 = vstv %s5840_s17 }
 0x239   : > { %v1637_v28 = vadd.f32 %v1636_v10, %v1633_v2  ;;  %v1687_v42 = vmul.f32 %v7329_v35, %v1686_v43  ;;  %v1652_v26 = vmul.f32 %v1651_v31, %v5473_v27  ;;  %v1698_v1 = vstv %s5846_s5 }
 0x23a   : > { %v1684_v8 = vadd.f32 %v1683_v36, %v1680_v13  ;;  %v1691_v50 = vmul.f32 %v5510_v34, %v1690_v0  ;;  %v1695_v33 = vmul.f32 %v1694_v52, %v5343_v24  ;;  %v1656_v51 = vmul.f32 %v1655_v57, %v7336_v21 }
 0x23b   : > { %v1641_v39 = vadd.f32 %v1640_v58, %v1637_v28  ;;  %1851 = vadd.xlane.f32.xlu2 %v1850_v19  ;;  %1805 = vadd.xlane.f32.xlu1 %v1804_v60  ;;  %v1702_v23 = vstv %s5855_s24  ;;  %v1699_v25 = vmul.f32 %v1698_v1, %v5346_v48  ;;  %v1706_v38 = vstv %s5862_s9 }
 0x23c   : > { %v1688_v40 = vadd.f32 %v1687_v42, %v1684_v8  ;;  %v1703_v41 = vmul.f32 %v1702_v23, %v5381_v62  ;;  %v1710_v32 = vstv %s5870_s19  ;;  %v1707_v24 = vmul.f32 %v1706_v38, %v5422_v16 }
 0x23d   : > { %v1645_v54 = vadd.f32 %v1644_v29, %v1641_v39  ;;  %v1714_v59 = vstv %s3678_s20  ;;  %v1711_v45 = vmul.f32 %v1710_v32, %v5433_v56  ;;  %v1718_v10 = vstv %s3679_s27 }
 0x23e   : > { %v1692_v6 = vadd.f32 %v1691_v50, %v1688_v40  ;;  %v1715_v63 = vmul.f32 %v1714_v59, %v5460_v44  ;;  %v1735_v16 = vmul.f32 %v5730_v46, %v5730_v46  ;;  %v1722_v17 = vstv %s3680_s0 }
 0x23f   : > { %v1649_v15 = vadd.f32 %v1648_v47, %v1645_v54  ;;  %v1719_v37 = vmul.f32 %v1718_v10, %v5473_v27  ;;  %v1723_v2 = vmul.f32 %v1722_v17, %v7336_v21  ;;  %v1826_v44 = vmul.f32 %v5765_v55, %v5765_v55 }
 0x240   : > { %v1696_v30 = vadd.f32 %v1695_v33, %v1692_v6  ;;  %v1736_v58 = vsel %vm835_vm0, %v1735_v16, 0.0 }
 0x241   : > { %v1653_v35 = vadd.f32 %v1652_v26, %v1649_v15  ;;  %v1827_v4 = vsel %vm835_vm0, %v1826_v44, 0.0 }
 0x242   : > { %v1700_v34 = vadd.f32 %v1699_v25, %v1696_v30 }
 0x243   : > { %v5883_v9 = vadd.f32 %v1656_v51, %v1653_v35 }
 0x244   : > { %v1704_v48 = vadd.f32 %v1703_v41, %v1700_v34 }
 0x245   : > { %v1861_v14 = vsel %vm835_vm0, %v5883_v9, 0.0  ;;  %v1872_v3 = vmul.f32 %v5883_v9, %v5883_v9 }
 0x246   : > { %1862 = vadd.xlane.f32.xlu0 %v1861_v14  ;;  %v1708_v20 = vadd.f32 %v1707_v24, %v1704_v48 }
 0x247   : > { %v1873_v62 = vsel %vm835_vm0, %v1872_v3, 0.0 }
 0x248   : > { %1874 = vadd.xlane.f32.xlu1 %v1873_v62  ;;  %v1712_v18 = vadd.f32 %v1711_v45, %v1708_v20 }
 0x24a   : > { %v1716_v61 = vadd.f32 %v1715_v63, %v1712_v18 }
 0x24c   : > { %v1720_v56 = vadd.f32 %v1719_v37, %v1716_v61 }
 0x24e   : > { %1737 = vadd.xlane.f32.xlu0 %v1736_v58  ;;  %v5899_v5 = vadd.f32 %v1723_v2, %v1720_v56 }
 0x250   : > { %v1884_v22 = vsel %vm835_vm0, %v5899_v5, 0.0  ;;  %v1895_v27 = vmul.f32 %v5899_v5, %v5899_v5 }
 0x251   : > { %1885 = vadd.xlane.f32.xlu2 %v1884_v22 }
 0x252   : > { %v1896_v21 = vsel %vm835_vm0, %v1895_v27, 0.0 }
 0x256   : > { %1828 = vadd.xlane.f32.xlu0 %v1827_v4 }
 0x25e   : > { %1897 = vadd.xlane.f32.xlu0 %v1896_v21 }
 0x296   : > { %v1748_v49 = vpop.xlane.xlu1 %1747  ;;  %v1771_v19 = vpop.xlane.xlu2 %1770 }
 0x297   : > { %v1727_v28 = vpop.xlane.xlu0 %1726  ;;  %v1749_v42 = vrot.slane %v1748_v49, 4  ;;  %v1772_v1 = vrot.slane %v1771_v19, 4 }
 0x298   : > { %v1728_v29 = vrot.slane %v1727_v28, 4 }
 0x299   : > { %v1750_v15 = vadd.f32 %v1749_v42, %v1748_v49  ;;  %v1773_v6 = vadd.f32 %v1772_v1, %v1771_v19 }
 0x29a   : > { %v1729_v31 = vadd.f32 %v1728_v29, %v1727_v28 }
 0x29b   : > { %v1751_v32 = vrot.slane %v1750_v15, 2  ;;  %v1774_v45 = vrot.slane %v1773_v6, 2 }
 0x29c   : > { %v1730_v43 = vrot.slane %v1729_v31, 2 }
 0x29d   : > { %v1752_v37 = vadd.f32 %v1751_v32, %v1750_v15  ;;  %v1775_v21 = vadd.f32 %v1774_v45, %v1773_v6 }
 0x29e   : > { %v1731_v60 = vadd.f32 %v1730_v43, %v1729_v31  ;;  %v1840_v36 = vpop.xlane.xlu1 %1839  ;;  %v1817_v47 = vpop.xlane.xlu2 %1816 }
 0x29f   : > { %v1818_v25 = vrot.slane %v1817_v47, 4  ;;  %v1841_v38 = vrot.slane %v1840_v36, 4  ;;  %v1776_v42 = vrot.slane %v1775_v21, 1 }
 0x2a0   : > { %v1732_v13 = vrot.slane %v1731_v60, 1 }
 0x2a1   : > { %v1819_v10 = vadd.f32 %v1818_v25, %v1817_v47  ;;  %v1842_v20 = vadd.f32 %v1841_v38, %v1840_v36  ;;  %v1777_v38 = vadd.f32 %v1776_v42, %v1775_v21 }
 0x2a2   : > { %v1733_v39 = vadd.f32 %v1732_v13, %v1731_v60  ;;  %v1753_v60 = vrot.slane %v1752_v37, 1 }
 0x2a3   : > { %v1820_v22 = vrot.slane %v1819_v10, 2  ;;  %v1843_v49 = vrot.slane %v1842_v20, 2 }
 0x2a4   : > { %3883 = vpush %v1733_v39 }
 0x2a5   : > { %v1794_v52 = vpop.xlane.xlu0 %1793 }
 0x2a6   : > { %v1760_v0 = vpop.xlane.xlu1 %1759  ;;  %v1783_v57 = vpop.xlane.xlu2 %1782  ;;  %v1795_v51 = vrot.slane %v1794_v52, 4 }
 0x2a7   : > { %v1761_v54 = vrot.slane %v1760_v0, 4  ;;  %v1784_v40 = vrot.slane %v1783_v57, 4 }
 0x2a8   : > { %v1796_v34 = vadd.f32 %v1795_v51, %v1794_v52  ;;  %v1844_v51 = vadd.f32 %v1843_v49, %v1842_v20 }
 0x2a9   : > { %v1762_v23 = vadd.f32 %v1761_v54, %v1760_v0  ;;  %v1785_v30 = vadd.f32 %v1784_v40, %v1783_v57  ;;  %v1821_v54 = vadd.f32 %v1820_v22, %v1819_v10 }
 0x2aa   : > { %v1797_v18 = vrot.slane %v1796_v34, 2 }
 0x2ab   : > { %v1763_v24 = vrot.slane %v1762_v23, 2  ;;  %v1786_v63 = vrot.slane %v1785_v30, 2 }
 0x2ac   : > { %v1798_v36 = vadd.f32 %v1797_v18, %v1796_v34 }
 0x2ad   : > { %v1764_v61 = vadd.f32 %v1763_v24, %v1762_v23  ;;  %v1787_v29 = vadd.f32 %v1786_v63, %v1785_v30  ;;  %v1822_v30 = vrot.slane %v1821_v54, 1 }
 0x2ae   : > { %v1806_v8 = vpop.xlane.xlu1 %1805  ;;  %v1852_v50 = vpop.xlane.xlu2 %1851  ;;  %v1799_v15 = vrot.slane %v1798_v36, 1 }
 0x2af   : > { %v1807_v33 = vrot.slane %v1806_v8, 4  ;;  %v1853_v59 = vrot.slane %v1852_v50, 4  ;;  %v1765_v13 = vrot.slane %v1764_v61, 1  ;;  %v1788_v40 = vrot.slane %v1787_v29, 1 }
 0x2b0   : > { %v1823_v63 = vadd.f32 %v1822_v30, %v1821_v54 }
 0x2b1   : > { %v1808_v41 = vadd.f32 %v1807_v33, %v1806_v8  ;;  %v1854_v2 = vadd.f32 %v1853_v59, %v1852_v50  ;;  %v1754_v33 = vadd.f32 %v1753_v60, %v1752_v37  ;;  %v1766_v6 = vadd.f32 %v1765_v13, %v1764_v61 }
 0x2b2   : > { %v1789_v34 = vadd.f32 %v1788_v40, %v1787_v29  ;;  %v1800_v59 = vadd.f32 %v1799_v15, %v1798_v36 }
 0x2b3   : > { %v1809_v16 = vrot.slane %v1808_v41, 2  ;;  %v1855_v39 = vrot.slane %v1854_v2, 2 }
 0x2b5   : > { %v1810_v31 = vadd.f32 %v1809_v16, %v1808_v41  ;;  %v1856_v25 = vadd.f32 %v1855_v39, %v1854_v2 }
 0x2b7   : > { %v1811_v50 = vrot.slane %v1810_v31, 1 }
 0x2b9   : > { %v1863_v26 = vpop.xlane.xlu0 %1862  ;;  %v1812_v24 = vadd.f32 %v1811_v50, %v1810_v31 }
 0x2ba   : > { %v1864_v62 = vrot.slane %v1863_v26, 4 }
 0x2bb   : > { %v1875_v35 = vpop.xlane.xlu1 %1874 }
 0x2bc   : > { %v1876_v48 = vrot.slane %v1875_v35, 4  ;;  %v1865_v4 = vadd.f32 %v1864_v62, %v1863_v26  ;;  %v1857_v62 = vrot.slane %v1856_v25, 1 }
 0x2be   : > { %v1877_v44 = vadd.f32 %v1876_v48, %v1875_v35  ;;  %v1866_v57 = vrot.slane %v1865_v4, 2  ;;  %v1845_v48 = vrot.slane %v1844_v51, 1 }
 0x2c0   : > { %v1878_v47 = vrot.slane %v1877_v44, 2  ;;  %v1867_v41 = vadd.f32 %v1866_v57, %v1865_v4  ;;  %v1846_v61 = vadd.f32 %v1845_v48, %v1844_v51 }
 0x2c1   : > { %v1738_v14 = vpop.xlane.xlu0 %1737 }
 0x2c2   : > { %v1739_v3 = vrot.slane %v1738_v14, 4  ;;  %v1879_v35 = vadd.f32 %v1878_v47, %v1877_v44  ;;  %v1868_v16 = vrot.slane %v1867_v41, 1 }
 0x2c4   : > { %v1740_v17 = vadd.f32 %v1739_v3, %v1738_v14  ;;  %v1886_v56 = vpop.xlane.xlu2 %1885  ;;  %v1880_v20 = vrot.slane %v1879_v35, 1  ;;  %v1869_v44 = vadd.f32 %v1868_v16, %v1867_v41 }
 0x2c5   : > { %v1887_v27 = vrot.slane %v1886_v56, 4 }
 0x2c6   : > { %v1741_v58 = vrot.slane %v1740_v17, 2 }
 0x2c7   : > { %v1888_v43 = vadd.f32 %v1887_v27, %v1886_v56  ;;  %v1881_v56 = vadd.f32 %v1880_v20, %v1879_v35 }
 0x2c8   : > { %v1742_v28 = vadd.f32 %v1741_v58, %v1740_v17  ;;  %v1858_v58 = vadd.f32 %v1857_v62, %v1856_v25 }
 0x2c9   : > { %v1829_v19 = vpop.xlane.xlu0 %1828  ;;  %v1889_v8 = vrot.slane %v1888_v43, 2 }
 0x2ca   : > { %v1830_v0 = vrot.slane %v1829_v19, 4  ;;  %v1743_v52 = vrot.slane %v1742_v28, 1 }
 0x2cb   : > { %v1890_v32 = vadd.f32 %v1889_v8, %v1888_v43 }
 0x2cc   : > { %v1831_v26 = vadd.f32 %v1830_v0, %v1829_v19  ;;  %v1744_v1 = vadd.f32 %v1743_v52, %v1742_v28 }
 0x2cd   : > { %v1891_v17 = vrot.slane %v1890_v32, 1 }
 0x2ce   : > { %v1832_v23 = vrot.slane %v1831_v26, 2  ;;  %3885 = vpush %v1744_v1 }
 0x2cf   : > { %3887 = vpush %v1754_v33  ;;  %v1892_v22 = vadd.f32 %v1891_v17, %v1890_v32 }
 0x2d0   : > { %3889 = vpush %v1766_v6  ;;  %v1833_v14 = vadd.f32 %v1832_v23, %v1831_v26 }
 0x2d1   : > { %3891 = vpush %v1777_v38  ;;  %v1898_v3 = vpop.xlane.xlu0 %1897 }
 0x2d2   : > { %3893 = vpush %v1789_v34  ;;  %v1899_v45 = vrot.slane %v1898_v3, 4  ;;  %v1834_v10 = vrot.slane %v1833_v14, 1 }
 0x2d3   : > { %3895 = vpush %v1800_v59 }
 0x2d4   : > { %3897 = vpush %v1812_v24  ;;  %v1900_v18 = vadd.f32 %v1899_v45, %v1898_v3  ;;  %v1835_v37 = vadd.f32 %v1834_v10, %v1833_v14 }
 0x2d5   : > { %3899 = vpush %v1823_v63  ;;  %s3884_s6 = spop %3883 }
 0x2d6   : > { %v1901_v2 = vrot.slane %v1900_v18, 2  ;;  %3901 = vpush %v1835_v37 }
 0x2d7   : > { %3903 = vpush %v1846_v61 }
 0x2d8   : > { %3905 = vpush %v1858_v58  ;;  %v1902_v4 = vadd.f32 %v1901_v2, %v1900_v18 }
 0x2d9   : > { %3907 = vpush %v1869_v44 }
 0x2da   : > { %3909 = vpush %v1881_v56  ;;  %v1903_v27 = vrot.slane %v1902_v4, 1 }
 0x2db   : > { %3911 = vpush %v1892_v22 }
 0x2dc   : > { %v1904_v21 = vadd.f32 %v1903_v27, %v1902_v4 }
 0x2de   : > { %3913 = vpush %v1904_v21 }
 0x2ff   : > { %s3886_s13 = spop %3885 }
 0x300   : > { %s3888_s21 = spop %3887 }
 0x301   : > { %s1756_s25 = sadd.f32 %s3888_s21, %s3884_s6  ;;  %s3890_s2 = spop %3889 }
 0x302   : > { %s1768_s10 = sadd.f32 %s3890_s2, %s3886_s13  ;;  %s3892_s26 = spop %3891 }
 0x303   : > { %s1779_s23 = sadd.f32 %s3892_s26, %s1756_s25  ;;  %s3894_s7 = spop %3893 }
 0x304   : > { %s1791_s14 = sadd.f32 %s3894_s7, %s1768_s10  ;;  %s3896_s15 = spop %3895 }
 0x305   : > { %s1802_s29 = sadd.f32 %s3896_s15, %s1779_s23  ;;  %s3898_s11 = spop %3897 }
 0x306   : > { %s1814_s28 = sadd.f32 %s3898_s11, %s1791_s14  ;;  %s3900_s12 = spop %3899 }
 0x307   : > { %s1825_s8 = sadd.f32 %s3900_s12, %s1802_s29  ;;  %s3902_s16 = spop %3901 }
 0x308   : > { %s1837_s4 = sadd.f32 %s3902_s16, %s1814_s28  ;;  %s3904_s18 = spop %3903 }
 0x309   : > { %s1848_s3 = sadd.f32 %s3904_s18, %s1825_s8  ;;  %s3906_s22 = spop %3905 }
 0x30a   : > { %s1860_s1 = sadd.f32 %s3906_s22, %s1837_s4  ;;  %s3908_s30 = spop %3907 }
 0x30b   : > { %s1871_s17 = sadd.f32 %s3908_s30, %s1848_s3  ;;  %s3910_s5 = spop %3909 }
 0x30c   : > { %s3912_s24 = spop %3911  ;;  %s1883_s19 = sadd.f32 %s3910_s5, %s1860_s1 }
 0x30d   : > { %s1894_s9 = sadd.f32 %s3912_s24, %s1871_s17 }
 0x30e   : > { %s1926_s2 = sld [smem:[#allocation15]] }
 0x30f   : > { %s1907_s20 = smul.f32 0.001953125, %s1894_s9  ;;  %s3914_s27 = spop %3913 }
 0x310   : > { %s1906_s0 = sadd.f32 %s3914_s27, %s1883_s19 }
 0x311   : > { %s1909_s6 = smul.f32 %s1907_s20, %s1907_s20  ;;  %s5909_s10 = sld [smem:[#allocation16]]  ;;  %v5919_v36 = vstv %s1907_s20 }
 0x312   : > { %s1908_s13 = smul.f32 0.001953125, %s1906_s0  ;;  %s3682_s26 = sld [smem:[#allocation15 + $0x1]]  ;;  %v1925_v39 = vsub.f32 %v5730_v46, %v5919_v36  ;;  %v1953_v47 = vsub.f32 %v5727_v53, %v5919_v36  ;;  %v1981_v57 = vsub.f32 %v5724_v11, %v5919_v36  ;;  %v2009_v11 = vsub.f32 %v5812_v7, %v5919_v36 }
 0x313   : > { %s5911_s23 = sld [smem:[#allocation16 + $0x1]]  ;;  %v2037_v50 = vsub.f32 %v5765_v55, %v5919_v36  ;;  %v2065_v41 = vsub.f32 %v5767_v12, %v5919_v36  ;;  %v2093_v10 = vsub.f32 %v5883_v9, %v5919_v36  ;;  %v2121_v27 = vsub.f32 %v5899_v5, %v5919_v36 }
 0x314   : > { %s1910_s21 = ssub.f32 %s1908_s13, %s1909_s6 }
 0x315   : > { %s3685_s7 = sld [smem:[#allocation15 + $0x2]] }
 0x316   : > { %s1911_s25 = sadd.f32 1e-05, %s1910_s21 }
 0x317   : > { %s5913_s14 = sld [smem:[#allocation16 + $0x2]]  ;;  %v1931_v52 = vstv %s5909_s10 }
 0x318   : > { %v1912_v49 = vstv %s1911_s25  ;;  %s5915_s15 = sld [smem:[#allocation15 + $0x3]] }
 0x319   : > { %4130 = vrsqrt.f32 %v1912_v49  ;;  %vm1919_vm2 = vweird.f32 %v1912_v49  ;;  %s5917_s29 = sld [smem:[#allocation15 + $0x4]]  ;;  %v1959_v54 = vstv %s5911_s23 }
 0x31a   : > { %s5921_s11 = sld [smem:[#allocation16 + $0x3]] }
 0x31b   : > { %s5925_s12 = sld [smem:[#allocation15 + $0x5]] }
 0x31c   : > { %s5928_s16 = sld [smem:[#allocation16 + $0x4]] }
 0x31d   : > { %s5942_s22 = sld [smem:[#allocation16 + $0x5]]  ;;  %v1987_v1 = vstv %s5913_s14 }
 0x31e   : > { %s5947_s30 = sld [smem:[#allocation15 + $0x6]] }
 0x31f   : > { %v4131_v28 = vpop.eup %4130  ;;  %s5970_s5 = sld [smem:[#allocation16 + $0x6]] }
 0x320   : > { %v1914_v29 = vmul.f32 %v4131_v28, %v1912_v49  ;;  %vm1920_vm1 = vweird.f32 %v4131_v28  ;;  %v2015_v6 = vstv %s5921_s11  ;;  %s5993_s9 = sld [smem:[#allocation15 + $0x7]] }
 0x321   : > { %vm1921_vm3 = vmor %vm1919_vm2, %vm1920_vm1  ;;  %s6029_s19 = sld [smem:[#allocation16 + $0x7]] }
 0x322   : > { %v1915_v31 = vmul.f32 %v4131_v28, %v1914_v29  ;;  %v2043_v7 = vstv %s5928_s16  ;;  %s6036_s20 = sld [smem:[#allocation18 + $0x100]] }
 0x323   : > { %v2071_v14 = vstv %s5942_s22  ;;  %s6049_s0 = sld [smem:[#allocation18 + $0x101]] }
 0x324   : > { %v1916_v43 = vmul.f32 0.5, %v1915_v31  ;;  %s6057_s6 = sld [smem:[#allocation18 + $0x102]] }
 0x325   : > { %v2099_v61 = vstv %s5970_s5  ;;  %s6072_s13 = sld [smem:[#allocation18 + $0x103]] }
 0x326   : > { %v1917_v19 = vsub.f32 1.5, %v1916_v43  ;;  %s6077_s21 = sld [smem:[#allocation18 + $0x104]] }
 0x327   : > { %s6091_s25 = sld [smem:[#allocation18 + $0x105]] }
 0x328   : > { %v1918_v60 = vmul.f32 %v4131_v28, %v1917_v19  ;;  %s6116_s10 = sld [smem:[#allocation18 + $0x107]] }
 0x329   : > { %s6140_s23 = sld [smem:[#allocation18 + $0x81]] }
 0x32a   : > { %v1922_v13 = vsel %vm1921_vm3, %v4131_v28, %v1918_v60  ;;  %s6164_s14 = sld [smem:[#allocation18 + $0x83]] }
 0x32b   : > { %3915 = vpush %v1922_v13  ;;  %s6199_s11 = sld [smem:[#allocation18 + $0x86]] }
 0x32c   : > { %s6229_s16 = sld [smem:[#allocation18 + $0x2]] }
 0x32d   : > { %s6255_s22 = sld [smem:[#allocation18 + $0x6]] }
 0x32e   : > { %s6279_s5 = sld [smem:[#allocation18 + $0x282]] }
 0x35c   : > { %s5923_s28 = spop %3915 }
 0x35d   : > { %s1927_s8 = smul.f32 %s5923_s28, %s1926_s2  ;;  %s6108_s2 = sld [smem:[#allocation18 + $0x106]] }
 0x35e   : > { %s1955_s4 = smul.f32 %s5923_s28, %s3682_s26  ;;  %s6125_s26 = sld [smem:[#allocation18 + $0x80]] }
 0x35f   : > { %v1928_v0 = vstv %s1927_s8  ;;  %s1983_s18 = smul.f32 %s5923_s28, %s3685_s7  ;;  %s6156_s7 = sld [smem:[#allocation18 + $0x82]] }
 0x360   : > { %v1929_v8 = vmul.f32 %v1928_v0, %v1925_v39  ;;  %v1956_v42 = vstv %s1955_s4  ;;  %s2011_s3 = smul.f32 %s5923_s28, %s5915_s15  ;;  %s6173_s15 = sld [smem:[#allocation18 + $0x84]] }
 0x361   : > { %v1957_v46 = vmul.f32 %v1956_v42, %v1953_v47  ;;  %v1984_v26 = vstv %s1983_s18  ;;  %s2039_s1 = smul.f32 %s5923_s28, %s5917_s29  ;;  %s6191_s29 = sld [smem:[#allocation18 + $0x85]] }
 0x362   : > { %v5949_v53 = vadd.f32 %v1931_v52, %v1929_v8  ;;  %v1985_v40 = vmul.f32 %v1984_v26, %v1981_v57  ;;  %v2012_v23 = vstv %s2011_s3  ;;  %s2067_s17 = smul.f32 %s5923_s28, %s5925_s12  ;;  %s6218_s12 = sld [smem:[#allocation18]] }
 0x363   : > { %v5955_v33 = vadd.f32 %v1959_v54, %v1957_v46  ;;  %v2013_v35 = vmul.f32 %v2012_v23, %v2009_v11  ;;  %v2040_v38 = vstv %s2039_s1  ;;  %s2095_s24 = smul.f32 %s5923_s28, %s5947_s30  ;;  %s6225_s8 = sld [smem:[#allocation18 + $0x1]] }
 0x364   : > { %v3681_v15 = vmul.f32 -1.442695, %v5949_v53  ;;  %v5958_v51 = vadd.f32 %v1987_v1, %v1985_v40  ;;  %v2041_v30 = vmul.f32 %v2040_v38, %v2037_v50  ;;  %v2068_v24 = vstv %s2067_s17  ;;  %s2123_s27 = smul.f32 %s5923_s28, %s5993_s9  ;;  %s6208_s28 = sld [smem:[#allocation18 + $0x87]] }
 0x365   : > { %v3684_v25 = vmul.f32 -1.442695, %v5955_v33  ;;  %v5968_v32 = vadd.f32 %v2015_v6, %v2013_v35  ;;  %v2069_v3 = vmul.f32 %v2068_v24, %v2065_v41  ;;  %v2096_v16 = vstv %s2095_s24  ;;  %s6240_s4 = sld [smem:[#allocation18 + $0x3]] }
 0x366   : > { %4132 = vpow2.f32 %v3681_v15  ;;  %v3687_v55 = vmul.f32 -1.442695, %v5958_v51  ;;  %v5972_v34 = vadd.f32 %v2043_v7, %v2041_v30  ;;  %v2097_v37 = vmul.f32 %v2096_v16, %v2093_v10  ;;  %s6244_s18 = sld [smem:[#allocation18 + $0x4]] }
 0x367   : > { %4134 = vpow2.f32 %v3684_v25  ;;  %v3690_v59 = vmul.f32 -1.442695, %v5968_v32  ;;  %v5979_v45 = vadd.f32 %v2071_v14, %v2069_v3  ;;  %v2223_v7 = vstv %s6072_s13  ;;  %s6251_s3 = sld [smem:[#allocation18 + $0x5]] }
 0x368   : > { %4136 = vpow2.f32 %v3687_v55  ;;  %v3693_v48 = vmul.f32 -1.442695, %v5972_v34  ;;  %v5998_v22 = vadd.f32 %v2099_v61, %v2097_v37  ;;  %v2127_v37 = vstv %s6029_s19  ;;  %s6261_s1 = sld [smem:[#allocation18 + $0x7]] }
 0x369   : > { %4138 = vpow2.f32 %v3690_v59  ;;  %v3696_v63 = vmul.f32 -1.442695, %v5979_v45  ;;  %s6267_s30 = sld [smem:[#allocation18 + $0x280]] }
 0x36a   : > { %4140 = vpow2.f32 %v3693_v48  ;;  %v3699_v43 = vmul.f32 -1.442695, %v5998_v22  ;;  %s6274_s17 = sld [smem:[#allocation18 + $0x281]] }
 0x36b   : > { %s6285_s24 = sld [smem:[#allocation18 + $0x283]] }
 0x36c   : > { %v4133_v12 = vpop.eup %4132  ;;  %s6293_s9 = sld [smem:[#allocation18 + $0x284]] }
 0x36d   : > { %v4135_v62 = vpop.eup %4134  ;;  %v5983_v20 = vadd.f32 1.0, %v4133_v12  ;;  %v2124_v12 = vstv %s2123_s27  ;;  %s6297_s19 = sld [smem:[#allocation18 + $0x285]] }
 0x36e   : > { %v4137_v17 = vpop.eup %4136  ;;  %v5986_v18 = vadd.f32 1.0, %v4135_v62  ;;  %v2227_v62 = vstv %s6077_s21  ;;  %s6309_s27 = sld [smem:[#allocation18 + $0x287]] }
 0x36f   : > { %4142 = vrcp.f32 %v5983_v20  ;;  %v4139_v2 = vpop.eup %4138  ;;  %v5991_v58 = vadd.f32 1.0, %v4137_v17  ;;  %v1948_v56 = vand.u32 2147483648, %v5983_v20  ;;  %v1946_v4 = vand.u32 2147483647, %v5983_v20  ;;  %s6328_s13 = sld [smem:[#allocation18 + $0x202]] }
 0x370   : > { %4144 = vrcp.f32 %v5986_v18  ;;  %v4141_v9 = vpop.eup %4140  ;;  %v5996_v44 = vadd.f32 1.0, %v4139_v2  ;;  %vm1942_vm4 = vweird.f32 %v5983_v20  ;;  %v1976_v21 = vand.u32 2147483648, %v5986_v18  ;;  %s6332_s21 = sld [smem:[#allocation18 + $0x203]] }
 0x371   : > { %4146 = vpow2.f32 %v3696_v63  ;;  %v1974_v28 = vand.u32 2147483647, %v5986_v18  ;;  %v2004_v29 = vand.u32 2147483648, %v5991_v58  ;;  %v6011_v31 = vadd.f32 1.0, %v4141_v9 }
 0x372   : > { %4148 = vrcp.f32 %v5991_v58  ;;  %v1949_v13 = vor.u32 1.1754944e-38, %v1948_v56  ;;  %vm1970_vm5 = vweird.f32 %v5986_v18  ;;  %v2032_v39 = vand.u32 2147483648, %v5996_v44 }
 0x373   : > { %4150 = vrcp.f32 %v5996_v44  ;;  %vm6020_vm6 = vcmp.eq.f32.partialorder %v1946_v4, 8.507059e+37  ;;  %v2002_v57 = vand.u32 2147483647, %v5991_v58  ;;  %v2030_v8 = vand.u32 2147483647, %v5996_v44 }
 0x374   : > { %4152 = vrcp.f32 %v6011_v31  ;;  %v6031_v54 = vor.u32 1.1754944e-38, %v1976_v21  ;;  %vm1998_vm7 = vweird.f32 %v5991_v58  ;;  %vm6040_vm8 = vcmp.eq.f32.partialorder %v1974_v28, 8.507059e+37 }
 0x375   : > { %v6007_v49 = vpop.eup %4142  ;;  %v6044_v11 = vor.u32 1.1754944e-38, %v2004_v29  ;;  %vm2026_vm9 = vweird.f32 %v5996_v44  ;;  %4154 = vpow2.f32 %v3699_v43  ;;  %v2033_v6 = vor.u32 1.1754944e-38, %v2032_v39 }
 0x376   : > { %v6014_v19 = vpop.eup %4144  ;;  %v1938_v60 = vmul.f32 %v6007_v49, %v5983_v20  ;;  %vm1943_vm10 = vweird.f32 %v6007_v49  ;;  %vm6061_vm12 = vcmp.eq.f32.partialorder %v2002_v57, 8.507059e+37  ;;  %vm6067_vm13 = vcmp.eq.f32.partialorder %v2030_v8, 8.507059e+37 }
 0x377   : > { %v4147_v47 = vpop.eup %4146  ;;  %v1966_v52 = vmul.f32 %v6014_v19, %v5986_v18  ;;  %vm1971_vm11 = vweird.f32 %v6014_v19  ;;  %v2058_v55 = vand.u32 2147483647, %v6011_v31  ;;  %v2060_v24 = vand.u32 2147483648, %v6011_v31  ;;  %vm6085_vm14 = vmor %vm1942_vm4, %vm1943_vm10 }
 0x378   : > { %v1939_v42 = vsub.f32 1.0, %v1938_v60  ;;  %v6034_v46 = vadd.f32 1.0, %v4147_v47  ;;  %v6038_v26 = vpop.eup %4148  ;;  %vm2054_vm15 = vweird.f32 %v6011_v31  ;;  %vm6100_vm1 = vmor %vm1970_vm5, %vm1971_vm11  ;;  %v2192_v56 = vstv %s6164_s14  ;;  %s6362_s14 = sld [smem:[#allocation18 + $0x181]] }
 0x379   : > { %v1967_v1 = vsub.f32 1.0, %v1966_v52  ;;  %v6051_v50 = vpop.eup %4150  ;;  %v1994_v23 = vmul.f32 %v6038_v26, %v5991_v58  ;;  %vm1999_vm2 = vweird.f32 %v6038_v26  ;;  %vm6121_vm4 = vcmp.eq.f32.partialorder %v2058_v55, 8.507059e+37 }
 0x37a   : > { %v1940_v15 = vmul.f32 %v6007_v49, %v1939_v42  ;;  %v2022_v38 = vmul.f32 %v6051_v50, %v5996_v44  ;;  %4156 = vrcp.f32 %v6034_v46  ;;  %v6079_v14 = vpop.eup %4152  ;;  %vm2027_vm3 = vweird.f32 %v6051_v50  ;;  %vm6131_vm5 = vmor %vm1998_vm7, %vm1999_vm2 }
 0x37b   : > { %v1968_v25 = vmul.f32 %v6014_v19, %v1967_v1  ;;  %v1995_v41 = vsub.f32 1.0, %v1994_v23  ;;  %v2050_v63 = vmul.f32 %v6079_v14, %v6011_v31  ;;  %v4155_v16 = vpop.eup %4154  ;;  %v2061_v4 = vor.u32 1.1754944e-38, %v2060_v24  ;;  %vm2028_vm7 = vmor %vm2026_vm9, %vm2027_vm3 }
 0x37c   : > { %v1941_v30 = vadd.f32 %v6007_v49, %v1940_v15  ;;  %v2023_v48 = vsub.f32 1.0, %v2022_v38  ;;  %v2086_v28 = vand.u32 2147483647, %v6034_v46  ;;  %v6138_v29 = vadd.f32 1.0, %v4155_v16 }
 0x37d   : > { %v1969_v3 = vadd.f32 %v6014_v19, %v1968_v25  ;;  %v1996_v20 = vmul.f32 %v6038_v26, %v1995_v41  ;;  %v2051_v9 = vsub.f32 1.0, %v2050_v63  ;;  %v2088_v8 = vand.u32 2147483648, %v6034_v46 }
 0x37e   : > { %v1945_v10 = vsel %vm6085_vm14, %v6007_v49, %v1941_v30  ;;  %v2024_v18 = vmul.f32 %v6051_v50, %v2023_v48  ;;  %4158 = vrcp.f32 %v6138_v29  ;;  %vm6186_vm10 = vcmp.eq.f32.partialorder %v2086_v28, 8.507059e+37 }
 0x37f   : > { %v1973_v17 = vsel %vm6100_vm1, %v6014_v19, %v1969_v3  ;;  %v1950_v61 = vsel %vm6020_vm6, %v1949_v13, %v1945_v10  ;;  %v1997_v2 = vadd.f32 %v6038_v26, %v1996_v20  ;;  %vm2055_vm6 = vweird.f32 %v6079_v14 }
 0x380   : > { %v2025_v49 = vadd.f32 %v6051_v50, %v2024_v18  ;;  %v4157_v43 = vpop.eup %4156  ;;  %v1978_v19 = vsel %vm6040_vm8, %v6031_v54, %v1973_v17  ;;  %v2052_v60 = vmul.f32 %v6079_v14, %v2051_v9  ;;  %v2125_v13 = vmul.f32 %v2124_v12, %v2121_v27  ;;  %vm6182_vm9 = vmor %vm2054_vm15, %vm2055_vm6 }
 0x381   : > { %v2001_v58 = vsel %vm6131_vm5, %v6038_v26, %v1997_v2  ;;  %v6159_v39 = vmul.f32 %v1950_v61, %v5949_v53  ;;  %v2078_v0 = vmul.f32 %v4157_v43, %v6034_v46  ;;  %vm2082_vm8 = vweird.f32 %v6034_v46 }
 0x382   : > { %v2029_v47 = vsel %vm2028_vm7, %v6051_v50, %v2025_v49  ;;  %v2006_v44 = vsel %vm6061_vm12, %v6044_v11, %v2001_v58  ;;  %v2053_v36 = vadd.f32 %v6079_v14, %v2052_v60  ;;  %v6176_v53 = vmul.f32 %v1978_v19, %v5955_v33 }
 0x383   : > { %v2034_v5 = vsel %vm6067_vm13, %v2033_v6, %v2029_v47  ;;  %v2079_v52 = vsub.f32 1.0, %v2078_v0  ;;  %vm2083_vm11 = vweird.f32 %v4157_v43  ;;  %v6196_v31 = vadd.f32 %v2127_v37, %v2125_v13 }
 0x384   : > { %v2057_v33 = vsel %vm6182_vm9, %v6079_v14, %v2053_v36  ;;  %v2212_v42 = vstv %s6036_s20  ;;  %v6202_v54 = vmul.f32 %v2006_v44, %v5958_v51  ;;  %v6205_v26 = vmul.f32 %v2034_v5, %v5968_v32  ;;  %v4159_v35 = vpop.eup %4158  ;;  %vm2084_vm12 = vmor %vm2082_vm8, %vm2083_vm11  ;;  %s6303_s20 = sld [smem:[#allocation18 + $0x286]] }
 0x385   : > { %v2080_v1 = vmul.f32 %v4157_v43, %v2079_v52  ;;  %v2213_v40 = vmul.f32 %v2212_v42, %v6159_v39  ;;  %v2114_v11 = vand.u32 2147483647, %v6138_v29  ;;  %v2116_v50 = vand.u32 2147483648, %v6138_v29 }
 0x386   : > { %v3702_v15 = vmul.f32 -1.442695, %v6196_v31  ;;  %v2215_v23 = vstv %s6049_s0  ;;  %v2062_v51 = vsel %vm6121_vm4, %v2061_v4, %v2057_v33  ;;  %v2219_v25 = vstv %s6057_s6  ;;  %s6313_s0 = sld [smem:[#allocation18 + $0x200]] }
 0x387   : > { %v2081_v6 = vadd.f32 %v4157_v43, %v2080_v1  ;;  %v2216_v32 = vmul.f32 %v2215_v23, %v6176_v53  ;;  %v2089_v38 = vor.u32 1.1754944e-38, %v2088_v8  ;;  %vm2110_vm13 = vweird.f32 %v6138_v29  ;;  %s6324_s6 = sld [smem:[#allocation18 + $0x201]] }
 0x388   : > { %4160 = vpow2.f32 %v3702_v15  ;;  %v2106_v30 = vmul.f32 %v4159_v35, %v6138_v29  ;;  %v2220_v24 = vmul.f32 %v2219_v25, %v6202_v54  ;;  %v6232_v46 = vmul.f32 %v2062_v51, %v5972_v34 }
 0x389   : > { %v2085_v55 = vsel %vm2084_vm12, %v4157_v43, %v2081_v6  ;;  %v2217_v41 = vadd.f32 %v2216_v32, %v2213_v40  ;;  %vm6236_vm14 = vcmp.eq.f32.partialorder %v2114_v11, 8.507059e+37  ;;  %v2117_v3 = vor.u32 1.1754944e-38, %v2116_v50 }
 0x38a   : > { %v2090_v14 = vsel %vm6186_vm10, %v2089_v38, %v2085_v55  ;;  %v2107_v48 = vsub.f32 1.0, %v2106_v30  ;;  %v2224_v10 = vmul.f32 %v2223_v7, %v6205_v26  ;;  %vm2111_vm15 = vweird.f32 %v4159_v35 }
 0x38b   : > { %v2221_v12 = vadd.f32 %v2220_v24, %v2217_v41  ;;  %v6247_v34 = vmul.f32 %v2090_v14, %v5979_v45  ;;  %v2181_v20 = vstv %s6125_s26  ;;  %v2184_v63 = vstv %s6140_s23  ;;  %vm2112_vm1 = vmor %vm2110_vm13, %vm2111_vm15  ;;  %s6346_s26 = sld [smem:[#allocation18 + $0x206]] }
 0x38c   : > { %v2108_v16 = vmul.f32 %v4159_v35, %v2107_v48  ;;  %v2182_v18 = vmul.f32 %v2181_v20, %v6159_v39  ;;  %v2188_v37 = vstv %s6156_s7  ;;  %v2228_v2 = vmul.f32 %v2227_v62, %v6232_v46  ;;  %s6350_s23 = sld [smem:[#allocation18 + $0x207]] }
 0x38d   : > { %v2225_v17 = vadd.f32 %v2224_v10, %v2221_v12  ;;  %v2231_v45 = vstv %s6091_s25  ;;  %v2185_v9 = vmul.f32 %v2184_v63, %v6176_v53  ;;  %v2235_v49 = vstv %s6108_s2  ;;  %s6337_s25 = sld [smem:[#allocation18 + $0x204]] }
 0x38e   : > { %v4161_v61 = vpop.eup %4160  ;;  %v2109_v4 = vadd.f32 %v4159_v35, %v2108_v16  ;;  %v2196_v28 = vstv %s6173_s15  ;;  %v2239_v19 = vstv %s6116_s10  ;;  %v2189_v60 = vmul.f32 %v2188_v37, %v6202_v54  ;;  %s6342_s2 = sld [smem:[#allocation18 + $0x205]] }
 0x38f   : > { %v6263_v21 = vadd.f32 1.0, %v4161_v61  ;;  %v2229_v43 = vadd.f32 %v2228_v2, %v2225_v17  ;;  %v2186_v58 = vadd.f32 %v2185_v9, %v2182_v18  ;;  %v2232_v47 = vmul.f32 %v2231_v45, %v6247_v34  ;;  %s6358_s7 = sld [smem:[#allocation18 + $0x180]] }
 0x390   : > { %v2113_v13 = vsel %vm2112_vm1, %v4159_v35, %v2109_v4  ;;  %v2193_v0 = vmul.f32 %v2192_v56, %v6205_v26  ;;  %v2197_v5 = vmul.f32 %v2196_v28, %v6232_v46  ;;  %v2200_v36 = vstv %s6191_s29  ;;  %s6368_s15 = sld [smem:[#allocation18 + $0x182]] }
 0x391   : > { %4162 = vrcp.f32 %v6263_v21  ;;  %v2118_v29 = vsel %vm6236_vm14, %v2117_v3, %v2113_v13  ;;  %v2190_v44 = vadd.f32 %v2189_v60, %v2186_v58  ;;  %v2142_v52 = vand.u32 2147483647, %v6263_v21  ;;  %s6375_s29 = sld [smem:[#allocation18 + $0x183]] }
 0x392   : > { %v6288_v27 = vmul.f32 %v2118_v29, %v5998_v22  ;;  %v2144_v57 = vand.u32 2147483648, %v6263_v21  ;;  %v2150_v8 = vstv %s6218_s12  ;;  %v2233_v33 = vadd.f32 %v2232_v47, %v2229_v43  ;;  %s6390_s12 = sld [smem:[#allocation18 + $0x185]] }
 0x393   : > { %v2194_v42 = vadd.f32 %v2193_v0, %v2190_v44  ;;  %v2151_v1 = vmul.f32 %v2150_v8, %v6159_v39  ;;  %v2153_v40 = vstv %s6225_s8  ;;  %v2204_v11 = vstv %s6199_s11  ;;  %s6381_s11 = sld [smem:[#allocation18 + $0x184]] }
 0x394   : > { %v2208_v50 = vstv %s6208_s28  ;;  %v2154_v22 = vmul.f32 %v2153_v40, %v6176_v53  ;;  %v2157_v15 = vstv %s6229_s16  ;;  %vm2138_vm2 = vweird.f32 %v6263_v21  ;;  %s6395_s8 = sld [smem:[#allocation18 + $0x186]] }
 0x395   : > { %v2236_v23 = vmul.f32 %v2235_v49, %v6288_v27  ;;  %v2198_v51 = vadd.f32 %v2197_v5, %v2194_v42  ;;  %v2161_v6 = vstv %s6240_s4  ;;  %v2165_v32 = vstv %s6244_s18  ;;  %s6404_s10 = sld [smem:[#allocation18 + $0x300]] }
 0x396   : > { %v2145_v35 = vor.u32 1.1754944e-38, %v2144_v57  ;;  %v2201_v38 = vmul.f32 %v2200_v36, %v6247_v34  ;;  %v2155_v7 = vadd.f32 %v2154_v22, %v2151_v1  ;;  %v2158_v55 = vmul.f32 %v2157_v15, %v6202_v54  ;;  %s6409_s28 = sld [smem:[#allocation18 + $0x301]] }
 0x397   : > { %v4163_v25 = vpop.eup %4162  ;;  %vm6316_vm3 = vcmp.eq.f32.partialorder %v2142_v52, 8.507059e+37  ;;  %v6320_v24 = vadd.f32 %v2236_v23, %v2233_v33  ;;  %v2205_v14 = vmul.f32 %v2204_v11, %v6288_v27  ;;  %v2162_v59 = vmul.f32 %v2161_v6, %v6205_v26  ;;  %s6417_s16 = sld [smem:[#allocation18 + $0x302]] }
 0x398   : > { %v2134_v30 = vmul.f32 %v4163_v25, %v6263_v21  ;;  %v2202_v3 = vadd.f32 %v2201_v38, %v2198_v51  ;;  %v2159_v48 = vadd.f32 %v2158_v55, %v2155_v7  ;;  %v2166_v12 = vmul.f32 %v2165_v32, %v6232_v46  ;;  %s6422_s4 = sld [smem:[#allocation18 + $0x187]] }
 0x399   : > { %v2169_v10 = vstv %s6251_s3  ;;  %vm2139_vm4 = vweird.f32 %v4163_v25  ;;  %v2173_v20 = vstv %s6255_s22  ;;  %v2305_v63 = vstv %s6267_s30  ;;  %s6429_s18 = sld [smem:[#allocation18 + $0x303]] }
 0x39a   : > { %v2135_v62 = vsub.f32 1.0, %v2134_v30  ;;  %v2163_v16 = vadd.f32 %v2162_v59, %v2159_v48  ;;  %v2306_v17 = vmul.f32 %v2305_v63, %v6159_v39  ;;  %v2308_v18 = vstv %s6274_s17  ;;  %vm2140_vm5 = vmor %vm2138_vm2, %vm2139_vm4  ;;  %s6434_s3 = sld [smem:[#allocation18 + $0x304]] }
 0x39b   : > { %v2312_v37 = vstv %s6279_s5  ;;  %v2170_v2 = vmul.f32 %v2169_v10, %v6247_v34  ;;  %v2309_v45 = vmul.f32 %v2308_v18, %v6176_v53  ;;  %v2316_v9 = vstv %s6285_s24  ;;  %s6438_s22 = sld [smem:[#allocation18 + $0x305]] }
 0x39c   : > { %v2136_v61 = vmul.f32 %v4163_v25, %v2135_v62  ;;  %v2206_v56 = vadd.f32 %v2205_v14, %v2202_v3  ;;  %v2167_v4 = vadd.f32 %v2166_v12, %v2163_v16  ;;  %v2177_v49 = vstv %s6261_s1  ;;  %s6441_s1 = sld [smem:[#allocation18 + $0x380]] }
 0x39d   : > { %v2320_v28 = vstv %s6293_s9  ;;  %v2174_v58 = vmul.f32 %v2173_v20, %v6288_v27  ;;  %v2310_v60 = vadd.f32 %v2309_v45, %v2306_v17  ;;  %v2313_v13 = vmul.f32 %v2312_v37, %v6202_v54  ;;  %s6447_s30 = sld [smem:[#allocation18 + $0x381]] }
 0x39e   : > { %v2137_v43 = vadd.f32 %v4163_v25, %v2136_v61  ;;  %v2171_v47 = vadd.f32 %v2170_v2, %v2167_v4  ;;  %v2317_v0 = vmul.f32 %v2316_v9, %v6205_v26  ;;  %v2324_v29 = vstv %s6297_s19  ;;  %s6452_s17 = sld [smem:[#allocation18 + $0x382]] }
 0x39f   : > { %v2274_v44 = vstv %s6313_s0  ;;  %v2314_v36 = vadd.f32 %v2313_v13, %v2310_v60  ;;  %v2321_v52 = vmul.f32 %v2320_v28, %v6232_v46  ;;  %v2328_v57 = vstv %s6303_s20  ;;  %s6457_s5 = sld [smem:[#allocation18 + $0x306]] }
 0x3a0   : > { %v2141_v5 = vsel %vm2140_vm5, %v4163_v25, %v2137_v43  ;;  %v2175_v8 = vadd.f32 %v2174_v58, %v2171_v47  ;;  %v2275_v33 = vmul.f32 %v2274_v44, %v6159_v39  ;;  %v2277_v42 = vstv %s6324_s6  ;;  %s6463_s24 = sld [smem:[#allocation18 + $0x383]] }
 0x3a1   : > { %v2146_v21 = vsel %vm6316_vm3, %v2145_v35, %v2141_v5  ;;  %v2318_v40 = vadd.f32 %v2317_v0, %v2314_v36  ;;  %v2278_v11 = vmul.f32 %v2277_v42, %v6176_v53  ;;  %v2281_v22 = vstv %s6328_s13  ;;  %s6468_s9 = sld [smem:[#allocation18 + $0x307]] }
 0x3a2   : > { %v6371_v1 = vmul.f32 %v2146_v21, %v6196_v31  ;;  %v2325_v15 = vmul.f32 %v2324_v29, %v6247_v34  ;;  %v2329_v23 = vmul.f32 %v2328_v57, %v6288_v27  ;;  %v2332_v51 = vstv %s6309_s27  ;;  %s6474_s19 = sld [smem:[#allocation18 + $0x384]] }
 0x3a3   : > { %v2285_v6 = vstv %s6332_s21  ;;  %v2322_v35 = vadd.f32 %v2321_v52, %v2318_v40  ;;  %v2279_v38 = vadd.f32 %v2278_v11, %v2275_v33  ;;  %v2282_v7 = vmul.f32 %v2281_v22, %v6202_v54  ;;  %s6483_s20 = sld [smem:[#allocation18 + $0x385]] }
 0x3a4   : > { %v2240_v31 = vmul.f32 %v2239_v19, %v6371_v1  ;;  %v2209_v32 = vmul.f32 %v2208_v50, %v6371_v1  ;;  %v2178_v25 = vmul.f32 %v2177_v49, %v6371_v1  ;;  %v2289_v55 = vstv %s6337_s25  ;;  %s6491_s27 = sld [smem:[#allocation18 + $0x386]] }
 0x3a5   : > { %v2293_v30 = vstv %s6342_s2  ;;  %v2326_v50 = vadd.f32 %v2325_v15, %v2322_v35  ;;  %v2333_v59 = vmul.f32 %v2332_v51, %v6371_v1  ;;  %v2283_v3 = vadd.f32 %v2282_v7, %v2279_v38  ;;  %s6504_s0 = sld [smem:[#allocation18 + $0x387]] }
 0x3a6   : > { %v6398_v41 = vadd.f32 %v2240_v31, %v6320_v24  ;;  %v6400_v19 = vadd.f32 %v2209_v32, %v2206_v56  ;;  %v6402_v14 = vadd.f32 %v2178_v25, %v2175_v8  ;;  %v2286_v48 = vmul.f32 %v2285_v6, %v6205_v26 }
 0x3a7   : > { %v2297_v12 = vstv %s6346_s26  ;;  %v2330_v20 = vadd.f32 %v2329_v23, %v2326_v50  ;;  %v2290_v16 = vmul.f32 %v2289_v55, %v6232_v46  ;;  %v2243_v17 = vstv %s6358_s7 }
 0x3a8   : > { %v2441_v24 = vsel %vm835_vm0, %v6398_v41, 0.0  ;;  %v2418_v10 = vsel %vm835_vm0, %v6400_v19, 0.0  ;;  %v2397_v62 = vsel %vm835_vm0, %v6402_v14, 0.0  ;;  %v2287_v63 = vadd.f32 %v2286_v48, %v2283_v3 }
 0x3a9   : > { %2442 = vadd.xlane.f32.xlu2 %v2441_v24  ;;  %2419 = vadd.xlane.f32.xlu0 %v2418_v10  ;;  %v2246_v18 = vstv %s6362_s14  ;;  %v6424_v37 = vadd.f32 %v2333_v59, %v2330_v20  ;;  %v2244_v61 = vmul.f32 %v2243_v17, %v6159_v39  ;;  %v2250_v45 = vstv %s6368_s15 }
 0x3aa   : > { %2398 = vadd.xlane.f32.xlu1 %v2397_v62  ;;  %v2247_v2 = vmul.f32 %v2246_v18, %v6176_v53  ;;  %v2291_v9 = vadd.f32 %v2290_v16, %v2287_v63  ;;  %v2294_v56 = vmul.f32 %v2293_v30, %v6247_v34  ;;  %v2301_v4 = vstv %s6350_s23 }
 0x3ab   : > { %v2254_v49 = vstv %s6375_s29  ;;  %v2251_v43 = vmul.f32 %v2250_v45, %v6202_v54  ;;  %v2258_v58 = vstv %s6381_s11  ;;  %v2298_v13 = vmul.f32 %v2297_v12, %v6288_v27 }
 0x3ac   : > { %v2248_v28 = vadd.f32 %v2247_v2, %v2244_v61  ;;  %v2295_v60 = vadd.f32 %v2294_v56, %v2291_v9  ;;  %v2510_v47 = vsel %vm835_vm0, %v6424_v37, 0.0  ;;  %v2302_v0 = vmul.f32 %v2301_v4, %v6371_v1 }
 0x3ad   : > { %v2255_v44 = vmul.f32 %v2254_v49, %v6205_v26  ;;  %v2259_v36 = vmul.f32 %v2258_v58, %v6232_v46  ;;  %v2262_v52 = vstv %s6390_s12  ;;  %v2336_v57 = vstv %s6404_s10 }
 0x3ae   : > { %v2252_v29 = vadd.f32 %v2251_v43, %v2248_v28  ;;  %v2299_v5 = vadd.f32 %v2298_v13, %v2295_v60  ;;  %v2337_v8 = vmul.f32 %v2336_v57, %v6159_v39  ;;  %v2339_v33 = vstv %s6409_s28 }
 0x3af   : > { %v2343_v42 = vstv %s6417_s16  ;;  %v2266_v11 = vstv %s6395_s8  ;;  %v2340_v22 = vmul.f32 %v2339_v33, %v6176_v53  ;;  %v2263_v23 = vmul.f32 %v2262_v52, %v6247_v34 }
 0x3b0   : > { %v2256_v21 = vadd.f32 %v2255_v44, %v2252_v29  ;;  %v6459_v40 = vadd.f32 %v2302_v0, %v2299_v5  ;;  %v2270_v51 = vstv %s6422_s4  ;;  %v2347_v6 = vstv %s6429_s18 }
 0x3b1   : > { %2511 = vadd.xlane.f32.xlu2 %v2510_v47  ;;  %v2341_v32 = vadd.f32 %v2340_v22, %v2337_v8  ;;  %v2344_v25 = vmul.f32 %v2343_v42, %v6202_v54  ;;  %v2351_v35 = vstv %s6434_s3  ;;  %v2267_v7 = vmul.f32 %v2266_v11, %v6288_v27 }
 0x3b2   : > { %v2260_v15 = vadd.f32 %v2259_v36, %v2256_v21  ;;  %v2487_v31 = vsel %vm835_vm0, %v6459_v40, 0.0  ;;  %v2407_v55 = vmul.f32 %v6402_v14, %v6402_v14  ;;  %v2271_v30 = vmul.f32 %v2270_v51, %v6371_v1 }
 0x3b3   : > { %2488 = vadd.xlane.f32.xlu0 %v2487_v31  ;;  %v2452_v50 = vmul.f32 %v6398_v41, %v6398_v41  ;;  %v2345_v59 = vadd.f32 %v2344_v25, %v2341_v32  ;;  %v2348_v3 = vmul.f32 %v2347_v6, %v6205_v26  ;;  %v2352_v12 = vmul.f32 %v2351_v35, %v6232_v46 }
 0x3b4   : > { %v2264_v38 = vadd.f32 %v2263_v23, %v2260_v15  ;;  %v2355_v24 = vstv %s6438_s22  ;;  %v2367_v10 = vstv %s6441_s1  ;;  %v2370_v63 = vstv %s6447_s30 }
 0x3b5   : > { %v2349_v62 = vadd.f32 %v2348_v3, %v2345_v59  ;;  %v2368_v20 = vmul.f32 %v2367_v10, %v6159_v39  ;;  %v2374_v16 = vstv %s6452_s17  ;;  %v2408_v18 = vsel %vm835_vm0, %v2407_v55, 0.0 }
 0x3b6   : > { %v2268_v48 = vadd.f32 %v2267_v7, %v2264_v38  ;;  %v2359_v61 = vstv %s6457_s5  ;;  %v2371_v2 = vmul.f32 %v2370_v63, %v6176_v53  ;;  %v2356_v9 = vmul.f32 %v2355_v24, %v6247_v34 }
 0x3b7   : > { %v2353_v45 = vadd.f32 %v2352_v12, %v2349_v62  ;;  %v2378_v56 = vstv %s6463_s24  ;;  %v2363_v4 = vstv %s6468_s9  ;;  %v2375_v28 = vmul.f32 %v2374_v16, %v6202_v54 }
 0x3b8   : > { %v6493_v17 = vadd.f32 %v2271_v30, %v2268_v48  ;;  %v2372_v49 = vadd.f32 %v2371_v2, %v2368_v20  ;;  %v2453_v43 = vsel %vm835_vm0, %v2452_v50, 0.0  ;;  %v2360_v58 = vmul.f32 %v2359_v61, %v6288_v27 }
 0x3b9   : > { %2409 = vadd.xlane.f32.xlu2 %v2408_v18  ;;  %v2357_v53 = vadd.f32 %v2356_v9, %v2353_v45  ;;  %v2382_v60 = vstv %s6474_s19  ;;  %v2379_v0 = vmul.f32 %v2378_v56, %v6205_v26  ;;  %v2364_v54 = vmul.f32 %v2363_v4, %v6371_v1 }
 0x3ba   : > { %v2464_v39 = vsel %vm835_vm0, %v6493_v17, 0.0  ;;  %v2475_v13 = vmul.f32 %v6493_v17, %v6493_v17  ;;  %v2376_v47 = vadd.f32 %v2375_v28, %v2372_v49  ;;  %v2386_v44 = vstv %s6483_s20 }
 0x3bb   : > { %2465 = vadd.xlane.f32.xlu1 %v2464_v39  ;;  %2454 = vadd.xlane.f32.xlu0 %v2453_v43  ;;  %v2361_v29 = vadd.f32 %v2360_v58, %v2357_v53  ;;  %v2383_v36 = vmul.f32 %v2382_v60, %v6232_v46  ;;  %v2521_v57 = vmul.f32 %v6424_v37, %v6424_v37  ;;  %v2390_v21 = vstv %s6491_s27 }
 0x3bc   : > { %v2380_v5 = vadd.f32 %v2379_v0, %v2376_v47  ;;  %v2476_v8 = vsel %vm835_vm0, %v2475_v13, 0.0  ;;  %v2387_v42 = vmul.f32 %v2386_v44, %v6247_v34  ;;  %v2391_v22 = vmul.f32 %v2390_v21, %v6288_v27 }
 0x3bd   : > { %v6515_v52 = vadd.f32 %v2364_v54, %v2361_v29  ;;  %v2394_v15 = vstv %s6504_s0  ;;  %v2522_v46 = vsel %vm835_vm0, %v2521_v57, 0.0  ;;  %v2429_v34 = vmul.f32 %v6400_v19, %v6400_v19 }
 0x3be   : > { %v2384_v33 = vadd.f32 %v2383_v36, %v2380_v5  ;;  %v2395_v6 = vmul.f32 %v2394_v15, %v6371_v1  ;;  %v2498_v35 = vmul.f32 %v6459_v40, %v6459_v40 }
 0x3bf   : > { %v2533_v26 = vsel %vm835_vm0, %v6515_v52, 0.0  ;;  %v2544_v51 = vmul.f32 %v6515_v52, %v6515_v52  ;;  %v2430_v27 = vsel %vm835_vm0, %v2429_v34, 0.0 }
 0x3c0   : > { %v2388_v11 = vadd.f32 %v2387_v42, %v2384_v33  ;;  %v2499_v1 = vsel %vm835_vm0, %v2498_v35, 0.0 }
 0x3c1   : > { %2477 = vadd.xlane.f32.xlu2 %v2476_v8  ;;  %v2545_v32 = vsel %vm835_vm0, %v2544_v51, 0.0 }
 0x3c2   : > { %v2392_v23 = vadd.f32 %v2391_v22, %v2388_v11 }
 0x3c3   : > { %2534 = vadd.xlane.f32.xlu1 %v2533_v26  ;;  %2523 = vadd.xlane.f32.xlu0 %v2522_v46 }
 0x3c4   : > { %v6532_v31 = vadd.f32 %v2395_v6, %v2392_v23 }
 0x3c6   : > { %v2556_v25 = vsel %vm835_vm0, %v6532_v31, 0.0  ;;  %v2567_v38 = vmul.f32 %v6532_v31, %v6532_v31 }
 0x3c8   : > { %v2568_v7 = vsel %vm835_vm0, %v2567_v38, 0.0 }
 0x3c9   : > { %2546 = vadd.xlane.f32.xlu2 %v2545_v32 }
 0x3cb   : > { %2431 = vadd.xlane.f32.xlu1 %v2430_v27  ;;  %2557 = vadd.xlane.f32.xlu0 %v2556_v25 }
 0x3d3   : > { %2500 = vadd.xlane.f32.xlu1 %v2499_v1 }
 0x3db   : > { %2569 = vadd.xlane.f32.xlu1 %v2568_v7 }
 0x41c   : > { %v2443_v55 = vpop.xlane.xlu2 %2442  ;;  %v2420_v30 = vpop.xlane.xlu0 %2419 }
 0x41d   : > { %v2399_v50 = vpop.xlane.xlu1 %2398  ;;  %v2421_v12 = vrot.slane %v2420_v30, 4  ;;  %v2444_v58 = vrot.slane %v2443_v55, 4 }
 0x41e   : > { %v2400_v59 = vrot.slane %v2399_v50, 4 }
 0x41f   : > { %v2422_v63 = vadd.f32 %v2421_v12, %v2420_v30  ;;  %v2445_v5 = vadd.f32 %v2444_v58, %v2443_v55 }
 0x420   : > { %v2401_v3 = vadd.f32 %v2400_v59, %v2399_v50 }
 0x421   : > { %v2423_v18 = vrot.slane %v2422_v63, 2  ;;  %v2446_v26 = vrot.slane %v2445_v5, 2 }
 0x422   : > { %v2402_v48 = vrot.slane %v2401_v3, 2 }
 0x423   : > { %v2424_v39 = vadd.f32 %v2423_v18, %v2422_v63  ;;  %v2447_v55 = vadd.f32 %v2446_v26, %v2445_v5 }
 0x424   : > { %v2512_v24 = vpop.xlane.xlu2 %2511  ;;  %v2403_v10 = vadd.f32 %v2402_v48, %v2401_v3 }
 0x425   : > { %v2425_v43 = vrot.slane %v2424_v39, 1  ;;  %v2513_v42 = vrot.slane %v2512_v24, 4  ;;  %v2448_v18 = vrot.slane %v2447_v55, 1 }
 0x426   : > { %v2404_v62 = vrot.slane %v2403_v10, 1  ;;  %v2489_v20 = vpop.xlane.xlu0 %2488 }
 0x427   : > { %v2426_v44 = vadd.f32 %v2425_v43, %v2424_v39  ;;  %v2490_v36 = vrot.slane %v2489_v20, 4  ;;  %v2514_v35 = vadd.f32 %v2513_v42, %v2512_v24 }
 0x428   : > { %v2405_v16 = vadd.f32 %v2404_v62, %v2403_v10 }
 0x429   : > { %v2491_v11 = vadd.f32 %v2490_v36, %v2489_v20  ;;  %v2515_v62 = vrot.slane %v2514_v35, 2 }
 0x42a   : > { %3917 = vpush %v2405_v16 }
 0x42b   : > { %v2492_v38 = vrot.slane %v2491_v11, 2 }
 0x42c   : > { %v2410_v61 = vpop.xlane.xlu2 %2409 }
 0x42d   : > { %v2411_v2 = vrot.slane %v2410_v61, 4 }
 0x42e   : > { %v2466_v45 = vpop.xlane.xlu1 %2465  ;;  %v2455_v9 = vpop.xlane.xlu0 %2454 }
 0x42f   : > { %v2412_v56 = vadd.f32 %v2411_v2, %v2410_v61  ;;  %v2456_v60 = vrot.slane %v2455_v9, 4  ;;  %v2467_v54 = vrot.slane %v2466_v45, 4  ;;  %v2493_v2 = vadd.f32 %v2492_v38, %v2491_v11 }
 0x431   : > { %v2413_v4 = vrot.slane %v2412_v56, 2  ;;  %v2457_v57 = vadd.f32 %v2456_v60, %v2455_v9  ;;  %v2468_v8 = vadd.f32 %v2467_v54, %v2466_v45  ;;  %v2494_v60 = vrot.slane %v2493_v2, 1 }
 0x433   : > { %v2414_v49 = vadd.f32 %v2413_v4, %v2412_v56  ;;  %v2458_v22 = vrot.slane %v2457_v57, 2  ;;  %v2469_v32 = vrot.slane %v2468_v8, 2 }
 0x434   : > { %v2478_v28 = vpop.xlane.xlu2 %2477 }
 0x435   : > { %v2415_v53 = vrot.slane %v2414_v49, 1  ;;  %v2479_v0 = vrot.slane %v2478_v28, 4  ;;  %v2459_v30 = vadd.f32 %v2458_v22, %v2457_v57  ;;  %v2470_v10 = vadd.f32 %v2469_v32, %v2468_v8 }
 0x436   : > { %v2535_v13 = vpop.xlane.xlu1 %2534  ;;  %v2524_v47 = vpop.xlane.xlu0 %2523 }
 0x437   : > { %v2416_v29 = vadd.f32 %v2415_v53, %v2414_v49  ;;  %v2480_v21 = vadd.f32 %v2479_v0, %v2478_v28  ;;  %v2525_v15 = vrot.slane %v2524_v47, 4  ;;  %v2536_v27 = vrot.slane %v2535_v13, 4 }
 0x438   : > { %v2460_v61 = vrot.slane %v2459_v30, 1  ;;  %v2471_v49 = vrot.slane %v2470_v10, 1  ;;  %v2449_v53 = vadd.f32 %v2448_v18, %v2447_v55 }
 0x439   : > { %3919 = vpush %v2416_v29  ;;  %v2481_v23 = vrot.slane %v2480_v21, 2  ;;  %v2526_v7 = vadd.f32 %v2525_v15, %v2524_v47  ;;  %v2537_v48 = vadd.f32 %v2536_v27, %v2535_v13  ;;  %v2516_v13 = vadd.f32 %v2515_v62, %v2514_v35 }
 0x43a   : > { %3921 = vpush %v2426_v44  ;;  %v2461_v58 = vadd.f32 %v2460_v61, %v2459_v30  ;;  %v2472_v5 = vadd.f32 %v2471_v49, %v2470_v10 }
 0x43b   : > { %v2482_v3 = vadd.f32 %v2481_v23, %v2480_v21  ;;  %v2527_v63 = vrot.slane %v2526_v7, 2  ;;  %v2538_v39 = vrot.slane %v2537_v48, 2  ;;  %v2495_v21 = vadd.f32 %v2494_v60, %v2493_v2 }
 0x43c   : > { %v2547_v33 = vpop.xlane.xlu2 %2546 }
 0x43d   : > { %v2548_v34 = vrot.slane %v2547_v33, 4  ;;  %v2483_v56 = vrot.slane %v2482_v3, 1  ;;  %v2528_v54 = vadd.f32 %v2527_v63, %v2526_v7  ;;  %v2539_v36 = vadd.f32 %v2538_v39, %v2537_v48 }
 0x43e   : > { %v2432_v46 = vpop.xlane.xlu1 %2431  ;;  %v2558_v6 = vpop.xlane.xlu0 %2557 }
 0x43f   : > { %v2433_v51 = vrot.slane %v2432_v46, 4  ;;  %v2559_v25 = vrot.slane %v2558_v6, 4  ;;  %v2549_v59 = vadd.f32 %v2548_v34, %v2547_v33  ;;  %v2484_v29 = vadd.f32 %v2483_v56, %v2482_v3 }
 0x440   : > { %v2517_v33 = vrot.slane %v2516_v13, 1  ;;  %v2529_v11 = vrot.slane %v2528_v54, 1  ;;  %v2540_v15 = vrot.slane %v2539_v36, 1 }
 0x441   : > { %v2434_v1 = vadd.f32 %v2433_v51, %v2432_v46  ;;  %v2560_v12 = vadd.f32 %v2559_v25, %v2558_v6  ;;  %v2550_v45 = vrot.slane %v2549_v59, 2 }
 0x442   : > { %v2518_v6 = vadd.f32 %v2517_v33, %v2516_v13  ;;  %v2530_v32 = vadd.f32 %v2529_v11, %v2528_v54  ;;  %v2541_v25 = vadd.f32 %v2540_v15, %v2539_v36 }
 0x443   : > { %v2435_v50 = vrot.slane %v2434_v1, 2  ;;  %v2561_v4 = vrot.slane %v2560_v12, 2  ;;  %v2551_v47 = vadd.f32 %v2550_v45, %v2549_v59 }
 0x445   : > { %v2436_v20 = vadd.f32 %v2435_v50, %v2434_v1  ;;  %v2562_v44 = vadd.f32 %v2561_v4, %v2560_v12  ;;  %v2552_v22 = vrot.slane %v2551_v47, 1 }
 0x446   : > { %v2501_v16 = vpop.xlane.xlu1 %2500 }
 0x447   : > { %v2502_v24 = vrot.slane %v2501_v16, 4  ;;  %v2437_v9 = vrot.slane %v2436_v20, 1  ;;  %v2563_v46 = vrot.slane %v2562_v44, 1  ;;  %v2553_v27 = vadd.f32 %v2552_v22, %v2551_v47 }
 0x449   : > { %v2503_v28 = vadd.f32 %v2502_v24, %v2501_v16  ;;  %v2438_v43 = vadd.f32 %v2437_v9, %v2436_v20  ;;  %v2564_v35 = vadd.f32 %v2563_v46, %v2562_v44 }
 0x44b   : > { %v2504_v0 = vrot.slane %v2503_v28, 2  ;;  %3923 = vpush %v2438_v43 }
 0x44c   : > { %3925 = vpush %v2449_v53 }
 0x44d   : > { %3927 = vpush %v2461_v58  ;;  %v2505_v57 = vadd.f32 %v2504_v0, %v2503_v28 }
 0x44e   : > { %3929 = vpush %v2472_v5  ;;  %v2570_v8 = vpop.xlane.xlu1 %2569 }
 0x44f   : > { %3931 = vpush %v2484_v29  ;;  %v2571_v42 = vrot.slane %v2570_v8, 4  ;;  %v2506_v26 = vrot.slane %v2505_v57, 1 }
 0x450   : > { %3933 = vpush %v2495_v21 }
 0x451   : > { %v2572_v23 = vadd.f32 %v2571_v42, %v2570_v8  ;;  %v2507_v51 = vadd.f32 %v2506_v26, %v2505_v57 }
 0x453   : > { %v2573_v34 = vrot.slane %v2572_v23, 2  ;;  %3935 = vpush %v2507_v51 }
 0x454   : > { %3937 = vpush %v2518_v6 }
 0x455   : > { %v2574_v1 = vadd.f32 %v2573_v34, %v2572_v23  ;;  %3939 = vpush %v2530_v32 }
 0x456   : > { %3941 = vpush %v2541_v25 }
 0x457   : > { %3943 = vpush %v2553_v27  ;;  %v2575_v38 = vrot.slane %v2574_v1, 1 }
 0x458   : > { %3945 = vpush %v2564_v35 }
 0x459   : > { %v2576_v7 = vadd.f32 %v2575_v38, %v2574_v1 }
 0x45b   : > { %3947 = vpush %v2576_v7  ;;  %s3918_s6 = spop %3917 }
 0x46a   : > { %s3920_s13 = spop %3919 }
 0x46b   : > { %s3922_s21 = spop %3921 }
 0x46c   : > { %s2428_s25 = sadd.f32 %s3922_s21, %s3918_s6 }
 0x47c   : > { %s3924_s2 = spop %3923 }
 0x47d   : > { %s2440_s26 = sadd.f32 %s3924_s2, %s3920_s13  ;;  %s3926_s23 = spop %3925 }
 0x47e   : > { %s2451_s7 = sadd.f32 %s3926_s23, %s2428_s25  ;;  %s3928_s14 = spop %3927 }
 0x47f   : > { %s2463_s15 = sadd.f32 %s3928_s14, %s2440_s26  ;;  %s3930_s29 = spop %3929 }
 0x480   : > { %s2474_s11 = sadd.f32 %s3930_s29, %s2451_s7  ;;  %s3932_s12 = spop %3931 }
 0x481   : > { %s2486_s8 = sadd.f32 %s3932_s12, %s2463_s15  ;;  %s3934_s10 = spop %3933 }
 0x482   : > { %s2497_s28 = sadd.f32 %s3934_s10, %s2474_s11 }
 0x483   : > { %s2598_s2 = sld [smem:[#allocation20]] }
 0x484   : > { %s3936_s16 = spop %3935  ;;  %s6548_s26 = sld [smem:[#allocation21]] }
 0x485   : > { %s2509_s4 = sadd.f32 %s3936_s16, %s2486_s8  ;;  %s3938_s18 = spop %3937 }
 0x486   : > { %s2520_s3 = sadd.f32 %s3938_s18, %s2497_s28  ;;  %s3940_s22 = spop %3939 }
 0x487   : > { %s2532_s1 = sadd.f32 %s3940_s22, %s2509_s4  ;;  %s3942_s30 = spop %3941 }
 0x488   : > { %s2543_s17 = sadd.f32 %s3942_s30, %s2520_s3  ;;  %s3944_s5 = spop %3943 }
 0x489   : > { %s3946_s24 = spop %3945  ;;  %s2555_s19 = sadd.f32 %s3944_s5, %s2532_s1 }
 0x48a   : > { %s2566_s9 = sadd.f32 %s3946_s24, %s2543_s17  ;;  %v2603_v24 = vstv %s6548_s26 }
 0x48b   : > { %s6550_s23 = sld [smem:[#allocation20 + $0x1]] }
 0x48c   : > { %s6544_s20 = smul.f32 0.001953125, %s2566_s9  ;;  %s3948_s27 = spop %3947 }
 0x48d   : > { %s2578_s0 = sadd.f32 %s3948_s27, %s2555_s19 }
 0x48e   : > { %s2581_s6 = smul.f32 %s6544_s20, %s6544_s20  ;;  %s6552_s7 = sld [smem:[#allocation20 + $0x2]]  ;;  %v2596_v62 = vstv %s6544_s20 }
 0x48f   : > { %s2580_s13 = smul.f32 0.001953125, %s2578_s0  ;;  %s6554_s14 = sld [smem:[#allocation20 + $0x3]]  ;;  %v2597_v20 = vsub.f32 %v6402_v14, %v2596_v62  ;;  %v2625_v63 = vsub.f32 %v6400_v19, %v2596_v62  ;;  %v2653_v16 = vsub.f32 %v6398_v41, %v2596_v62  ;;  %v2681_v18 = vsub.f32 %v6493_v17, %v2596_v62 }
 0x490   : > { %s6556_s15 = sld [smem:[#allocation20 + $0x4]]  ;;  %v2709_v61 = vsub.f32 %v6459_v40, %v2596_v62  ;;  %v2737_v2 = vsub.f32 %v6424_v37, %v2596_v62  ;;  %v2765_v14 = vsub.f32 %v6515_v52, %v2596_v62  ;;  %v2793_v41 = vsub.f32 %v6532_v31, %v2596_v62 }
 0x491   : > { %s2582_s21 = ssub.f32 %s2580_s13, %s2581_s6 }
 0x492   : > { %s6558_s29 = sld [smem:[#allocation21 + $0x1]] }
 0x493   : > { %s2583_s25 = sadd.f32 1e-05, %s2582_s21 }
 0x494   : > { %s6560_s11 = sld [smem:[#allocation21 + $0x2]] }
 0x495   : > { %v2584_v55 = vstv %s2583_s25  ;;  %s6562_s12 = sld [smem:[#allocation21 + $0x3]] }
 0x496   : > { %4164 = vrsqrt.f32 %v2584_v55  ;;  %vm2591_vm7 = vweird.f32 %v2584_v55  ;;  %s6564_s8 = sld [smem:[#allocation21 + $0x4]] }
 0x497   : > { %s6566_s10 = sld [smem:[#allocation20 + $0x5]] }
 0x498   : > { %s6568_s28 = sld [smem:[#allocation21 + $0x5]]  ;;  %v2631_v9 = vstv %s6558_s29 }
 0x499   : > { %s6570_s16 = sld [smem:[#allocation20 + $0x6]] }
 0x49a   : > { %s6573_s4 = sld [smem:[#allocation21 + $0x6]]  ;;  %v2659_v56 = vstv %s6560_s11 }
 0x49b   : > { %s6575_s18 = sld [smem:[#allocation21 + $0x7]]  ;;  %v2687_v37 = vstv %s6562_s12 }
 0x49c   : > { %v4165_v30 = vpop.eup %4164  ;;  %s6579_s22 = sld [smem:[#allocation20 + $0x7]]  ;;  %v2715_v52 = vstv %s6564_s8 }
 0x49d   : > { %v2586_v50 = vmul.f32 %v4165_v30, %v2584_v55  ;;  %vm2592_vm6 = vweird.f32 %v4165_v30  ;;  %s6635_s27 = sld [smem:[#allocation23 + $0x100]] }
 0x49e   : > { %vm2593_vm8 = vmor %vm2591_vm7, %vm2592_vm6  ;;  %v2743_v4 = vstv %s6568_s28  ;;  %s6639_s0 = sld [smem:[#allocation23 + $0x101]] }
 0x49f   : > { %v2587_v59 = vmul.f32 %v4165_v30, %v2586_v50  ;;  %s6737_s6 = sld [smem:[#allocation23]] }
 0x4a0   : > { %v2771_v31 = vstv %s6573_s4  ;;  %s6752_s13 = sld [smem:[#allocation23 + $0x1]] }
 0x4a1   : > { %v2588_v3 = vmul.f32 0.5, %v2587_v59  ;;  %v2799_v13 = vstv %s6575_s18  ;;  %s6759_s21 = sld [smem:[#allocation23 + $0x2]] }
 0x4a2   : > { %s6773_s25 = sld [smem:[#allocation23 + $0x3]] }
 0x4a3   : > { %v2589_v48 = vsub.f32 1.5, %v2588_v3  ;;  %s6807_s26 = sld [smem:[#allocation23 + $0x5]] }
 0x4a4   : > { %s6856_s29 = sld [smem:[#allocation23 + $0x82]] }
 0x4a5   : > { %v2590_v12 = vmul.f32 %v4165_v30, %v2589_v48  ;;  %s6865_s11 = sld [smem:[#allocation23 + $0x83]] }
 0x4a6   : > { %s6872_s12 = sld [smem:[#allocation23 + $0x84]] }
 0x4a7   : > { %v2594_v10 = vsel %vm2593_vm8, %v4165_v30, %v2590_v12  ;;  %s6890_s8 = sld [smem:[#allocation23 + $0x85]] }
 0x4a8   : > { %3949 = vpush %v2594_v10  ;;  %s6906_s28 = sld [smem:[#allocation23 + $0x103]] }
 0x4a9   : > { %s6916_s4 = sld [smem:[#allocation23 + $0x104]] }
 0x4aa   : > { %s6923_s18 = sld [smem:[#allocation23 + $0x87]] }
 0x4d9   : > { %s6577_s3 = spop %3949 }
 0x4da   : > { %s2599_s1 = smul.f32 %s6577_s3, %s2598_s2  ;;  %s6788_s2 = sld [smem:[#allocation23 + $0x4]] }
 0x4db   : > { %s2627_s30 = smul.f32 %s6577_s3, %s6550_s23  ;;  %s6818_s23 = sld [smem:[#allocation23 + $0x6]] }
 0x4dc   : > { %v2600_v45 = vstv %s2599_s1  ;;  %s2655_s17 = smul.f32 %s6577_s3, %s6552_s7  ;;  %s6824_s7 = sld [smem:[#allocation23 + $0x7]] }
 0x4dd   : > { %v2601_v19 = vmul.f32 %v2600_v45, %v2597_v20  ;;  %v2628_v17 = vstv %s2627_s30  ;;  %s2683_s5 = smul.f32 %s6577_s3, %s6554_s14  ;;  %v2884_v20 = vstv %s6635_s27  ;;  %s6833_s14 = sld [smem:[#allocation23 + $0x80]] }
 0x4de   : > { %v2629_v40 = vmul.f32 %v2628_v17, %v2625_v63  ;;  %v2656_v39 = vstv %s2655_s17  ;;  %s2711_s24 = smul.f32 %s6577_s3, %s6556_s15  ;;  %s6848_s15 = sld [smem:[#allocation23 + $0x81]] }
 0x4df   : > { %v6604_v49 = vadd.f32 %v2603_v24, %v2601_v19  ;;  %v2657_v28 = vmul.f32 %v2656_v39, %v2653_v16  ;;  %v2684_v43 = vstv %s2683_s5  ;;  %s2739_s9 = smul.f32 %s6577_s3, %s6566_s10  ;;  %s6897_s10 = sld [smem:[#allocation23 + $0x102]] }
 0x4e0   : > { %v6609_v53 = vadd.f32 %v2631_v9, %v2629_v40  ;;  %v2685_v58 = vmul.f32 %v2684_v43, %v2681_v18  ;;  %v2712_v60 = vstv %s2711_s24  ;;  %s2767_s19 = smul.f32 %s6577_s3, %s6570_s16  ;;  %v2887_v18 = vstv %s6639_s0  ;;  %s6911_s16 = sld [smem:[#allocation23 + $0x86]] }
 0x4e1   : > { %v3766_v47 = vmul.f32 -1.442695, %v6604_v49  ;;  %v6615_v0 = vadd.f32 %v2659_v56, %v2657_v28  ;;  %v2713_v29 = vmul.f32 %v2712_v60, %v2709_v61  ;;  %v2740_v54 = vstv %s2739_s9  ;;  %s2795_s20 = smul.f32 %s6577_s3, %s6579_s22  ;;  %s6927_s3 = sld [smem:[#allocation23 + $0x105]] }
 0x4e2   : > { %v3769_v44 = vmul.f32 -1.442695, %v6609_v53  ;;  %v6620_v5 = vadd.f32 %v2687_v37, %v2685_v58  ;;  %v2741_v36 = vmul.f32 %v2740_v54, %v2737_v2  ;;  %v2768_v57 = vstv %s2767_s19  ;;  %s6931_s22 = sld [smem:[#allocation24]] }
 0x4e3   : > { %4166 = vpow2.f32 %v3766_v47  ;;  %v3772_v21 = vmul.f32 -1.442695, %v6615_v0  ;;  %v6623_v8 = vadd.f32 %v2715_v52, %v2713_v29  ;;  %v2769_v33 = vmul.f32 %v2768_v57, %v2765_v14  ;;  %s6936_s1 = sld [smem:[#allocation23 + $0x106]] }
 0x4e4   : > { %4168 = vpow2.f32 %v3769_v44  ;;  %v3775_v42 = vmul.f32 -1.442695, %v6620_v5  ;;  %v6626_v26 = vadd.f32 %v2743_v4, %v2741_v36  ;;  %v2796_v11 = vstv %s2795_s20  ;;  %s6940_s30 = sld [smem:[#allocation24 + $0x1]] }
 0x4e5   : > { %4170 = vpow2.f32 %v3772_v21  ;;  %v3778_v22 = vmul.f32 -1.442695, %v6623_v8  ;;  %v6629_v15 = vadd.f32 %v2771_v31, %v2769_v33  ;;  %v2797_v46 = vmul.f32 %v2796_v11, %v2793_v41  ;;  %s6945_s17 = sld [smem:[#allocation23 + $0x107]] }
 0x4e6   : > { %4172 = vpow2.f32 %v3775_v42  ;;  %v3781_v23 = vmul.f32 -1.442695, %v6626_v26  ;;  %s6960_s5 = sld [smem:[#allocation24 + $0x2]] }
 0x4e7   : > { %4174 = vpow2.f32 %v3778_v22  ;;  %v3784_v51 = vmul.f32 -1.442695, %v6629_v15  ;;  %v6633_v6 = vadd.f32 %v2799_v13, %v2797_v46  ;;  %v2825_v13 = vstv %s6752_s13  ;;  %s7398_s19 = sld [smem:[#allocation121_spill]] }
 0x4e8   : > { %4176 = vpow2.f32 %v3781_v23  ;;  %s7405_s0 = sld [smem:[#allocation53_spill]] }
 0x4e9   : > { %v4167_v34 = vpop.eup %4166  ;;  %4178 = vpow2.f32 %v3784_v51  ;;  %v3787_v1 = vmul.f32 -1.442695, %v6633_v6 }
 0x4ea   : > { %v4169_v32 = vpop.eup %4168  ;;  %v6637_v27 = vadd.f32 1.0, %v4167_v34 }
 0x4eb   : > { %v4171_v25 = vpop.eup %4170  ;;  %v6641_v35 = vadd.f32 1.0, %v4169_v32 }
 0x4ec   : > { %v4173_v38 = vpop.eup %4172  ;;  %4180 = vrcp.f32 %v6637_v27  ;;  %v6646_v30 = vadd.f32 1.0, %v4171_v25  ;;  %v2620_v3 = vand.u32 2147483648, %v6637_v27  ;;  %v2618_v10 = vand.u32 2147483647, %v6637_v27 }
 0x4ed   : > { %v4175_v7 = vpop.eup %4174  ;;  %4182 = vrcp.f32 %v6641_v35  ;;  %v6648_v50 = vadd.f32 1.0, %v4173_v38  ;;  %v2648_v48 = vand.u32 2147483648, %v6641_v35  ;;  %vm2614_vm9 = vweird.f32 %v6637_v27 }
 0x4ee   : > { %v4177_v55 = vpop.eup %4176  ;;  %v6650_v59 = vadd.f32 1.0, %v4175_v7  ;;  %4184 = vpow2.f32 %v3787_v1  ;;  %v2676_v16 = vand.u32 2147483648, %v6646_v30  ;;  %v2646_v14 = vand.u32 2147483647, %v6641_v35 }
 0x4ef   : > { %4186 = vrcp.f32 %v6646_v30  ;;  %v4179_v12 = vpop.eup %4178  ;;  %v6657_v62 = vadd.f32 1.0, %v4177_v55  ;;  %v2674_v45 = vand.u32 2147483647, %v6646_v30  ;;  %v2704_v24 = vand.u32 2147483648, %v6648_v50 }
 0x4f0   : > { %4188 = vrcp.f32 %v6648_v50  ;;  %v2621_v9 = vor.u32 1.1754944e-38, %v2620_v3  ;;  %vm2642_vm10 = vweird.f32 %v6641_v35  ;;  %v6676_v19 = vor.u32 1.1754944e-38, %v2648_v48 }
 0x4f1   : > { %4190 = vrcp.f32 %v6650_v59  ;;  %vm6680_vm11 = vcmp.eq.f32.partialorder %v2618_v10, 8.507059e+37  ;;  %vm2670_vm12 = vweird.f32 %v6646_v30  ;;  %v6686_v40 = vadd.f32 1.0, %v4179_v12 }
 0x4f2   : > { %v6660_v63 = vpop.eup %4180  ;;  %4192 = vrcp.f32 %v6657_v62  ;;  %v2677_v4 = vor.u32 1.1754944e-38, %v2676_v16  ;;  %vm2698_vm13 = vweird.f32 %v6648_v50  ;;  %v2702_v28 = vand.u32 2147483647, %v6648_v50 }
 0x4f3   : > { %v6666_v61 = vpop.eup %4182  ;;  %v2610_v2 = vmul.f32 %v6660_v63, %v6637_v27  ;;  %vm2615_vm14 = vweird.f32 %v6660_v63  ;;  %vm6694_vm15 = vcmp.eq.f32.partialorder %v2646_v14, 8.507059e+37  ;;  %vm6699_vm1 = vcmp.eq.f32.partialorder %v2674_v45, 8.507059e+37 }
 0x4f4   : > { %v2638_v41 = vmul.f32 %v6666_v61, %v6641_v35  ;;  %v6678_v17 = vpop.eup %4184  ;;  %v6703_v47 = vor.u32 1.1754944e-38, %v2704_v24  ;;  %vm2726_vm2 = vweird.f32 %v6650_v59  ;;  %vm2643_vm3 = vweird.f32 %v6666_v61  ;;  %vm6721_vm4 = vmor %vm2614_vm9, %vm2615_vm14 }
 0x4f5   : > { %v2611_v56 = vsub.f32 1.0, %v2610_v2  ;;  %v4187_v39 = vpop.eup %4186  ;;  %4194 = vrcp.f32 %v6686_v40  ;;  %v2730_v33 = vand.u32 2147483647, %v6650_v59  ;;  %vm6726_vm5 = vcmp.eq.f32.partialorder %v2702_v28, 8.507059e+37  ;;  %vm6743_vm7 = vmor %vm2642_vm10, %vm2643_vm3 }
 0x4f6   : > { %v2639_v52 = vsub.f32 1.0, %v2638_v41  ;;  %v6690_v43 = vpop.eup %4188  ;;  %v2666_v60 = vmul.f32 %v4187_v39, %v6646_v30  ;;  %v2732_v23 = vand.u32 2147483648, %v6650_v59  ;;  %v2758_v51 = vand.u32 2147483647, %v6657_v62 }
 0x4f7   : > { %v2612_v31 = vmul.f32 %v6660_v63, %v2611_v56  ;;  %v6706_v29 = vpop.eup %4190  ;;  %v2694_v44 = vmul.f32 %v6690_v43, %v6648_v50  ;;  %vm2671_vm6 = vweird.f32 %v4187_v39  ;;  %vm2699_vm8 = vweird.f32 %v6690_v43 }
 0x4f8   : > { %v2640_v54 = vmul.f32 %v6666_v61, %v2639_v52  ;;  %v2667_v57 = vsub.f32 1.0, %v2666_v60  ;;  %v2722_v21 = vmul.f32 %v6706_v29, %v6650_v59  ;;  %v6732_v34 = vpop.eup %4192  ;;  %vm2754_vm9 = vweird.f32 %v6657_v62  ;;  %vm2672_vm14 = vmor %vm2670_vm12, %vm2671_vm6 }
 0x4f9   : > { %v2613_v36 = vadd.f32 %v6660_v63, %v2612_v31  ;;  %v2695_v22 = vsub.f32 1.0, %v2694_v44  ;;  %v2750_v7 = vmul.f32 %v6732_v34, %v6657_v62  ;;  %vm2727_vm10 = vweird.f32 %v6706_v29 }
 0x4fa   : > { %v2641_v11 = vadd.f32 %v6666_v61, %v2640_v54  ;;  %v2668_v27 = vmul.f32 %v4187_v39, %v2667_v57  ;;  %v2723_v25 = vsub.f32 1.0, %v2722_v21  ;;  %vm6769_vm3 = vcmp.eq.f32.partialorder %v2730_v33, 8.507059e+37  ;;  %vm6802_vm12 = vmor %vm2726_vm2, %vm2727_vm10 }
 0x4fb   : > { %v2617_v32 = vsel %vm6721_vm4, %v6660_v63, %v2613_v36  ;;  %v2696_v38 = vmul.f32 %v6690_v43, %v2695_v22  ;;  %v6761_v48 = vpop.eup %4194  ;;  %v2751_v16 = vsub.f32 1.0, %v2750_v7  ;;  %vm6779_vm4 = vmor %vm2698_vm13, %vm2699_vm8  ;;  %v2733_v14 = vor.u32 1.1754944e-38, %v2732_v23 }
 0x4fc   : > { %v2645_v55 = vsel %vm6743_vm7, %v6666_v61, %v2641_v11  ;;  %v2669_v35 = vadd.f32 %v4187_v39, %v2668_v27  ;;  %v2724_v3 = vmul.f32 %v6706_v29, %v2723_v25  ;;  %v2622_v12 = vsel %vm6680_vm11, %v2621_v9, %v2617_v32 }
 0x4fd   : > { %v2697_v10 = vadd.f32 %v6690_v43, %v2696_v38  ;;  %vm6784_vm11 = vcmp.eq.f32.partialorder %v2758_v51, 8.507059e+37  ;;  %v2650_v24 = vsel %vm6694_vm15, %v6676_v19, %v2645_v55  ;;  %v2752_v56 = vmul.f32 %v6732_v34, %v2751_v16 }
 0x4fe   : > { %v2673_v61 = vsel %vm2672_vm14, %v4187_v39, %v2669_v35  ;;  %v2725_v30 = vadd.f32 %v6706_v29, %v2724_v3  ;;  %v6810_v19 = vmul.f32 %v2622_v12, %v6604_v49  ;;  %vm2755_vm13 = vweird.f32 %v6732_v34 }
 0x4ff   : > { %v2678_v50 = vsel %vm6699_vm1, %v2677_v4, %v2673_v61  ;;  %v2701_v9 = vsel %vm6779_vm4, %v6690_v43, %v2697_v10  ;;  %v2778_v59 = vmul.f32 %v6761_v48, %v6686_v40  ;;  %v2753_v39 = vadd.f32 %v6732_v34, %v2752_v56  ;;  %vm6839_vm1 = vmor %vm2754_vm9, %vm2755_vm13 }
 0x500   : > { %v2729_v37 = vsel %vm6802_vm12, %v6706_v29, %v2725_v30  ;;  %v2760_v52 = vand.u32 2147483648, %v6657_v62  ;;  %vm2782_vm15 = vweird.f32 %v6686_v40  ;;  %v2786_v49 = vand.u32 2147483647, %v6686_v40 }
 0x501   : > { %v2652_v4 = vmul.f32 %v2650_v24, %v6609_v53  ;;  %v6828_v28 = vmul.f32 %v2678_v50, %v6615_v0  ;;  %v2706_v43 = vsel %vm6726_vm5, %v6703_v47, %v2701_v9  ;;  %v2779_v31 = vsub.f32 1.0, %v2778_v59 }
 0x502   : > { %v2734_v58 = vsel %vm6769_vm3, %v2733_v14, %v2729_v37  ;;  %v6844_v53 = vadd.f32 1.0, %v6678_v17  ;;  %v2822_v0 = vstv %s6737_s6  ;;  %v2757_v47 = vsel %vm6839_vm1, %v6732_v34, %v2753_v39  ;;  %s7406_s6 = sld [smem:[#allocation51_spill]] }
 0x503   : > { %v2780_v29 = vmul.f32 %v6761_v48, %v2779_v31  ;;  %vm2783_vm2 = vweird.f32 %v6761_v48  ;;  %v2823_v62 = vmul.f32 %v2822_v0, %v6810_v19  ;;  %v6861_v17 = vmul.f32 %v2884_v20, %v6810_v19 }
 0x504   : > { %v2761_v54 = vor.u32 1.1754944e-38, %v2760_v52  ;;  %v2788_v44 = vand.u32 2147483648, %v6686_v40  ;;  %4196 = vrcp.f32 %v6844_v53  ;;  %v6868_v36 = vmul.f32 %v2706_v43, %v6620_v5  ;;  %vm6885_vm5 = vmor %vm2782_vm15, %vm2783_vm2 }
 0x505   : > { %v2781_v57 = vadd.f32 %v6761_v48, %v2780_v29  ;;  %v2826_v21 = vmul.f32 %v2825_v13, %v2652_v4  ;;  %v2829_v33 = vstv %s6759_s21  ;;  %v6875_v20 = vmul.f32 %v2734_v58, %v6623_v8 }
 0x506   : > { %v2888_v42 = vmul.f32 %v2887_v18, %v2652_v4  ;;  %v2762_v11 = vsel %vm6784_vm11, %v2761_v54, %v2757_v47  ;;  %v2833_v22 = vstv %s6773_s25  ;;  %v2830_v18 = vmul.f32 %v2829_v33, %v6828_v28  ;;  %s7408_s25 = sld [smem:[#allocation43_spill]] }
 0x507   : > { %v2785_v8 = vsel %vm6885_vm5, %v6761_v48, %v2781_v57  ;;  %v2827_v46 = vadd.f32 %v2826_v21, %v2823_v62  ;;  %v2837_v23 = vstv %s6788_s2  ;;  %vm2787_vm6 = vcmp.eq.f32.partialorder %v2786_v49, 8.507059e+37 }
 0x508   : > { %v2789_v40 = vor.u32 1.1754944e-38, %v2788_v44  ;;  %v2814_v51 = vand.u32 2147483647, %v6844_v53  ;;  %v2816_v34 = vand.u32 2147483648, %v6844_v53  ;;  %v6902_v32 = vmul.f32 %v2762_v11, %v6626_v26  ;;  %s7407_s13 = smul.u32 48, %s7406_s6 }
 0x509   : > { %vm2810_vm7 = vweird.f32 %v6844_v53  ;;  %v2831_v27 = vadd.f32 %v2830_v18, %v2827_v46  ;;  %v2834_v25 = vmul.f32 %v2833_v22, %v6868_v36  ;;  %v2838_v7 = vmul.f32 %v2837_v23, %v6875_v20 }
 0x50a   : > { %v4197_v1 = vpop.eup %4196  ;;  %v2790_v38 = vsel %vm2787_vm6, %v2789_v40, %v2785_v8  ;;  %v2853_v55 = vstv %s6833_s14  ;;  %v2856_v35 = vstv %s6848_s15  ;;  %v2841_v48 = vstv %s6807_s26  ;;  %s7014_s21 = scalar_lea.vmem [#allocation26], %s7407_s13 }
 0x50b   : > { %v2806_v26 = vmul.f32 %v4197_v1, %v6844_v53  ;;  %v2835_v3 = vadd.f32 %v2834_v25, %v2831_v27  ;;  %v2860_v12 = vstv %s6856_s29  ;;  %vm6918_vm8 = vcmp.eq.f32.partialorder %v2814_v51, 8.507059e+37  ;;  %s3245_s29 = sshll.u32 %s7014_s21, 4  ;;  %s3246_s29 = int_to_ptr.vmem [resolvable:$true] %s3245_s29 }
 0x50c   : > { %v2817_v63 = vor.u32 1.1754944e-38, %v2816_v34  ;;  %v2854_v16 = vmul.f32 %v2853_v55, %v6810_v19  ;;  %v2857_v61 = vmul.f32 %v2856_v35, %v2652_v4  ;;  %v2845_v14 = vstv %s6818_s23  ;;  %s3951_s2 = smul.u32 48, %s7408_s25 }
 0x50d   : > { %v2807_v2 = vsub.f32 1.0, %v2806_v26  ;;  %v2839_v30 = vadd.f32 %v2838_v7, %v2835_v3  ;;  %v2864_v45 = vstv %s6865_s11  ;;  %v2792_v24 = vmul.f32 %v2790_v38, %v6629_v15 }
 0x50e   : > { %v2842_v50 = vmul.f32 %v2841_v48, %v6902_v32  ;;  %v2858_v9 = vadd.f32 %v2857_v61, %v2854_v16  ;;  %v2861_v41 = vmul.f32 %v2860_v12, %v6828_v28  ;;  %vm2811_vm9 = vweird.f32 %v4197_v1  ;;  %v7399_v48 = vld [vmem:[#allocation55_spill] sm:$0xff]  ;;  %v7401_v61 = vld [vmem:[#allocation61_spill] sm:$0xff] }
 0x50f   : > { %v2808_v56 = vmul.f32 %v4197_v1, %v2807_v2  ;;  %v2849_v19 = vstv %s6824_s7  ;;  %v2868_v37 = vstv %s6872_s12  ;;  %v2865_v39 = vmul.f32 %v2864_v45, %v6868_v36  ;;  %vm2812_vm10 = vmor %vm2810_vm7, %vm2811_vm9  ;;  %s7409_s7 = sld [smem:[#allocation131_spill]]  ;;  %s3232_s12 = scalar_lea.sflag [#allocation5], %s7406_s6 }
 0x510   : > { %v2862_v59 = vadd.f32 %v2861_v41, %v2858_v9  ;;  %v2872_v15 = vstv %s6890_s8  ;;  %v2889_v52 = vadd.f32 %v2888_v42, %v6861_v17  ;;  %v2843_v4 = vadd.f32 %v2842_v50, %v2839_v30  ;;  %v7402_v30 = vld [vmem:[#allocation80_spill] sm:$0xff]  ;;  %v814_v9 = vld [vmem:[%s7398_s19 + $0x8] sm:$0xff] }
 0x511   : > { %v2809_v49 = vadd.f32 %v4197_v1, %v2808_v56  ;;  %v2891_v43 = vstv %s6897_s10  ;;  %v2895_v31 = vstv %s6906_s28  ;;  %v2846_v58 = vmul.f32 %v2845_v14, %v2792_v24  ;;  %v7404_v41 = vld [vmem:[#allocation86_spill] sm:$0xff] }
 0x512   : > { %v2866_v60 = vadd.f32 %v2865_v39, %v2862_v59  ;;  %v2869_v0 = vmul.f32 %v2868_v37, %v6875_v20  ;;  %v2892_v13 = vmul.f32 %v2891_v43, %v6828_v28  ;;  %v2873_v29 = vmul.f32 %v2872_v15, %v6902_v32 }
 0x513   : > { %v2813_v47 = vsel %vm2812_vm10, %v4197_v1, %v2809_v49  ;;  %v2876_v62 = vstv %s6911_s16  ;;  %v2899_v17 = vstv %s6916_s4  ;;  %v2896_v57 = vmul.f32 %v2895_v31, %v6868_v36 }
 0x514   : > { %v2818_v54 = vsel %vm6918_vm8, %v2817_v63, %v2813_v47  ;;  %v2870_v53 = vadd.f32 %v2869_v0, %v2866_v60  ;;  %v2893_v44 = vadd.f32 %v2892_v13, %v2889_v52  ;;  %v2847_v33 = vadd.f32 %v2846_v58, %v2843_v4 }
 0x515   : > { %v2820_v21 = vmul.f32 %v2818_v54, %v6633_v6  ;;  %v2880_v42 = vstv %s6923_s18  ;;  %v2903_v28 = vstv %s6927_s3  ;;  %v2877_v5 = vmul.f32 %v2876_v62, %v2792_v24  ;;  %s3244_s15 = scalar_lea.hbm %s7409_s7, %s3951_s2  ;;  %s4488_s4 = scalar_lea.hbm %s7409_s7, 96 }
 0x516   : > { %v2874_v11 = vadd.f32 %v2873_v29, %v2870_v53  ;;  %v2897_v22 = vadd.f32 %v2896_v57, %v2893_v44  ;;  %v2900_v8 = vmul.f32 %v2899_v17, %v6875_v20  ;;  %v2915_v18 = vstv %s6931_s22  ;;  %v813_v20 = vld [vmem:[%s7398_s19] sm:$0xff]  ;;  %s3247_s11 = sshll.u32 %s3244_s15, 4  ;;  %s3248_s11 = int_to_ptr.hbm [resolvable:$true] %s3247_s11 }
 0x517   : > { %v2850_v46 = vmul.f32 %v2849_v19, %v2820_v21  ;;  %v2907_v23 = vstv %s6936_s1  ;;  %v2881_v51 = vmul.f32 %v2880_v42, %v2820_v21  ;;  %v2904_v6 = vmul.f32 %v2903_v28, %v6902_v32  ;;  %v7400_v32 = vld [vmem:[#allocation70_spill] sm:$0xff]  ;;  %v3110_v19 = vld [vmem:[#allocation13] sm:$0xf]  ;;  %s4482_s8 = sshra.s32 %s3248_s11, 4  ;;  %s4483_s8 = int_to_ptr.hbm [resolvable:$true] %s4482_s8 }
 0x518   : > { %v2878_v40 = vadd.f32 %v2877_v5, %v2874_v11  ;;  %v2901_v36 = vadd.f32 %v2900_v8, %v2897_v22  ;;  %v2918_v27 = vstv %s6940_s30  ;;  %v2911_v25 = vstv %s6945_s17  ;;  %s4484_s10 = scalar_lea.hbm %s4483_s8, 48  ;;  %p4489_p6 = scmp.lt.s32.totalorder %s4483_s8, %s7409_s7 }
 0x519   : > { %v2851_v34 = vadd.f32 %v2850_v46, %v2847_v33  ;;  %v2908_v7 = vmul.f32 %v2907_v23, %v2792_v24  ;;  %v2912_v3 = vmul.f32 %v2911_v25, %v2820_v21  ;;  %v2921_v10 = vstv %s6960_s5  ;;  %v7403_v24 = vld [vmem:[#allocation85_spill] sm:$0xff]  ;;  %p4485_p1 = scmp.ne.s32.totalorder %s4483_s8, %s4484_s10  ;;  %p4490_p8 = scmp.lt.s32.totalorder %s4488_s4, %s4484_s10 }
 0x51a   : > { %v2882_v1 = vadd.f32 %v2881_v51, %v2878_v40  ;;  %v2905_v38 = vadd.f32 %v2904_v6, %v2901_v36  ;;  %vm3160_vm14 = vcmask 1043456   ;;  %vm2956_vm3 = vcmask 60416   ;;  %v3855_v36 = vld [vmem:[%s7405_s0 + $0x10] sm:$0xff] }
 0x51b   : > { %v2916_v55 = vadd.f32 %v2915_v18, %v2851_v34  ;;  %v3162_v37 = vsel %vm3160_vm14, %v3110_v19, 0  ;;  %p4486_p3 = pnand %p4485_p1, %p4777_p5  ;;  %p4491_p10 = por %p4490_p8, %p4489_p6 }
 0x51c   : > { %v2919_v35 = vadd.f32 %v2918_v27, %v2882_v1  ;;  %v2909_v26 = vadd.f32 %v2908_v7, %v2905_v38  ;;  %v3856_v1 = vld [vmem:[%s7405_s0 + $0x18] sm:$0xff] }
 0x51d   : > { %2946 = vmatpush.msra.mxu1 %v2916_v55  ;;  %v2923_v12 = vmul.f32 %v2916_v55, %v7399_v48  ;;  %p4487_p4 = pneg %p4486_p3 }
 0x51e   : > { %3003 = vmatpush.msra.mxu3 %v2919_v35  ;;  %3813 = vmatmul.msk.f32.vlgmr.msra.gmra.mxu1 %vm835_vm0, %v813_v20  ;;  %v2986_v63 = vmul.f32 %v2919_v35, %v7400_v32  ;;  %v2913_v16 = vadd.f32 %v2912_v3, %v2909_v26  ;;  %v3859_v35 = vld [vmem:[%s7405_s0 + $0x20] sm:$0xff] }
 0x51f   : > { %v2924_v2 = vsub.f32 %v7401_v61, %v2923_v12  ;;  %3817 = vmatmul.msk.f32.vlgmr.msra.gmra.mxu3 %vm835_vm0, %v813_v20  ;;  %v3203_v32 = vld [vmem:[%s7405_s0] sm:$0xff]  ;;  %p4492_p11 = pnand %p4491_p10, %p4487_p4 }
 0x520   : > { %v2987_v14 = vsub.f32 %v7402_v30, %v2986_v63  ;;  %v2922_v45 = vadd.f32 %v2921_v10, %v2913_v16  ;;  %v3860_v10 = vld [vmem:[%s7405_s0 + $0x28] sm:$0xff] }
 0x521   : > { %2974 = vmatpush.msra.mxu2 %v2924_v2 }
 0x522   : > { %3030 = vmatpush.msrb.mxu1 %v2987_v14  ;;  %v3042_v50 = vmul.f32 %v2922_v45, %v7403_v24  ;;  %3815 = vmatmul.msk.f32.vlgmr.msra.gmra.mxu2 %vm835_vm0, %v813_v20 }
 0x523   : > { %3059 = vmatpush.msrb.mxu2 %v2922_v45  ;;  %v3204_v45 = vld [vmem:[%s7405_s0 + $0x8] sm:$0xff] }
 0x524   : > { %v3043_v56 = vsub.f32 %v7404_v41, %v3042_v50  ;;  %3171 = vmatpush.bf16.msra.mxu1 %v3162_v37 }
 0x525   : > { %3873 = vmatpush.bf16.msra.mxu2 %v3162_v37 }
 0x526   : > { %3086 = vmatpush.msrb.mxu3 %v3043_v56  ;;  %3814 = vmatmul.msk.f32.gmra.mxu1 %vm835_vm0, %v814_v9 }
 0x527   : > { %3818 = vmatmul.msk.f32.gmra.mxu3 %vm835_vm0, %v814_v9 }
 0x528   : > { %3874 = vmatpush.bf16.msra.mxu3 %v3162_v37 }
 0x52a   : > { %3816 = vmatmul.msk.f32.gmra.mxu2 %vm835_vm0, %v814_v9 }
 0x52e   : > { %3819 = vmatmul.msk.f32.vlgmr.msrb.gmra.mxu1 %vm835_vm0, %v813_v20 }
 0x52f   : > { %3823 = vmatmul.msk.f32.vlgmr.msrb.gmra.mxu3 %vm835_vm0, %v813_v20 }
 0x532   : > { %3821 = vmatmul.msk.f32.vlgmr.msrb.gmra.mxu2 %vm835_vm0, %v813_v20 }
 0x536   : > { %3820 = vmatmul.msk.f32.gmra.mxu1 %vm835_vm0, %v814_v9 }
 0x537   : > { %3824 = vmatmul.msk.f32.gmra.mxu3 %vm835_vm0, %v814_v9 }
 0x53a   : > { %3822 = vmatmul.msk.f32.gmra.mxu2 %vm835_vm0, %v814_v9 }
 0x59b   : > { %v2948_v59 = vpop.f32.mrf.mxu1 }
 0x59c   : > { %v2954_v39 = vpack.c.bf16 %v2948_v59, %v2948_v59 }
 0x59e   : > { %2957 = vst.msk [vmem:[#allocation2] sm:$0xf] %vm2956_vm3, %v2954_v39 }
 0x5a2   : > { %v3005_v15 = vpop.f32.mrf.mxu3 }
 0x5a3   : > { %v2951_v52 = vpop.f32.mrf.mxu1  ;;  %v3011_v49 = vpack.c.bf16 %v3005_v15, %v3005_v15 }
 0x5a4   : > { %v2955_v4 = vpack.c.bf16 %v2951_v52, %v2951_v52 }
 0x5a5   : > { %v2976_v43 = vpop.f32.mrf.mxu2  ;;  %3013 = vst.msk [vmem:[#allocation2 + $0x8] sm:$0xf] %vm2956_vm3, %v3011_v49 }
 0x5a6   : > { %2958 = vst.msk [vmem:[#allocation2 + $0x4] sm:$0xf] %vm2956_vm3, %v2955_v4  ;;  %v2982_v31 = vpack.c.bf16 %v2976_v43, %v2976_v43 }
 0x5a8   : > { %2984 = vst.msk [vmem:[#allocation2 + $0x18] sm:$0xf] %vm2956_vm3, %v2982_v31 }
 0x5aa   : > { %v3008_v58 = vpop.f32.mrf.mxu3 }
 0x5ab   : > { %v3032_v60 = vpop.f32.mrf.mxu1  ;;  %v3012_v0 = vpack.c.bf16 %v3008_v58, %v3008_v58 }
 0x5ac   : > { %v3038_v13 = vpack.c.bf16 %v3032_v60, %v3032_v60 }
 0x5ad   : > { %v2979_v47 = vpop.f32.mrf.mxu2  ;;  %v3867_v29 = vld [vmem:[#allocation2] sm:$0xff]  ;;  %3014 = vst.msk [vmem:[#allocation2 + $0xc] sm:$0xf] %vm2956_vm3, %v3012_v0 }
 0x5ae   : > { %3040 = vst.msk [vmem:[#allocation2 + $0x20] sm:$0xf] %vm2956_vm3, %v3038_v13  ;;  %v2983_v62 = vpack.c.bf16 %v2979_v47, %v2979_v47  ;;  %3849 = vmatmul.msk.bf16.vlgmr.msra.gmra.mxu1 %vm835_vm0, %v3867_v29 }
 0x5b0   : > { %2985 = vst.msk [vmem:[#allocation2 + $0x1c] sm:$0xf] %vm2956_vm3, %v2983_v62 }
 0x5b2   : > { %v3088_v17 = vpop.f32.mrf.mxu3 }
 0x5b3   : > { %v3035_v54 = vpop.f32.mrf.mxu1  ;;  %v3094_v53 = vpack.c.bf16 %v3088_v17, %v3088_v17 }
 0x5b4   : > { %v3039_v44 = vpack.c.bf16 %v3035_v54, %v3035_v54  ;;  %v3868_v42 = vld [vmem:[#allocation2 + $0x8] sm:$0xff] }
 0x5b5   : > { %v3061_v57 = vpop.f32.mrf.mxu2  ;;  %3096 = vst.msk [vmem:[#allocation2 + $0x28] sm:$0xf] %vm2956_vm3, %v3094_v53 }
 0x5b6   : > { %3041 = vst.msk [vmem:[#allocation2 + $0x24] sm:$0xf] %vm2956_vm3, %v3039_v44  ;;  %v3067_v21 = vpack.c.bf16 %v3061_v57, %v3061_v57 }
 0x5b7   : > { %v3870_v18 = vld [vmem:[#allocation2 + $0x18] sm:$0xff] }
 0x5b8   : > { %3069 = vst.msk [vmem:[#allocation2 + $0x10] sm:$0xf] %vm2956_vm3, %v3067_v21 }
 0x5ba   : > { %v3091_v33 = vpop.f32.mrf.mxu3 }
 0x5bb   : > { %v3095_v28 = vpack.c.bf16 %v3091_v33, %v3091_v33 }
 0x5bd   : > { %v3064_v11 = vpop.f32.mrf.mxu2  ;;  %v3871_v5 = vld [vmem:[#allocation2 + $0x20] sm:$0xff]  ;;  %3097 = vst.msk [vmem:[#allocation2 + $0x2c] sm:$0xf] %vm2956_vm3, %v3095_v28 }
 0x5be   : > { %v3068_v22 = vpack.c.bf16 %v3064_v11, %v3064_v11  ;;  %3853 = vmatmul.msk.bf16.vlgmr.msra.gmra.mxu3 %vm835_vm0, %v3871_v5  ;;  %3850 = vmatmul.msk.bf16.gmra.mxu1 %vm835_vm0, %v3868_v42 }
 0x5c0   : > { %3070 = vst.msk [vmem:[#allocation2 + $0x14] sm:$0xf] %vm2956_vm3, %v3068_v22 }
 0x5c4   : > { %v3872_v46 = vld [vmem:[#allocation2 + $0x28] sm:$0xff] }
 0x5c7   : > { %v3869_v8 = vld [vmem:[#allocation2 + $0x10] sm:$0xff] }
 0x5c8   : > { %3851 = vmatmul.msk.bf16.vlgmr.msra.gmra.mxu2 %vm835_vm0, %v3869_v8 }
 0x5ce   : > { %3854 = vmatmul.msk.bf16.gmra.mxu3 %vm835_vm0, %v3872_v46 }
 0x5d8   : > { %3852 = vmatmul.msk.bf16.gmra.mxu2 %vm835_vm0, %v3870_v18 }
 0x62b   : > { %v3173_v23 = vpop.f32.mrf.mxu1 }
 0x62c   : > { %v3205_v61 = vmul.f32 %v3203_v32, %v3173_v23 }
 0x633   : > { %v3175_v40 = vpop.f32.mrf.mxu1 }
 0x634   : > { %v3206_v24 = vmul.f32 %v3204_v45, %v3175_v40 }
 0x63b   : > { %v3178_v51 = vpop.f32.mrf.mxu1 }
 0x63c   : > { %v3214_v6 = vmul.f32 %v3855_v36, %v3178_v51 }
 0x641   : > { %v3193_v34 = vpop.f32.mrf.mxu3 }
 0x642   : > { %v3216_v27 = vadd.f32 %v3214_v6, %v3193_v34 }
 0x643   : > { %v3180_v25 = vpop.f32.mrf.mxu1 }
 0x644   : > { %3857 = vst [vmem:[%s7014_s21 + $0x10] sm:$0xff] %v3216_v27  ;;  %v3215_v38 = vmul.f32 %v3856_v1, %v3180_v25 }
 0x649   : > { %v3195_v7 = vpop.f32.mrf.mxu3 }
 0x64a   : > { %v3217_v55 = vadd.f32 %v3215_v38, %v3195_v7 }
 0x64b   : > { %v3183_v20 = vpop.f32.mrf.mxu2 }
 0x64c   : > { %3858 = vst [vmem:[%s7014_s21 + $0x18] sm:$0xff] %v3217_v55  ;;  %v3224_v26 = vmul.f32 %v3859_v35, %v3183_v20 }
 0x651   : > { %v3198_v3 = vpop.f32.mrf.mxu3 }
 0x652   : > { %v3226_v48 = vadd.f32 %v3224_v26, %v3198_v3 }
 0x653   : > { %v3185_v12 = vpop.f32.mrf.mxu2 }
 0x654   : > { %3861 = vst [vmem:[%s7014_s21 + $0x20] sm:$0xff] %v3226_v48  ;;  %v3225_v63 = vmul.f32 %v3860_v10, %v3185_v12 }
 0x659   : > { %v3200_v16 = vpop.f32.mrf.mxu3 }
 0x65a   : > { %v3227_v2 = vadd.f32 %v3225_v63, %v3200_v16 }
 0x65b   : > { %v3188_v30 = vpop.f32.mrf.mxu2 }
 0x65c   : > { %3862 = vst [vmem:[%s7014_s21 + $0x28] sm:$0xff] %v3227_v2  ;;  %v3207_v14 = vadd.f32 %v3205_v61, %v3188_v30 }
 0x65e   : > { %3209 = vst [vmem:[%s7014_s21] sm:$0xff] %v3207_v14 }
 0x663   : > { %v3190_v50 = vpop.f32.mrf.mxu2 }
 0x664   : > { %v3208_v9 = vadd.f32 %v3206_v24, %v3190_v50 }
 0x666   : > { %3210 = vst [vmem:[%s7014_s21 + $0x8] sm:$0xff] %v3208_v9 }
 0x667   : > { %4495 = shalt.err (!%p4492_p11)
}
 0x668   : > { %s4607_s22 = smov 128   ;;  %s4608_s1 = smov 8  }
 0x669   : > { %3996 = dma.vmem_to_hbm [thread:$0]  (%p4777_p5), %s3246_s29, 768, %s3248_s11, %s3232_s12, %s4607_s22, %s4607_s22, %s4608_s1  }
 0x66a PF: > { %s7411_s30 = sld [smem:[#allocation40_spill]] }
 0x66b   : > { %s7413_s5 = sld [smem:[#allocation45_spill]] }
 0x670   : > { %s3262_s24 = sand.u32 1, %s7411_s30  }
 0x671   : > { %p7414_p12 = scmp.ge.s32.totalorder %s7413_s5, 2  ;;  %s3263_s9 = scalar_lea.sflag [#allocation5], %s3262_s24 }
 0x673   : > { %p4040_p13 = pnand %p7414_p12, %p4785_p7 }
 0x675   : > { %p4041_p0 = pneg %p4040_p13 }
 0x677   : > { %4569 = dma.done.wait (%p4041_p0), %s3263_s9, 768  }
 0x678   : > { %4571 = vsyncadd (%p4041_p0), %s3263_s9, 4294966528  ;;  %s44_s26 = sadd.s32 1, %s7413_s5   ;;  %s7415_s21 = sld [smem:[#allocation41_spill]] }
 0x679   : > { %p41_p2 = scmp.ge.s32.totalorder %s44_s26, 4   ;;  %s7416_s22 = sld [smem:[#allocation42_spill]] }
 0x67a   : > { %s7417_s23 = sld [smem:[#allocation49_spill]] }
 0x67b   : > { %s7418_s24 = sld [smem:[#allocation44_spill]]  ;;  %43 = sbr.rel (!%p41_p2) target bundleno = 34 (0x22), region = 213 }
 0x67c   : > { %s7419_s25 = sld [smem:[#allocation47_spill]] }
 0x680   :  { %3269 = vsyncpa [#allocation4], 1 }
 0x681   :  { %3271 = vsyncpa [#allocation4 + $0x1], 1 }
 0x682   :  { %3272 = vsyncpa [#allocation9], 1 }
 0x683   :  { %3274 = vsyncpa [#allocation9 + $0x1], 1 }
 0x684   :  { %3275 = vsyncpa [#allocation12], 1 }
 0x685   :  { %3277 = vsyncpa [#allocation12 + $0x1], 1 }
 0x686   :  { %3278 = vsyncpa [#allocation5], 1 }
 0x687   :  { %3280 = vsyncpa [#allocation5 + $0x1], 1 }
 0x688   :  { %3281 = vsyncpa [#allocation6], 1 }
 0x689   :  { %3283 = vsyncpa [#allocation6 + $0x1], 1 }
 0x68a   :  { %3284 = vsyncpa [#allocation17], 1 }
 0x68b   :  { %3285 = vsyncpa [#allocation22], 1 }
 0x68c   :  { %3286 = vsyncpa [#allocation7], 1 }
 0x68d   :  { %3288 = vsyncpa [#allocation7 + $0x1], 1 }
 0x68e   :  { %3289 = vsyncpa [#allocation19], 1 }
 0x68f   :  { %3290 = vsyncpa [#allocation25], 1 }

</bundles_post_ra>
